<compile_context>
chip_gen: v7x
topology: tpu7x:2x2x1
jax: 0.10.0
libtpu: 0.0.40
codegen_flags: <defaults>
</compile_context>

<pallas_src>
import functools

import jax
import jax.numpy as jnp
import numpy as np
from jax import lax
from jax.experimental import pallas as pl
from jax.experimental.pallas import tpu as pltpu

FEATURES = 4
BATCH = 2
IMG = 32
LRELU_SLOPE = 0.2
LN_EPS = 1e-5


# ----------------------------------------------------------------------------- fused kernel
def _fused_disc_kernel(col1_ref, w1_ref,
                       g2_ref, w2_ref, ln2g_ref, ln2b_ref,
                       g3_ref, w3_ref, ln3g_ref, ln3b_ref,
                       wfc_ref, bfc_ref, out_ref):
    """One grid step = one sample.  All intermediates stay in VMEM/vregs."""

    def lrelu(v):
        return jnp.where(v >= 0, v, LRELU_SLOPE * v)

    def layernorm(v, g, b):
        # PyTorch LayerNorm([C,H,W]): normalize over the full per-sample volume,
        # which is exactly the whole (P, C) tile; per-element affine.
        m = jnp.mean(v)
        d = v - m
        var = jnp.mean(d * d)
        return d * lax.rsqrt(var + LN_EPS) * g + b

    def conv_taps(act, g_ref, w_ref):
        # act:   (P_in, C_in) f32 activation in (h*w, c) raster layout.
        # g_ref: (16, P_out, P_in) bf16 constant 0/1 gather matrices, one per
        #        (kh, kw) tap (zero rows encode the conv's zero padding).
        # w_ref: (16, C_in, C_out) bf16 per-tap conv weights.
        a_bf = act.astype(jnp.bfloat16)            # bf16 MXU operands, f32 acc
        p_out = g_ref.shape[1]
        c_out = w_ref.shape[2]
        acc = jnp.zeros((p_out, c_out), jnp.float32)
        for t in range(16):                        # static unroll: 16 taps
            col_t = jnp.dot(g_ref[t], a_bf, preferred_element_type=jnp.float32)
            acc = acc + jnp.dot(col_t.astype(jnp.bfloat16), w_ref[t],
                                preferred_element_type=jnp.float32)
        return acc

    # conv1 + LeakyReLU   (im2col of the raw image is wrapper-side glue)
    a = jnp.dot(col1_ref[0], w1_ref[...], preferred_element_type=jnp.float32)  # (256, 2F)
    a = lrelu(a)

    # conv2 + LayerNorm([4F, 8, 8]) + LeakyReLU
    a = conv_taps(a, g2_ref, w2_ref)                                           # (64, 4F)
    a = lrelu(layernorm(a, ln2g_ref[...], ln2b_ref[...]))

    # conv3 + LayerNorm([8F, 4, 4]) + LeakyReLU
    a = conv_taps(a, g3_ref, w3_ref)                                           # (16, 8F)
    a = lrelu(layernorm(a, ln3g_ref[...], ln3b_ref[...]))

    # fc folded into the epilogue: VPU multiply + full reduction (f32).
    out_ref[0] = jnp.sum(a * wfc_ref[...], keepdims=True) + bfc_ref[...]


# ----------------------------------------------------------------------------- pallas_call wrapper
def _const_spec(shape):
    zero = (0,) * len(shape)
    return pl.BlockSpec(shape, lambda i, _z=zero: _z)


def _fused_call(col1, w1, g2, w2, ln2g, ln2b, g3, w3, ln3g, ln3b, wfc, bfc):
    n, p1, k1 = col1.shape
    c1 = w1.shape[1]
    p2, c2 = g2.shape[1], w2.shape[2]
    p3, c3 = g3.shape[1], w3.shape[2]

    args = (col1, w1, g2, w2, ln2g, ln2b, g3, w3, ln3g, ln3b, wfc, bfc)
    flops = 2 * n * (p1 * k1 * c1
                     + 16 * (p2 * p1 * c1 + p2 * c1 * c2)
                     + 16 * (p3 * p2 * c2 + p3 * c2 * c3)
                     + p3 * c3)
    bytes_accessed = sum(int(np.prod(a.shape)) * a.dtype.itemsize for a in args) + n * 4

    out = pl.pallas_call(
        _fused_disc_kernel,
        out_shape=jax.ShapeDtypeStruct((n, 1, 1), jnp.float32),
        grid=(n,),
        in_specs=[
            pl.BlockSpec((1, p1, k1), lambda i: (i, 0, 0)),  # per-sample im2col of conv1
            _const_spec(w1.shape),
            _const_spec(g2.shape),
            _const_spec(w2.shape),
            _const_spec(ln2g.shape),
            _const_spec(ln2b.shape),
            _const_spec(g3.shape),
            _const_spec(w3.shape),
            _const_spec(ln3g.shape),
            _const_spec(ln3b.shape),
            _const_spec(wfc.shape),
            _const_spec(bfc.shape),
        ],
        out_specs=pl.BlockSpec((1, 1, 1), lambda i: (i, 0, 0)),
        compiler_params=pltpu.CompilerParams(dimension_semantics=("parallel",)),
        cost_estimate=pl.CostEstimate(flops=int(flops), transcendentals=2 * n,
                                      bytes_accessed=int(bytes_accessed)),
    )(*args)
    return out.reshape(n, 1)


# ----------------------------------------------------------------------------- XLA-side glue
def _im2col(x_nhwc, k=4, stride=2, pad=1):
    """(N,H,W,C) -> (N, Ho*Wo, k*k*C), patch features ordered (kh, kw, cin)."""
    n, h, w, c = x_nhwc.shape
    xp = jnp.pad(x_nhwc, ((0, 0), (pad, pad), (pad, pad), (0, 0)))
    ho = (h + 2 * pad - k) // stride + 1
    wo = (w + 2 * pad - k) // stride + 1
    cols = []
    for kh in range(k):
        for kw in range(k):
            cols.append(
                xp[:, kh: kh + stride * ho: stride, kw: kw + stride * wo: stride, :]
            )
    col = jnp.stack(cols, axis=3)  # (N, Ho, Wo, k*k, C)
    return col.reshape(n, ho * wo, k * k * c), ho, wo


def _oihw_to_matrix(w_oihw):
    """(Cout, Cin, KH, KW) -> (KH*KW*Cin, Cout) matching the im2col feature order."""
    return jnp.transpose(w_oihw, (2, 3, 1, 0)).reshape(-1, w_oihw.shape[0])


def _taps_weight(w_oihw):
    """(Cout, Cin, 4, 4) -> (16, Cin, Cout) with tap index t = kh*4 + kw (bf16)."""
    co, ci = w_oihw.shape[0], w_oihw.shape[1]
    return jnp.transpose(w_oihw, (2, 3, 1, 0)).reshape(16, ci, co).astype(jnp.bfloat16)


def _chw_to_pc(a_chw):
    """(C, H, W) -> (H*W, C) matching the kernel's (P, C) activation layout."""
    c, h, w = a_chw.shape
    return jnp.transpose(a_chw, (1, 2, 0)).reshape(h * w, c)


@functools.lru_cache(maxsize=None)
def _tap_gather_mats(s_in):
    """Constant 0/1 tap-gather matrices for a k=4, s=2, p=1 conv.

    Returns (16, P_out, P_in) bf16 with G[t, p_out, p_in] = 1 iff output raster
    position p_out reads input raster position p_in for tap t = kh*4 + kw
    (zero rows encode the conv's zero padding)."""
    s_out = s_in // 2
    g = np.zeros((16, s_out * s_out, s_in * s_in), np.float32)
    for kh in range(4):
        for kw in range(4):
            t = kh * 4 + kw
            for ho in range(s_out):
                u = 2 * ho + kh - 1
                if not 0 <= u < s_in:
                    continue
                for wo in range(s_out):
                    v = 2 * wo + kw - 1
                    if 0 <= v < s_in:
                        g[t, ho * s_out + wo, u * s_in + v] = 1.0
    return jnp.asarray(g, jnp.bfloat16)


@jax.jit
def conv_discriminator_forward(x_nchw, params):
    n = x_nchw.shape[0]
    x = jnp.transpose(x_nchw, (0, 2, 3, 1))                       # -> NHWC

    # conv1 im2col (wrapper-side; the kernel's only activation input).
    col1, _, _ = _im2col(x)                                       # (N, 256, 16)
    col1 = col1.astype(jnp.bfloat16)

    # Parameter re-layout (trace-time glue).
    w1 = _oihw_to_matrix(params["w1"]).astype(jnp.bfloat16)       # (16, 2F)
    w2 = _taps_weight(params["w2"])                               # (16, 2F, 4F)
    w3 = _taps_weight(params["w3"])                               # (16, 4F, 8F)
    g2 = _tap_gather_mats(16)                                     # (16, 64, 256)
    g3 = _tap_gather_mats(8)                                      # (16, 16, 64)
    ln2g = _chw_to_pc(params["g2"])
    ln2b = _chw_to_pc(params["b2"])
    ln3g = _chw_to_pc(params["g3"])
    ln3b = _chw_to_pc(params["b3"])

    # fc: PyTorch flattens (c, h, w); our activation is (h*w, c) -> permute weight.
    c3 = params["w3"].shape[0]
    wfc = _chw_to_pc(params["wfc"].reshape(c3, 4, 4))             # (16, 8F) f32
    bfc = params["bfc"].reshape(1, 1)

    return _fused_call(col1, w1, g2, w2, ln2g, ln2b, g3, w3, ln3g, ln3b, wfc, bfc)


# ----------------------------------------------------------------------------- reference
def _leaky(x):
    return jnp.where(x >= 0, x, LRELU_SLOPE * x)


def _ref_forward(x, p):
    """Pure-XLA reference with the same precision policy as the kernel:
    conv operands in bf16, accumulation / LayerNorm / LeakyReLU / fc in f32."""
    dn = ("NCHW", "OIHW", "NCHW")
    bf = jnp.bfloat16

    def conv(v, w):
        return lax.conv_general_dilated(
            v.astype(bf), w.astype(bf), (2, 2), ((1, 1), (1, 1)),
            dimension_numbers=dn, preferred_element_type=jnp.float32)

    y = _leaky(conv(x, p["w1"]))
    y = conv(y, p["w2"])
    mu = y.mean(axis=(1, 2, 3), keepdims=True)
    var = ((y - mu) ** 2).mean(axis=(1, 2, 3), keepdims=True)
    y = _leaky((y - mu) * lax.rsqrt(var + LN_EPS) * p["g2"][None] + p["b2"][None])
    y = conv(y, p["w3"])
    mu = y.mean(axis=(1, 2, 3), keepdims=True)
    var = ((y - mu) ** 2).mean(axis=(1, 2, 3), keepdims=True)
    y = _leaky((y - mu) * lax.rsqrt(var + LN_EPS) * p["g3"][None] + p["b3"][None])
    flat = y.reshape(y.shape[0], -1)
    return flat @ p["wfc"].T + p["bfc"]


# ----------------------------------------------------------------------------- main
def _make_params(key, features):
    c1, c2, c3 = 2 * features, 4 * features, 8 * features
    ks = jax.random.split(key, 9)
    return {
        "w1": 0.10 * jax.random.normal(ks[0], (c1, 1, 4, 4), jnp.float32),
        "w2": 0.05 * jax.random.normal(ks[1], (c2, c1, 4, 4), jnp.float32),
        "w3": 0.05 * jax.random.normal(ks[2], (c3, c2, 4, 4), jnp.float32),
        "g2": 1.0 + 0.1 * jax.random.normal(ks[3], (c2, 8, 8), jnp.float32),
        "b2": 0.1 * jax.random.normal(ks[4], (c2, 8, 8), jnp.float32),
        "g3": 1.0 + 0.1 * jax.random.normal(ks[5], (c3, 4, 4), jnp.float32),
        "b3": 0.1 * jax.random.normal(ks[6], (c3, 4, 4), jnp.float32),
        "wfc": 0.05 * jax.random.normal(ks[7], (1, c3 * 4 * 4), jnp.float32),
        "bfc": 0.1 * jax.random.normal(ks[8], (1,), jnp.float32),
    }


if __name__ == "__main__":
    key = jax.random.PRNGKey(0)
    k_x, k_p = jax.random.split(key)
    x = jax.random.normal(k_x, (BATCH, 1, IMG, IMG), jnp.float32)  # NCHW, like PyTorch
    params = _make_params(k_p, FEATURES)

    out = jax.block_until_ready(conv_discriminator_forward(x, params))
    assert out.shape == (BATCH, 1), out.shape

    ref = jax.block_until_ready(_ref_forward(x, params))
    # Tolerance reflects the deliberate bf16 matmul-operand policy (mirrored in the reference).
    np.testing.assert_allclose(np.asarray(out), np.asarray(ref), rtol=5e-3, atol=5e-3)

    print("KERNEL_OK")
</pallas_src>

<mosaic_0001>
module attributes {stable_mosaic.version = 11 : i64} {
  func.func @_fused_disc_kernel(%arg0: i32, %arg1: memref<1x256x16xbf16, #tpu.memory_space<vmem>>, %arg2: memref<16x8xbf16, #tpu.memory_space<vmem>>, %arg3: memref<16x64x256xbf16, #tpu.memory_space<vmem>>, %arg4: memref<16x8x16xbf16, #tpu.memory_space<vmem>>, %arg5: memref<64x16xf32, #tpu.memory_space<vmem>>, %arg6: memref<64x16xf32, #tpu.memory_space<vmem>>, %arg7: memref<16x16x64xbf16, #tpu.memory_space<vmem>>, %arg8: memref<16x16x32xbf16, #tpu.memory_space<vmem>>, %arg9: memref<16x32xf32, #tpu.memory_space<vmem>>, %arg10: memref<16x32xf32, #tpu.memory_space<vmem>>, %arg11: memref<16x32xf32, #tpu.memory_space<vmem>>, %arg12: memref<1x1xf32, #tpu.memory_space<vmem>>, %arg13: memref<1x1x1xf32, #tpu.memory_space<vmem>>) attributes {dimension_semantics = [#tpu.dimension_semantics<parallel>], iteration_bounds = array<i64: 2>, scalar_prefetch = 0 : i64, scratch_operands = 0 : i64, tpu.core_type = #tpu.core_type<tc>, window_params = [{transform_indices = @transform_0, window_bounds = array<i64: 1, 256, 16>}, {pipeline_mode = #tpu.pipeline_mode<synchronous>, transform_indices = @transform_1, window_bounds = array<i64: 16, 8>}, {pipeline_mode = #tpu.pipeline_mode<synchronous>, transform_indices = @transform_2, window_bounds = array<i64: 16, 64, 256>}, {pipeline_mode = #tpu.pipeline_mode<synchronous>, transform_indices = @transform_3, window_bounds = array<i64: 16, 8, 16>}, {pipeline_mode = #tpu.pipeline_mode<synchronous>, transform_indices = @transform_4, window_bounds = array<i64: 64, 16>}, {pipeline_mode = #tpu.pipeline_mode<synchronous>, transform_indices = @transform_5, window_bounds = array<i64: 64, 16>}, {pipeline_mode = #tpu.pipeline_mode<synchronous>, transform_indices = @transform_6, window_bounds = array<i64: 16, 16, 64>}, {pipeline_mode = #tpu.pipeline_mode<synchronous>, transform_indices = @transform_7, window_bounds = array<i64: 16, 16, 32>}, {pipeline_mode = #tpu.pipeline_mode<synchronous>, transform_indices = @transform_8, window_bounds = array<i64: 16, 32>}, {pipeline_mode = #tpu.pipeline_mode<synchronous>, transform_indices = @transform_9, window_bounds = array<i64: 16, 32>}, {pipeline_mode = #tpu.pipeline_mode<synchronous>, transform_indices = @transform_10, window_bounds = array<i64: 16, 32>}, {pipeline_mode = #tpu.pipeline_mode<synchronous>, transform_indices = @transform_11, window_bounds = array<i64: 1, 1>}, {transform_indices = @transform_12, window_bounds = array<i64: 1, 1, 1>}]} {
    %c0 = arith.constant 0 : index
    %c0_0 = arith.constant 0 : index
    %c0_1 = arith.constant 0 : index
    %0 = vector.load %arg1[%c0, %c0_0, %c0_1] : memref<1x256x16xbf16, #tpu.memory_space<vmem>>, vector<1x256x16xbf16>
    %1 = vector.shape_cast %0 : vector<1x256x16xbf16> to vector<256x16xbf16>
    %c0_2 = arith.constant 0 : index
    %c0_3 = arith.constant 0 : index
    %2 = vector.load %arg2[%c0_2, %c0_3] : memref<16x8xbf16, #tpu.memory_space<vmem>>, vector<16x8xbf16>
    %cst = arith.constant dense<0.000000e+00> : vector<256x8xf32>
    %3 = tpu.matmul %1, %2, %cst {dimension_numbers = #tpu.dot_dimension_numbers<[1], [0], [0], [1], [0, 0, 1, 1], [], []>} : vector<256x16xbf16>, vector<16x8xbf16>, vector<256x8xf32> -> vector<256x8xf32>
    %cst_4 = arith.constant 0.000000e+00 : f32
    %4 = vector.broadcast %cst_4 : f32 to vector<256x8xf32>
    %5 = arith.cmpf oge, %3, %4 : vector<256x8xf32>
    %cst_5 = arith.constant 2.000000e-01 : f32
    %6 = vector.broadcast %cst_5 : f32 to vector<256x8xf32>
    %7 = arith.mulf %6, %3 : vector<256x8xf32>
    %8 = arith.select %5, %3, %7 : vector<256x8xi1>, vector<256x8xf32>
    %9 = arith.truncf %8 : vector<256x8xf32> to vector<256x8xbf16>
    %cst_6 = arith.constant 0.000000e+00 : f32
    %10 = vector.broadcast %cst_6 : f32 to vector<64x16xf32>
    %c0_7 = arith.constant 0 : index
    %c0_8 = arith.constant 0 : index
    %c0_9 = arith.constant 0 : index
    %11 = vector.load %arg3[%c0_7, %c0_8, %c0_9] : memref<16x64x256xbf16, #tpu.memory_space<vmem>>, vector<1x64x256xbf16>
    %12 = vector.shape_cast %11 : vector<1x64x256xbf16> to vector<64x256xbf16>
    %cst_10 = arith.constant dense<0.000000e+00> : vector<64x8xf32>
    %13 = tpu.matmul %12, %9, %cst_10 {dimension_numbers = #tpu.dot_dimension_numbers<[1], [0], [0], [1], [0, 0, 1, 1], [], []>} : vector<64x256xbf16>, vector<256x8xbf16>, vector<64x8xf32> -> vector<64x8xf32>
    %14 = arith.truncf %13 : vector<64x8xf32> to vector<64x8xbf16>
    %c0_11 = arith.constant 0 : index
    %c0_12 = arith.constant 0 : index
    %c0_13 = arith.constant 0 : index
    %15 = vector.load %arg4[%c0_11, %c0_12, %c0_13] : memref<16x8x16xbf16, #tpu.memory_space<vmem>>, vector<1x8x16xbf16>
    %16 = vector.shape_cast %15 : vector<1x8x16xbf16> to vector<8x16xbf16>
    %cst_14 = arith.constant dense<0.000000e+00> : vector<64x16xf32>
    %17 = tpu.matmul %14, %16, %cst_14 {dimension_numbers = #tpu.dot_dimension_numbers<[1], [0], [0], [1], [0, 0, 1, 1], [], []>} : vector<64x8xbf16>, vector<8x16xbf16>, vector<64x16xf32> -> vector<64x16xf32>
    %18 = arith.addf %10, %17 : vector<64x16xf32>
    %c1 = arith.constant 1 : index
    %c0_15 = arith.constant 0 : index
    %c0_16 = arith.constant 0 : index
    %19 = vector.load %arg3[%c1, %c0_15, %c0_16] : memref<16x64x256xbf16, #tpu.memory_space<vmem>>, vector<1x64x256xbf16>
    %20 = vector.shape_cast %19 : vector<1x64x256xbf16> to vector<64x256xbf16>
    %cst_17 = arith.constant dense<0.000000e+00> : vector<64x8xf32>
    %21 = tpu.matmul %20, %9, %cst_17 {dimension_numbers = #tpu.dot_dimension_numbers<[1], [0], [0], [1], [0, 0, 1, 1], [], []>} : vector<64x256xbf16>, vector<256x8xbf16>, vector<64x8xf32> -> vector<64x8xf32>
    %22 = arith.truncf %21 : vector<64x8xf32> to vector<64x8xbf16>
    %c1_18 = arith.constant 1 : index
    %c0_19 = arith.constant 0 : index
    %c0_20 = arith.constant 0 : index
    %23 = vector.load %arg4[%c1_18, %c0_19, %c0_20] : memref<16x8x16xbf16, #tpu.memory_space<vmem>>, vector<1x8x16xbf16>
    %24 = vector.shape_cast %23 : vector<1x8x16xbf16> to vector<8x16xbf16>
    %cst_21 = arith.constant dense<0.000000e+00> : vector<64x16xf32>
    %25 = tpu.matmul %22, %24, %cst_21 {dimension_numbers = #tpu.dot_dimension_numbers<[1], [0], [0], [1], [0, 0, 1, 1], [], []>} : vector<64x8xbf16>, vector<8x16xbf16>, vector<64x16xf32> -> vector<64x16xf32>
    %26 = arith.addf %18, %25 : vector<64x16xf32>
    %c2 = arith.constant 2 : index
    %c0_22 = arith.constant 0 : index
    %c0_23 = arith.constant 0 : index
    %27 = vector.load %arg3[%c2, %c0_22, %c0_23] : memref<16x64x256xbf16, #tpu.memory_space<vmem>>, vector<1x64x256xbf16>
    %28 = vector.shape_cast %27 : vector<1x64x256xbf16> to vector<64x256xbf16>
    %cst_24 = arith.constant dense<0.000000e+00> : vector<64x8xf32>
    %29 = tpu.matmul %28, %9, %cst_24 {dimension_numbers = #tpu.dot_dimension_numbers<[1], [0], [0], [1], [0, 0, 1, 1], [], []>} : vector<64x256xbf16>, vector<256x8xbf16>, vector<64x8xf32> -> vector<64x8xf32>
    %30 = arith.truncf %29 : vector<64x8xf32> to vector<64x8xbf16>
    %c2_25 = arith.constant 2 : index
    %c0_26 = arith.constant 0 : index
    %c0_27 = arith.constant 0 : index
    %31 = vector.load %arg4[%c2_25, %c0_26, %c0_27] : memref<16x8x16xbf16, #tpu.memory_space<vmem>>, vector<1x8x16xbf16>
    %32 = vector.shape_cast %31 : vector<1x8x16xbf16> to vector<8x16xbf16>
    %cst_28 = arith.constant dense<0.000000e+00> : vector<64x16xf32>
    %33 = tpu.matmul %30, %32, %cst_28 {dimension_numbers = #tpu.dot_dimension_numbers<[1], [0], [0], [1], [0, 0, 1, 1], [], []>} : vector<64x8xbf16>, vector<8x16xbf16>, vector<64x16xf32> -> vector<64x16xf32>
    %34 = arith.addf %26, %33 : vector<64x16xf32>
    %c3 = arith.constant 3 : index
    %c0_29 = arith.constant 0 : index
    %c0_30 = arith.constant 0 : index
    %35 = vector.load %arg3[%c3, %c0_29, %c0_30] : memref<16x64x256xbf16, #tpu.memory_space<vmem>>, vector<1x64x256xbf16>
    %36 = vector.shape_cast %35 : vector<1x64x256xbf16> to vector<64x256xbf16>
    %cst_31 = arith.constant dense<0.000000e+00> : vector<64x8xf32>
    %37 = tpu.matmul %36, %9, %cst_31 {dimension_numbers = #tpu.dot_dimension_numbers<[1], [0], [0], [1], [0, 0, 1, 1], [], []>} : vector<64x256xbf16>, vector<256x8xbf16>, vector<64x8xf32> -> vector<64x8xf32>
    %38 = arith.truncf %37 : vector<64x8xf32> to vector<64x8xbf16>
    %c3_32 = arith.constant 3 : index
    %c0_33 = arith.constant 0 : index
    %c0_34 = arith.constant 0 : index
    %39 = vector.load %arg4[%c3_32, %c0_33, %c0_34] : memref<16x8x16xbf16, #tpu.memory_space<vmem>>, vector<1x8x16xbf16>
    %40 = vector.shape_cast %39 : vector<1x8x16xbf16> to vector<8x16xbf16>
    %cst_35 = arith.constant dense<0.000000e+00> : vector<64x16xf32>
    %41 = tpu.matmul %38, %40, %cst_35 {dimension_numbers = #tpu.dot_dimension_numbers<[1], [0], [0], [1], [0, 0, 1, 1], [], []>} : vector<64x8xbf16>, vector<8x16xbf16>, vector<64x16xf32> -> vector<64x16xf32>
    %42 = arith.addf %34, %41 : vector<64x16xf32>
    %c4 = arith.constant 4 : index
    %c0_36 = arith.constant 0 : index
    %c0_37 = arith.constant 0 : index
    %43 = vector.load %arg3[%c4, %c0_36, %c0_37] : memref<16x64x256xbf16, #tpu.memory_space<vmem>>, vector<1x64x256xbf16>
    %44 = vector.shape_cast %43 : vector<1x64x256xbf16> to vector<64x256xbf16>
    %cst_38 = arith.constant dense<0.000000e+00> : vector<64x8xf32>
    %45 = tpu.matmul %44, %9, %cst_38 {dimension_numbers = #tpu.dot_dimension_numbers<[1], [0], [0], [1], [0, 0, 1, 1], [], []>} : vector<64x256xbf16>, vector<256x8xbf16>, vector<64x8xf32> -> vector<64x8xf32>
    %46 = arith.truncf %45 : vector<64x8xf32> to vector<64x8xbf16>
    %c4_39 = arith.constant 4 : index
    %c0_40 = arith.constant 0 : index
    %c0_41 = arith.constant 0 : index
    %47 = vector.load %arg4[%c4_39, %c0_40, %c0_41] : memref<16x8x16xbf16, #tpu.memory_space<vmem>>, vector<1x8x16xbf16>
    %48 = vector.shape_cast %47 : vector<1x8x16xbf16> to vector<8x16xbf16>
    %cst_42 = arith.constant dense<0.000000e+00> : vector<64x16xf32>
    %49 = tpu.matmul %46, %48, %cst_42 {dimension_numbers = #tpu.dot_dimension_numbers<[1], [0], [0], [1], [0, 0, 1, 1], [], []>} : vector<64x8xbf16>, vector<8x16xbf16>, vector<64x16xf32> -> vector<64x16xf32>
    %50 = arith.addf %42, %49 : vector<64x16xf32>
    %c5 = arith.constant 5 : index
    %c0_43 = arith.constant 0 : index
    %c0_44 = arith.constant 0 : index
    %51 = vector.load %arg3[%c5, %c0_43, %c0_44] : memref<16x64x256xbf16, #tpu.memory_space<vmem>>, vector<1x64x256xbf16>
    %52 = vector.shape_cast %51 : vector<1x64x256xbf16> to vector<64x256xbf16>
    %cst_45 = arith.constant dense<0.000000e+00> : vector<64x8xf32>
    %53 = tpu.matmul %52, %9, %cst_45 {dimension_numbers = #tpu.dot_dimension_numbers<[1], [0], [0], [1], [0, 0, 1, 1], [], []>} : vector<64x256xbf16>, vector<256x8xbf16>, vector<64x8xf32> -> vector<64x8xf32>
    %54 = arith.truncf %53 : vector<64x8xf32> to vector<64x8xbf16>
    %c5_46 = arith.constant 5 : index
    %c0_47 = arith.constant 0 : index
    %c0_48 = arith.constant 0 : index
    %55 = vector.load %arg4[%c5_46, %c0_47, %c0_48] : memref<16x8x16xbf16, #tpu.memory_space<vmem>>, vector<1x8x16xbf16>
    %56 = vector.shape_cast %55 : vector<1x8x16xbf16> to vector<8x16xbf16>
    %cst_49 = arith.constant dense<0.000000e+00> : vector<64x16xf32>
    %57 = tpu.matmul %54, %56, %cst_49 {dimension_numbers = #tpu.dot_dimension_numbers<[1], [0], [0], [1], [0, 0, 1, 1], [], []>} : vector<64x8xbf16>, vector<8x16xbf16>, vector<64x16xf32> -> vector<64x16xf32>
    %58 = arith.addf %50, %57 : vector<64x16xf32>
    %c6 = arith.constant 6 : index
    %c0_50 = arith.constant 0 : index
    %c0_51 = arith.constant 0 : index
    %59 = vector.load %arg3[%c6, %c0_50, %c0_51] : memref<16x64x256xbf16, #tpu.memory_space<vmem>>, vector<1x64x256xbf16>
    %60 = vector.shape_cast %59 : vector<1x64x256xbf16> to vector<64x256xbf16>
    %cst_52 = arith.constant dense<0.000000e+00> : vector<64x8xf32>
    %61 = tpu.matmul %60, %9, %cst_52 {dimension_numbers = #tpu.dot_dimension_numbers<[1], [0], [0], [1], [0, 0, 1, 1], [], []>} : vector<64x256xbf16>, vector<256x8xbf16>, vector<64x8xf32> -> vector<64x8xf32>
    %62 = arith.truncf %61 : vector<64x8xf32> to vector<64x8xbf16>
    %c6_53 = arith.constant 6 : index
    %c0_54 = arith.constant 0 : index
    %c0_55 = arith.constant 0 : index
    %63 = vector.load %arg4[%c6_53, %c0_54, %c0_55] : memref<16x8x16xbf16, #tpu.memory_space<vmem>>, vector<1x8x16xbf16>
    %64 = vector.shape_cast %63 : vector<1x8x16xbf16> to vector<8x16xbf16>
    %cst_56 = arith.constant dense<0.000000e+00> : vector<64x16xf32>
    %65 = tpu.matmul %62, %64, %cst_56 {dimension_numbers = #tpu.dot_dimension_numbers<[1], [0], [0], [1], [0, 0, 1, 1], [], []>} : vector<64x8xbf16>, vector<8x16xbf16>, vector<64x16xf32> -> vector<64x16xf32>
    %66 = arith.addf %58, %65 : vector<64x16xf32>
    %c7 = arith.constant 7 : index
    %c0_57 = arith.constant 0 : index
    %c0_58 = arith.constant 0 : index
    %67 = vector.load %arg3[%c7, %c0_57, %c0_58] : memref<16x64x256xbf16, #tpu.memory_space<vmem>>, vector<1x64x256xbf16>
    %68 = vector.shape_cast %67 : vector<1x64x256xbf16> to vector<64x256xbf16>
    %cst_59 = arith.constant dense<0.000000e+00> : vector<64x8xf32>
    %69 = tpu.matmul %68, %9, %cst_59 {dimension_numbers = #tpu.dot_dimension_numbers<[1], [0], [0], [1], [0, 0, 1, 1], [], []>} : vector<64x256xbf16>, vector<256x8xbf16>, vector<64x8xf32> -> vector<64x8xf32>
    %70 = arith.truncf %69 : vector<64x8xf32> to vector<64x8xbf16>
    %c7_60 = arith.constant 7 : index
    %c0_61 = arith.constant 0 : index
    %c0_62 = arith.constant 0 : index
    %71 = vector.load %arg4[%c7_60, %c0_61, %c0_62] : memref<16x8x16xbf16, #tpu.memory_space<vmem>>, vector<1x8x16xbf16>
    %72 = vector.shape_cast %71 : vector<1x8x16xbf16> to vector<8x16xbf16>
    %cst_63 = arith.constant dense<0.000000e+00> : vector<64x16xf32>
    %73 = tpu.matmul %70, %72, %cst_63 {dimension_numbers = #tpu.dot_dimension_numbers<[1], [0], [0], [1], [0, 0, 1, 1], [], []>} : vector<64x8xbf16>, vector<8x16xbf16>, vector<64x16xf32> -> vector<64x16xf32>
    %74 = arith.addf %66, %73 : vector<64x16xf32>
    %c8 = arith.constant 8 : index
    %c0_64 = arith.constant 0 : index
    %c0_65 = arith.constant 0 : index
    %75 = vector.load %arg3[%c8, %c0_64, %c0_65] : memref<16x64x256xbf16, #tpu.memory_space<vmem>>, vector<1x64x256xbf16>
    %76 = vector.shape_cast %75 : vector<1x64x256xbf16> to vector<64x256xbf16>
    %cst_66 = arith.constant dense<0.000000e+00> : vector<64x8xf32>
    %77 = tpu.matmul %76, %9, %cst_66 {dimension_numbers = #tpu.dot_dimension_numbers<[1], [0], [0], [1], [0, 0, 1, 1], [], []>} : vector<64x256xbf16>, vector<256x8xbf16>, vector<64x8xf32> -> vector<64x8xf32>
    %78 = arith.truncf %77 : vector<64x8xf32> to vector<64x8xbf16>
    %c8_67 = arith.constant 8 : index
    %c0_68 = arith.constant 0 : index
    %c0_69 = arith.constant 0 : index
    %79 = vector.load %arg4[%c8_67, %c0_68, %c0_69] : memref<16x8x16xbf16, #tpu.memory_space<vmem>>, vector<1x8x16xbf16>
    %80 = vector.shape_cast %79 : vector<1x8x16xbf16> to vector<8x16xbf16>
    %cst_70 = arith.constant dense<0.000000e+00> : vector<64x16xf32>
    %81 = tpu.matmul %78, %80, %cst_70 {dimension_numbers = #tpu.dot_dimension_numbers<[1], [0], [0], [1], [0, 0, 1, 1], [], []>} : vector<64x8xbf16>, vector<8x16xbf16>, vector<64x16xf32> -> vector<64x16xf32>
    %82 = arith.addf %74, %81 : vector<64x16xf32>
    %c9 = arith.constant 9 : index
    %c0_71 = arith.constant 0 : index
    %c0_72 = arith.constant 0 : index
    %83 = vector.load %arg3[%c9, %c0_71, %c0_72] : memref<16x64x256xbf16, #tpu.memory_space<vmem>>, vector<1x64x256xbf16>
    %84 = vector.shape_cast %83 : vector<1x64x256xbf16> to vector<64x256xbf16>
    %cst_73 = arith.constant dense<0.000000e+00> : vector<64x8xf32>
    %85 = tpu.matmul %84, %9, %cst_73 {dimension_numbers = #tpu.dot_dimension_numbers<[1], [0], [0], [1], [0, 0, 1, 1], [], []>} : vector<64x256xbf16>, vector<256x8xbf16>, vector<64x8xf32> -> vector<64x8xf32>
    %86 = arith.truncf %85 : vector<64x8xf32> to vector<64x8xbf16>
    %c9_74 = arith.constant 9 : index
    %c0_75 = arith.constant 0 : index
    %c0_76 = arith.constant 0 : index
    %87 = vector.load %arg4[%c9_74, %c0_75, %c0_76] : memref<16x8x16xbf16, #tpu.memory_space<vmem>>, vector<1x8x16xbf16>
    %88 = vector.shape_cast %87 : vector<1x8x16xbf16> to vector<8x16xbf16>
    %cst_77 = arith.constant dense<0.000000e+00> : vector<64x16xf32>
    %89 = tpu.matmul %86, %88, %cst_77 {dimension_numbers = #tpu.dot_dimension_numbers<[1], [0], [0], [1], [0, 0, 1, 1], [], []>} : vector<64x8xbf16>, vector<8x16xbf16>, vector<64x16xf32> -> vector<64x16xf32>
    %90 = arith.addf %82, %89 : vector<64x16xf32>
    %c10 = arith.constant 10 : index
    %c0_78 = arith.constant 0 : index
    %c0_79 = arith.constant 0 : index
    %91 = vector.load %arg3[%c10, %c0_78, %c0_79] : memref<16x64x256xbf16, #tpu.memory_space<vmem>>, vector<1x64x256xbf16>
    %92 = vector.shape_cast %91 : vector<1x64x256xbf16> to vector<64x256xbf16>
    %cst_80 = arith.constant dense<0.000000e+00> : vector<64x8xf32>
    %93 = tpu.matmul %92, %9, %cst_80 {dimension_numbers = #tpu.dot_dimension_numbers<[1], [0], [0], [1], [0, 0, 1, 1], [], []>} : vector<64x256xbf16>, vector<256x8xbf16>, vector<64x8xf32> -> vector<64x8xf32>
    %94 = arith.truncf %93 : vector<64x8xf32> to vector<64x8xbf16>
    %c10_81 = arith.constant 10 : index
    %c0_82 = arith.constant 0 : index
    %c0_83 = arith.constant 0 : index
    %95 = vector.load %arg4[%c10_81, %c0_82, %c0_83] : memref<16x8x16xbf16, #tpu.memory_space<vmem>>, vector<1x8x16xbf16>
    %96 = vector.shape_cast %95 : vector<1x8x16xbf16> to vector<8x16xbf16>
    %cst_84 = arith.constant dense<0.000000e+00> : vector<64x16xf32>
    %97 = tpu.matmul %94, %96, %cst_84 {dimension_numbers = #tpu.dot_dimension_numbers<[1], [0], [0], [1], [0, 0, 1, 1], [], []>} : vector<64x8xbf16>, vector<8x16xbf16>, vector<64x16xf32> -> vector<64x16xf32>
    %98 = arith.addf %90, %97 : vector<64x16xf32>
    %c11 = arith.constant 11 : index
    %c0_85 = arith.constant 0 : index
    %c0_86 = arith.constant 0 : index
    %99 = vector.load %arg3[%c11, %c0_85, %c0_86] : memref<16x64x256xbf16, #tpu.memory_space<vmem>>, vector<1x64x256xbf16>
    %100 = vector.shape_cast %99 : vector<1x64x256xbf16> to vector<64x256xbf16>
    %cst_87 = arith.constant dense<0.000000e+00> : vector<64x8xf32>
    %101 = tpu.matmul %100, %9, %cst_87 {dimension_numbers = #tpu.dot_dimension_numbers<[1], [0], [0], [1], [0, 0, 1, 1], [], []>} : vector<64x256xbf16>, vector<256x8xbf16>, vector<64x8xf32> -> vector<64x8xf32>
    %102 = arith.truncf %101 : vector<64x8xf32> to vector<64x8xbf16>
    %c11_88 = arith.constant 11 : index
    %c0_89 = arith.constant 0 : index
    %c0_90 = arith.constant 0 : index
    %103 = vector.load %arg4[%c11_88, %c0_89, %c0_90] : memref<16x8x16xbf16, #tpu.memory_space<vmem>>, vector<1x8x16xbf16>
    %104 = vector.shape_cast %103 : vector<1x8x16xbf16> to vector<8x16xbf16>
    %cst_91 = arith.constant dense<0.000000e+00> : vector<64x16xf32>
    %105 = tpu.matmul %102, %104, %cst_91 {dimension_numbers = #tpu.dot_dimension_numbers<[1], [0], [0], [1], [0, 0, 1, 1], [], []>} : vector<64x8xbf16>, vector<8x16xbf16>, vector<64x16xf32> -> vector<64x16xf32>
    %106 = arith.addf %98, %105 : vector<64x16xf32>
    %c12 = arith.constant 12 : index
    %c0_92 = arith.constant 0 : index
    %c0_93 = arith.constant 0 : index
    %107 = vector.load %arg3[%c12, %c0_92, %c0_93] : memref<16x64x256xbf16, #tpu.memory_space<vmem>>, vector<1x64x256xbf16>
    %108 = vector.shape_cast %107 : vector<1x64x256xbf16> to vector<64x256xbf16>
    %cst_94 = arith.constant dense<0.000000e+00> : vector<64x8xf32>
    %109 = tpu.matmul %108, %9, %cst_94 {dimension_numbers = #tpu.dot_dimension_numbers<[1], [0], [0], [1], [0, 0, 1, 1], [], []>} : vector<64x256xbf16>, vector<256x8xbf16>, vector<64x8xf32> -> vector<64x8xf32>
    %110 = arith.truncf %109 : vector<64x8xf32> to vector<64x8xbf16>
    %c12_95 = arith.constant 12 : index
    %c0_96 = arith.constant 0 : index
    %c0_97 = arith.constant 0 : index
    %111 = vector.load %arg4[%c12_95, %c0_96, %c0_97] : memref<16x8x16xbf16, #tpu.memory_space<vmem>>, vector<1x8x16xbf16>
    %112 = vector.shape_cast %111 : vector<1x8x16xbf16> to vector<8x16xbf16>
    %cst_98 = arith.constant dense<0.000000e+00> : vector<64x16xf32>
    %113 = tpu.matmul %110, %112, %cst_98 {dimension_numbers = #tpu.dot_dimension_numbers<[1], [0], [0], [1], [0, 0, 1, 1], [], []>} : vector<64x8xbf16>, vector<8x16xbf16>, vector<64x16xf32> -> vector<64x16xf32>
    %114 = arith.addf %106, %113 : vector<64x16xf32>
    %c13 = arith.constant 13 : index
    %c0_99 = arith.constant 0 : index
    %c0_100 = arith.constant 0 : index
    %115 = vector.load %arg3[%c13, %c0_99, %c0_100] : memref<16x64x256xbf16, #tpu.memory_space<vmem>>, vector<1x64x256xbf16>
    %116 = vector.shape_cast %115 : vector<1x64x256xbf16> to vector<64x256xbf16>
    %cst_101 = arith.constant dense<0.000000e+00> : vector<64x8xf32>
    %117 = tpu.matmul %116, %9, %cst_101 {dimension_numbers = #tpu.dot_dimension_numbers<[1], [0], [0], [1], [0, 0, 1, 1], [], []>} : vector<64x256xbf16>, vector<256x8xbf16>, vector<64x8xf32> -> vector<64x8xf32>
    %118 = arith.truncf %117 : vector<64x8xf32> to vector<64x8xbf16>
    %c13_102 = arith.constant 13 : index
    %c0_103 = arith.constant 0 : index
    %c0_104 = arith.constant 0 : index
    %119 = vector.load %arg4[%c13_102, %c0_103, %c0_104] : memref<16x8x16xbf16, #tpu.memory_space<vmem>>, vector<1x8x16xbf16>
    %120 = vector.shape_cast %119 : vector<1x8x16xbf16> to vector<8x16xbf16>
    %cst_105 = arith.constant dense<0.000000e+00> : vector<64x16xf32>
    %121 = tpu.matmul %118, %120, %cst_105 {dimension_numbers = #tpu.dot_dimension_numbers<[1], [0], [0], [1], [0, 0, 1, 1], [], []>} : vector<64x8xbf16>, vector<8x16xbf16>, vector<64x16xf32> -> vector<64x16xf32>
    %122 = arith.addf %114, %121 : vector<64x16xf32>
    %c14 = arith.constant 14 : index
    %c0_106 = arith.constant 0 : index
    %c0_107 = arith.constant 0 : index
    %123 = vector.load %arg3[%c14, %c0_106, %c0_107] : memref<16x64x256xbf16, #tpu.memory_space<vmem>>, vector<1x64x256xbf16>
    %124 = vector.shape_cast %123 : vector<1x64x256xbf16> to vector<64x256xbf16>
    %cst_108 = arith.constant dense<0.000000e+00> : vector<64x8xf32>
    %125 = tpu.matmul %124, %9, %cst_108 {dimension_numbers = #tpu.dot_dimension_numbers<[1], [0], [0], [1], [0, 0, 1, 1], [], []>} : vector<64x256xbf16>, vector<256x8xbf16>, vector<64x8xf32> -> vector<64x8xf32>
    %126 = arith.truncf %125 : vector<64x8xf32> to vector<64x8xbf16>
    %c14_109 = arith.constant 14 : index
    %c0_110 = arith.constant 0 : index
    %c0_111 = arith.constant 0 : index
    %127 = vector.load %arg4[%c14_109, %c0_110, %c0_111] : memref<16x8x16xbf16, #tpu.memory_space<vmem>>, vector<1x8x16xbf16>
    %128 = vector.shape_cast %127 : vector<1x8x16xbf16> to vector<8x16xbf16>
    %cst_112 = arith.constant dense<0.000000e+00> : vector<64x16xf32>
    %129 = tpu.matmul %126, %128, %cst_112 {dimension_numbers = #tpu.dot_dimension_numbers<[1], [0], [0], [1], [0, 0, 1, 1], [], []>} : vector<64x8xbf16>, vector<8x16xbf16>, vector<64x16xf32> -> vector<64x16xf32>
    %130 = arith.addf %122, %129 : vector<64x16xf32>
    %c15 = arith.constant 15 : index
    %c0_113 = arith.constant 0 : index
    %c0_114 = arith.constant 0 : index
    %131 = vector.load %arg3[%c15, %c0_113, %c0_114] : memref<16x64x256xbf16, #tpu.memory_space<vmem>>, vector<1x64x256xbf16>
    %132 = vector.shape_cast %131 : vector<1x64x256xbf16> to vector<64x256xbf16>
    %cst_115 = arith.constant dense<0.000000e+00> : vector<64x8xf32>
    %133 = tpu.matmul %132, %9, %cst_115 {dimension_numbers = #tpu.dot_dimension_numbers<[1], [0], [0], [1], [0, 0, 1, 1], [], []>} : vector<64x256xbf16>, vector<256x8xbf16>, vector<64x8xf32> -> vector<64x8xf32>
    %134 = arith.truncf %133 : vector<64x8xf32> to vector<64x8xbf16>
    %c15_116 = arith.constant 15 : index
    %c0_117 = arith.constant 0 : index
    %c0_118 = arith.constant 0 : index
    %135 = vector.load %arg4[%c15_116, %c0_117, %c0_118] : memref<16x8x16xbf16, #tpu.memory_space<vmem>>, vector<1x8x16xbf16>
    %136 = vector.shape_cast %135 : vector<1x8x16xbf16> to vector<8x16xbf16>
    %cst_119 = arith.constant dense<0.000000e+00> : vector<64x16xf32>
    %137 = tpu.matmul %134, %136, %cst_119 {dimension_numbers = #tpu.dot_dimension_numbers<[1], [0], [0], [1], [0, 0, 1, 1], [], []>} : vector<64x8xbf16>, vector<8x16xbf16>, vector<64x16xf32> -> vector<64x16xf32>
    %138 = arith.addf %130, %137 : vector<64x16xf32>
    %c0_120 = arith.constant 0 : index
    %c0_121 = arith.constant 0 : index
    %139 = vector.load %arg5[%c0_120, %c0_121] : memref<64x16xf32, #tpu.memory_space<vmem>>, vector<64x16xf32>
    %c0_122 = arith.constant 0 : index
    %c0_123 = arith.constant 0 : index
    %140 = vector.load %arg6[%c0_122, %c0_123] : memref<64x16xf32, #tpu.memory_space<vmem>>, vector<64x16xf32>
    %141 = vector.shape_cast %138 : vector<64x16xf32> to vector<1x64x16xf32>
    %cst_124 = arith.constant dense<0.000000e+00> : vector<1xf32>
    %142 = vector.multi_reduction <add>, %141, %cst_124 [1, 2] : vector<1x64x16xf32> to vector<1xf32>
    %143 = vector.shape_cast %142 : vector<1xf32> to vector<1x1x1xf32>
    %144 = vector.extract %143[0, 0, 0] : f32 from vector<1x1x1xf32>
    %cst_125 = arith.constant 1.024000e+03 : f32
    %145 = arith.divf %144, %cst_125 : f32
    %146 = vector.broadcast %145 : f32 to vector<64x16xf32>
    %147 = arith.subf %138, %146 : vector<64x16xf32>
    %148 = arith.mulf %147, %147 : vector<64x16xf32>
    %149 = vector.shape_cast %148 : vector<64x16xf32> to vector<1x64x16xf32>
    %cst_126 = arith.constant dense<0.000000e+00> : vector<1xf32>
    %150 = vector.multi_reduction <add>, %149, %cst_126 [1, 2] : vector<1x64x16xf32> to vector<1xf32>
    %151 = vector.shape_cast %150 : vector<1xf32> to vector<1x1x1xf32>
    %152 = vector.extract %151[0, 0, 0] : f32 from vector<1x1x1xf32>
    %cst_127 = arith.constant 1.024000e+03 : f32
    %153 = arith.divf %152, %cst_127 : f32
    %cst_128 = arith.constant 9.99999974E-6 : f32
    %154 = arith.addf %153, %cst_128 : f32
    %155 = math.rsqrt %154 : f32
    %156 = vector.broadcast %155 : f32 to vector<64x16xf32>
    %157 = arith.mulf %147, %156 : vector<64x16xf32>
    %158 = arith.mulf %157, %139 : vector<64x16xf32>
    %159 = arith.addf %158, %140 : vector<64x16xf32>
    %cst_129 = arith.constant 0.000000e+00 : f32
    %160 = vector.broadcast %cst_129 : f32 to vector<64x16xf32>
    %161 = arith.cmpf oge, %159, %160 : vector<64x16xf32>
    %cst_130 = arith.constant 2.000000e-01 : f32
    %162 = vector.broadcast %cst_130 : f32 to vector<64x16xf32>
    %163 = arith.mulf %162, %159 : vector<64x16xf32>
    %164 = arith.select %161, %159, %163 : vector<64x16xi1>, vector<64x16xf32>
    %165 = arith.truncf %164 : vector<64x16xf32> to vector<64x16xbf16>
    %cst_131 = arith.constant 0.000000e+00 : f32
    %166 = vector.broadcast %cst_131 : f32 to vector<16x32xf32>
    %c0_132 = arith.constant 0 : index
    %c0_133 = arith.constant 0 : index
    %c0_134 = arith.constant 0 : index
    %167 = vector.load %arg7[%c0_132, %c0_133, %c0_134] : memref<16x16x64xbf16, #tpu.memory_space<vmem>>, vector<1x16x64xbf16>
    %168 = vector.shape_cast %167 : vector<1x16x64xbf16> to vector<16x64xbf16>
    %cst_135 = arith.constant dense<0.000000e+00> : vector<16x16xf32>
    %169 = tpu.matmul %168, %165, %cst_135 {dimension_numbers = #tpu.dot_dimension_numbers<[1], [0], [0], [1], [0, 0, 1, 1], [], []>} : vector<16x64xbf16>, vector<64x16xbf16>, vector<16x16xf32> -> vector<16x16xf32>
    %170 = arith.truncf %169 : vector<16x16xf32> to vector<16x16xbf16>
    %c0_136 = arith.constant 0 : index
    %c0_137 = arith.constant 0 : index
    %c0_138 = arith.constant 0 : index
    %171 = vector.load %arg8[%c0_136, %c0_137, %c0_138] : memref<16x16x32xbf16, #tpu.memory_space<vmem>>, vector<1x16x32xbf16>
    %172 = vector.shape_cast %171 : vector<1x16x32xbf16> to vector<16x32xbf16>
    %cst_139 = arith.constant dense<0.000000e+00> : vector<16x32xf32>
    %173 = tpu.matmul %170, %172, %cst_139 {dimension_numbers = #tpu.dot_dimension_numbers<[1], [0], [0], [1], [0, 0, 1, 1], [], []>} : vector<16x16xbf16>, vector<16x32xbf16>, vector<16x32xf32> -> vector<16x32xf32>
    %174 = arith.addf %166, %173 : vector<16x32xf32>
    %c1_140 = arith.constant 1 : index
    %c0_141 = arith.constant 0 : index
    %c0_142 = arith.constant 0 : index
    %175 = vector.load %arg7[%c1_140, %c0_141, %c0_142] : memref<16x16x64xbf16, #tpu.memory_space<vmem>>, vector<1x16x64xbf16>
    %176 = vector.shape_cast %175 : vector<1x16x64xbf16> to vector<16x64xbf16>
    %cst_143 = arith.constant dense<0.000000e+00> : vector<16x16xf32>
    %177 = tpu.matmul %176, %165, %cst_143 {dimension_numbers = #tpu.dot_dimension_numbers<[1], [0], [0], [1], [0, 0, 1, 1], [], []>} : vector<16x64xbf16>, vector<64x16xbf16>, vector<16x16xf32> -> vector<16x16xf32>
    %178 = arith.truncf %177 : vector<16x16xf32> to vector<16x16xbf16>
    %c1_144 = arith.constant 1 : index
    %c0_145 = arith.constant 0 : index
    %c0_146 = arith.constant 0 : index
    %179 = vector.load %arg8[%c1_144, %c0_145, %c0_146] : memref<16x16x32xbf16, #tpu.memory_space<vmem>>, vector<1x16x32xbf16>
    %180 = vector.shape_cast %179 : vector<1x16x32xbf16> to vector<16x32xbf16>
    %cst_147 = arith.constant dense<0.000000e+00> : vector<16x32xf32>
    %181 = tpu.matmul %178, %180, %cst_147 {dimension_numbers = #tpu.dot_dimension_numbers<[1], [0], [0], [1], [0, 0, 1, 1], [], []>} : vector<16x16xbf16>, vector<16x32xbf16>, vector<16x32xf32> -> vector<16x32xf32>
    %182 = arith.addf %174, %181 : vector<16x32xf32>
    %c2_148 = arith.constant 2 : index
    %c0_149 = arith.constant 0 : index
    %c0_150 = arith.constant 0 : index
    %183 = vector.load %arg7[%c2_148, %c0_149, %c0_150] : memref<16x16x64xbf16, #tpu.memory_space<vmem>>, vector<1x16x64xbf16>
    %184 = vector.shape_cast %183 : vector<1x16x64xbf16> to vector<16x64xbf16>
    %cst_151 = arith.constant dense<0.000000e+00> : vector<16x16xf32>
    %185 = tpu.matmul %184, %165, %cst_151 {dimension_numbers = #tpu.dot_dimension_numbers<[1], [0], [0], [1], [0, 0, 1, 1], [], []>} : vector<16x64xbf16>, vector<64x16xbf16>, vector<16x16xf32> -> vector<16x16xf32>
    %186 = arith.truncf %185 : vector<16x16xf32> to vector<16x16xbf16>
    %c2_152 = arith.constant 2 : index
    %c0_153 = arith.constant 0 : index
    %c0_154 = arith.constant 0 : index
    %187 = vector.load %arg8[%c2_152, %c0_153, %c0_154] : memref<16x16x32xbf16, #tpu.memory_space<vmem>>, vector<1x16x32xbf16>
    %188 = vector.shape_cast %187 : vector<1x16x32xbf16> to vector<16x32xbf16>
    %cst_155 = arith.constant dense<0.000000e+00> : vector<16x32xf32>
    %189 = tpu.matmul %186, %188, %cst_155 {dimension_numbers = #tpu.dot_dimension_numbers<[1], [0], [0], [1], [0, 0, 1, 1], [], []>} : vector<16x16xbf16>, vector<16x32xbf16>, vector<16x32xf32> -> vector<16x32xf32>
    %190 = arith.addf %182, %189 : vector<16x32xf32>
    %c3_156 = arith.constant 3 : index
    %c0_157 = arith.constant 0 : index
    %c0_158 = arith.constant 0 : index
    %191 = vector.load %arg7[%c3_156, %c0_157, %c0_158] : memref<16x16x64xbf16, #tpu.memory_space<vmem>>, vector<1x16x64xbf16>
    %192 = vector.shape_cast %191 : vector<1x16x64xbf16> to vector<16x64xbf16>
    %cst_159 = arith.constant dense<0.000000e+00> : vector<16x16xf32>
    %193 = tpu.matmul %192, %165, %cst_159 {dimension_numbers = #tpu.dot_dimension_numbers<[1], [0], [0], [1], [0, 0, 1, 1], [], []>} : vector<16x64xbf16>, vector<64x16xbf16>, vector<16x16xf32> -> vector<16x16xf32>
    %194 = arith.truncf %193 : vector<16x16xf32> to vector<16x16xbf16>
    %c3_160 = arith.constant 3 : index
    %c0_161 = arith.constant 0 : index
    %c0_162 = arith.constant 0 : index
    %195 = vector.load %arg8[%c3_160, %c0_161, %c0_162] : memref<16x16x32xbf16, #tpu.memory_space<vmem>>, vector<1x16x32xbf16>
    %196 = vector.shape_cast %195 : vector<1x16x32xbf16> to vector<16x32xbf16>
    %cst_163 = arith.constant dense<0.000000e+00> : vector<16x32xf32>
    %197 = tpu.matmul %194, %196, %cst_163 {dimension_numbers = #tpu.dot_dimension_numbers<[1], [0], [0], [1], [0, 0, 1, 1], [], []>} : vector<16x16xbf16>, vector<16x32xbf16>, vector<16x32xf32> -> vector<16x32xf32>
    %198 = arith.addf %190, %197 : vector<16x32xf32>
    %c4_164 = arith.constant 4 : index
    %c0_165 = arith.constant 0 : index
    %c0_166 = arith.constant 0 : index
    %199 = vector.load %arg7[%c4_164, %c0_165, %c0_166] : memref<16x16x64xbf16, #tpu.memory_space<vmem>>, vector<1x16x64xbf16>
    %200 = vector.shape_cast %199 : vector<1x16x64xbf16> to vector<16x64xbf16>
    %cst_167 = arith.constant dense<0.000000e+00> : vector<16x16xf32>
    %201 = tpu.matmul %200, %165, %cst_167 {dimension_numbers = #tpu.dot_dimension_numbers<[1], [0], [0], [1], [0, 0, 1, 1], [], []>} : vector<16x64xbf16>, vector<64x16xbf16>, vector<16x16xf32> -> vector<16x16xf32>
    %202 = arith.truncf %201 : vector<16x16xf32> to vector<16x16xbf16>
    %c4_168 = arith.constant 4 : index
    %c0_169 = arith.constant 0 : index
    %c0_170 = arith.constant 0 : index
    %203 = vector.load %arg8[%c4_168, %c0_169, %c0_170] : memref<16x16x32xbf16, #tpu.memory_space<vmem>>, vector<1x16x32xbf16>
    %204 = vector.shape_cast %203 : vector<1x16x32xbf16> to vector<16x32xbf16>
    %cst_171 = arith.constant dense<0.000000e+00> : vector<16x32xf32>
    %205 = tpu.matmul %202, %204, %cst_171 {dimension_numbers = #tpu.dot_dimension_numbers<[1], [0], [0], [1], [0, 0, 1, 1], [], []>} : vector<16x16xbf16>, vector<16x32xbf16>, vector<16x32xf32> -> vector<16x32xf32>
    %206 = arith.addf %198, %205 : vector<16x32xf32>
    %c5_172 = arith.constant 5 : index
    %c0_173 = arith.constant 0 : index
    %c0_174 = arith.constant 0 : index
    %207 = vector.load %arg7[%c5_172, %c0_173, %c0_174] : memref<16x16x64xbf16, #tpu.memory_space<vmem>>, vector<1x16x64xbf16>
    %208 = vector.shape_cast %207 : vector<1x16x64xbf16> to vector<16x64xbf16>
    %cst_175 = arith.constant dense<0.000000e+00> : vector<16x16xf32>
    %209 = tpu.matmul %208, %165, %cst_175 {dimension_numbers = #tpu.dot_dimension_numbers<[1], [0], [0], [1], [0, 0, 1, 1], [], []>} : vector<16x64xbf16>, vector<64x16xbf16>, vector<16x16xf32> -> vector<16x16xf32>
    %210 = arith.truncf %209 : vector<16x16xf32> to vector<16x16xbf16>
    %c5_176 = arith.constant 5 : index
    %c0_177 = arith.constant 0 : index
    %c0_178 = arith.constant 0 : index
    %211 = vector.load %arg8[%c5_176, %c0_177, %c0_178] : memref<16x16x32xbf16, #tpu.memory_space<vmem>>, vector<1x16x32xbf16>
    %212 = vector.shape_cast %211 : vector<1x16x32xbf16> to vector<16x32xbf16>
    %cst_179 = arith.constant dense<0.000000e+00> : vector<16x32xf32>
    %213 = tpu.matmul %210, %212, %cst_179 {dimension_numbers = #tpu.dot_dimension_numbers<[1], [0], [0], [1], [0, 0, 1, 1], [], []>} : vector<16x16xbf16>, vector<16x32xbf16>, vector<16x32xf32> -> vector<16x32xf32>
    %214 = arith.addf %206, %213 : vector<16x32xf32>
    %c6_180 = arith.constant 6 : index
    %c0_181 = arith.constant 0 : index
    %c0_182 = arith.constant 0 : index
    %215 = vector.load %arg7[%c6_180, %c0_181, %c0_182] : memref<16x16x64xbf16, #tpu.memory_space<vmem>>, vector<1x16x64xbf16>
    %216 = vector.shape_cast %215 : vector<1x16x64xbf16> to vector<16x64xbf16>
    %cst_183 = arith.constant dense<0.000000e+00> : vector<16x16xf32>
    %217 = tpu.matmul %216, %165, %cst_183 {dimension_numbers = #tpu.dot_dimension_numbers<[1], [0], [0], [1], [0, 0, 1, 1], [], []>} : vector<16x64xbf16>, vector<64x16xbf16>, vector<16x16xf32> -> vector<16x16xf32>
    %218 = arith.truncf %217 : vector<16x16xf32> to vector<16x16xbf16>
    %c6_184 = arith.constant 6 : index
    %c0_185 = arith.constant 0 : index
    %c0_186 = arith.constant 0 : index
    %219 = vector.load %arg8[%c6_184, %c0_185, %c0_186] : memref<16x16x32xbf16, #tpu.memory_space<vmem>>, vector<1x16x32xbf16>
    %220 = vector.shape_cast %219 : vector<1x16x32xbf16> to vector<16x32xbf16>
    %cst_187 = arith.constant dense<0.000000e+00> : vector<16x32xf32>
    %221 = tpu.matmul %218, %220, %cst_187 {dimension_numbers = #tpu.dot_dimension_numbers<[1], [0], [0], [1], [0, 0, 1, 1], [], []>} : vector<16x16xbf16>, vector<16x32xbf16>, vector<16x32xf32> -> vector<16x32xf32>
    %222 = arith.addf %214, %221 : vector<16x32xf32>
    %c7_188 = arith.constant 7 : index
    %c0_189 = arith.constant 0 : index
    %c0_190 = arith.constant 0 : index
    %223 = vector.load %arg7[%c7_188, %c0_189, %c0_190] : memref<16x16x64xbf16, #tpu.memory_space<vmem>>, vector<1x16x64xbf16>
    %224 = vector.shape_cast %223 : vector<1x16x64xbf16> to vector<16x64xbf16>
    %cst_191 = arith.constant dense<0.000000e+00> : vector<16x16xf32>
    %225 = tpu.matmul %224, %165, %cst_191 {dimension_numbers = #tpu.dot_dimension_numbers<[1], [0], [0], [1], [0, 0, 1, 1], [], []>} : vector<16x64xbf16>, vector<64x16xbf16>, vector<16x16xf32> -> vector<16x16xf32>
    %226 = arith.truncf %225 : vector<16x16xf32> to vector<16x16xbf16>
    %c7_192 = arith.constant 7 : index
    %c0_193 = arith.constant 0 : index
    %c0_194 = arith.constant 0 : index
    %227 = vector.load %arg8[%c7_192, %c0_193, %c0_194] : memref<16x16x32xbf16, #tpu.memory_space<vmem>>, vector<1x16x32xbf16>
    %228 = vector.shape_cast %227 : vector<1x16x32xbf16> to vector<16x32xbf16>
    %cst_195 = arith.constant dense<0.000000e+00> : vector<16x32xf32>
    %229 = tpu.matmul %226, %228, %cst_195 {dimension_numbers = #tpu.dot_dimension_numbers<[1], [0], [0], [1], [0, 0, 1, 1], [], []>} : vector<16x16xbf16>, vector<16x32xbf16>, vector<16x32xf32> -> vector<16x32xf32>
    %230 = arith.addf %222, %229 : vector<16x32xf32>
    %c8_196 = arith.constant 8 : index
    %c0_197 = arith.constant 0 : index
    %c0_198 = arith.constant 0 : index
    %231 = vector.load %arg7[%c8_196, %c0_197, %c0_198] : memref<16x16x64xbf16, #tpu.memory_space<vmem>>, vector<1x16x64xbf16>
    %232 = vector.shape_cast %231 : vector<1x16x64xbf16> to vector<16x64xbf16>
    %cst_199 = arith.constant dense<0.000000e+00> : vector<16x16xf32>
    %233 = tpu.matmul %232, %165, %cst_199 {dimension_numbers = #tpu.dot_dimension_numbers<[1], [0], [0], [1], [0, 0, 1, 1], [], []>} : vector<16x64xbf16>, vector<64x16xbf16>, vector<16x16xf32> -> vector<16x16xf32>
    %234 = arith.truncf %233 : vector<16x16xf32> to vector<16x16xbf16>
    %c8_200 = arith.constant 8 : index
    %c0_201 = arith.constant 0 : index
    %c0_202 = arith.constant 0 : index
    %235 = vector.load %arg8[%c8_200, %c0_201, %c0_202] : memref<16x16x32xbf16, #tpu.memory_space<vmem>>, vector<1x16x32xbf16>
    %236 = vector.shape_cast %235 : vector<1x16x32xbf16> to vector<16x32xbf16>
    %cst_203 = arith.constant dense<0.000000e+00> : vector<16x32xf32>
    %237 = tpu.matmul %234, %236, %cst_203 {dimension_numbers = #tpu.dot_dimension_numbers<[1], [0], [0], [1], [0, 0, 1, 1], [], []>} : vector<16x16xbf16>, vector<16x32xbf16>, vector<16x32xf32> -> vector<16x32xf32>
    %238 = arith.addf %230, %237 : vector<16x32xf32>
    %c9_204 = arith.constant 9 : index
    %c0_205 = arith.constant 0 : index
    %c0_206 = arith.constant 0 : index
    %239 = vector.load %arg7[%c9_204, %c0_205, %c0_206] : memref<16x16x64xbf16, #tpu.memory_space<vmem>>, vector<1x16x64xbf16>
    %240 = vector.shape_cast %239 : vector<1x16x64xbf16> to vector<16x64xbf16>
    %cst_207 = arith.constant dense<0.000000e+00> : vector<16x16xf32>
    %241 = tpu.matmul %240, %165, %cst_207 {dimension_numbers = #tpu.dot_dimension_numbers<[1], [0], [0], [1], [0, 0, 1, 1], [], []>} : vector<16x64xbf16>, vector<64x16xbf16>, vector<16x16xf32> -> vector<16x16xf32>
    %242 = arith.truncf %241 : vector<16x16xf32> to vector<16x16xbf16>
    %c9_208 = arith.constant 9 : index
    %c0_209 = arith.constant 0 : index
    %c0_210 = arith.constant 0 : index
    %243 = vector.load %arg8[%c9_208, %c0_209, %c0_210] : memref<16x16x32xbf16, #tpu.memory_space<vmem>>, vector<1x16x32xbf16>
    %244 = vector.shape_cast %243 : vector<1x16x32xbf16> to vector<16x32xbf16>
    %cst_211 = arith.constant dense<0.000000e+00> : vector<16x32xf32>
    %245 = tpu.matmul %242, %244, %cst_211 {dimension_numbers = #tpu.dot_dimension_numbers<[1], [0], [0], [1], [0, 0, 1, 1], [], []>} : vector<16x16xbf16>, vector<16x32xbf16>, vector<16x32xf32> -> vector<16x32xf32>
    %246 = arith.addf %238, %245 : vector<16x32xf32>
    %c10_212 = arith.constant 10 : index
    %c0_213 = arith.constant 0 : index
    %c0_214 = arith.constant 0 : index
    %247 = vector.load %arg7[%c10_212, %c0_213, %c0_214] : memref<16x16x64xbf16, #tpu.memory_space<vmem>>, vector<1x16x64xbf16>
    %248 = vector.shape_cast %247 : vector<1x16x64xbf16> to vector<16x64xbf16>
    %cst_215 = arith.constant dense<0.000000e+00> : vector<16x16xf32>
    %249 = tpu.matmul %248, %165, %cst_215 {dimension_numbers = #tpu.dot_dimension_numbers<[1], [0], [0], [1], [0, 0, 1, 1], [], []>} : vector<16x64xbf16>, vector<64x16xbf16>, vector<16x16xf32> -> vector<16x16xf32>
    %250 = arith.truncf %249 : vector<16x16xf32> to vector<16x16xbf16>
    %c10_216 = arith.constant 10 : index
    %c0_217 = arith.constant 0 : index
    %c0_218 = arith.constant 0 : index
    %251 = vector.load %arg8[%c10_216, %c0_217, %c0_218] : memref<16x16x32xbf16, #tpu.memory_space<vmem>>, vector<1x16x32xbf16>
    %252 = vector.shape_cast %251 : vector<1x16x32xbf16> to vector<16x32xbf16>
    %cst_219 = arith.constant dense<0.000000e+00> : vector<16x32xf32>
    %253 = tpu.matmul %250, %252, %cst_219 {dimension_numbers = #tpu.dot_dimension_numbers<[1], [0], [0], [1], [0, 0, 1, 1], [], []>} : vector<16x16xbf16>, vector<16x32xbf16>, vector<16x32xf32> -> vector<16x32xf32>
    %254 = arith.addf %246, %253 : vector<16x32xf32>
    %c11_220 = arith.constant 11 : index
    %c0_221 = arith.constant 0 : index
    %c0_222 = arith.constant 0 : index
    %255 = vector.load %arg7[%c11_220, %c0_221, %c0_222] : memref<16x16x64xbf16, #tpu.memory_space<vmem>>, vector<1x16x64xbf16>
    %256 = vector.shape_cast %255 : vector<1x16x64xbf16> to vector<16x64xbf16>
    %cst_223 = arith.constant dense<0.000000e+00> : vector<16x16xf32>
    %257 = tpu.matmul %256, %165, %cst_223 {dimension_numbers = #tpu.dot_dimension_numbers<[1], [0], [0], [1], [0, 0, 1, 1], [], []>} : vector<16x64xbf16>, vector<64x16xbf16>, vector<16x16xf32> -> vector<16x16xf32>
    %258 = arith.truncf %257 : vector<16x16xf32> to vector<16x16xbf16>
    %c11_224 = arith.constant 11 : index
    %c0_225 = arith.constant 0 : index
    %c0_226 = arith.constant 0 : index
    %259 = vector.load %arg8[%c11_224, %c0_225, %c0_226] : memref<16x16x32xbf16, #tpu.memory_space<vmem>>, vector<1x16x32xbf16>
    %260 = vector.shape_cast %259 : vector<1x16x32xbf16> to vector<16x32xbf16>
    %cst_227 = arith.constant dense<0.000000e+00> : vector<16x32xf32>
    %261 = tpu.matmul %258, %260, %cst_227 {dimension_numbers = #tpu.dot_dimension_numbers<[1], [0], [0], [1], [0, 0, 1, 1], [], []>} : vector<16x16xbf16>, vector<16x32xbf16>, vector<16x32xf32> -> vector<16x32xf32>
    %262 = arith.addf %254, %261 : vector<16x32xf32>
    %c12_228 = arith.constant 12 : index
    %c0_229 = arith.constant 0 : index
    %c0_230 = arith.constant 0 : index
    %263 = vector.load %arg7[%c12_228, %c0_229, %c0_230] : memref<16x16x64xbf16, #tpu.memory_space<vmem>>, vector<1x16x64xbf16>
    %264 = vector.shape_cast %263 : vector<1x16x64xbf16> to vector<16x64xbf16>
    %cst_231 = arith.constant dense<0.000000e+00> : vector<16x16xf32>
    %265 = tpu.matmul %264, %165, %cst_231 {dimension_numbers = #tpu.dot_dimension_numbers<[1], [0], [0], [1], [0, 0, 1, 1], [], []>} : vector<16x64xbf16>, vector<64x16xbf16>, vector<16x16xf32> -> vector<16x16xf32>
    %266 = arith.truncf %265 : vector<16x16xf32> to vector<16x16xbf16>
    %c12_232 = arith.constant 12 : index
    %c0_233 = arith.constant 0 : index
    %c0_234 = arith.constant 0 : index
    %267 = vector.load %arg8[%c12_232, %c0_233, %c0_234] : memref<16x16x32xbf16, #tpu.memory_space<vmem>>, vector<1x16x32xbf16>
    %268 = vector.shape_cast %267 : vector<1x16x32xbf16> to vector<16x32xbf16>
    %cst_235 = arith.constant dense<0.000000e+00> : vector<16x32xf32>
    %269 = tpu.matmul %266, %268, %cst_235 {dimension_numbers = #tpu.dot_dimension_numbers<[1], [0], [0], [1], [0, 0, 1, 1], [], []>} : vector<16x16xbf16>, vector<16x32xbf16>, vector<16x32xf32> -> vector<16x32xf32>
    %270 = arith.addf %262, %269 : vector<16x32xf32>
    %c13_236 = arith.constant 13 : index
    %c0_237 = arith.constant 0 : index
    %c0_238 = arith.constant 0 : index
    %271 = vector.load %arg7[%c13_236, %c0_237, %c0_238] : memref<16x16x64xbf16, #tpu.memory_space<vmem>>, vector<1x16x64xbf16>
    %272 = vector.shape_cast %271 : vector<1x16x64xbf16> to vector<16x64xbf16>
    %cst_239 = arith.constant dense<0.000000e+00> : vector<16x16xf32>
    %273 = tpu.matmul %272, %165, %cst_239 {dimension_numbers = #tpu.dot_dimension_numbers<[1], [0], [0], [1], [0, 0, 1, 1], [], []>} : vector<16x64xbf16>, vector<64x16xbf16>, vector<16x16xf32> -> vector<16x16xf32>
    %274 = arith.truncf %273 : vector<16x16xf32> to vector<16x16xbf16>
    %c13_240 = arith.constant 13 : index
    %c0_241 = arith.constant 0 : index
    %c0_242 = arith.constant 0 : index
    %275 = vector.load %arg8[%c13_240, %c0_241, %c0_242] : memref<16x16x32xbf16, #tpu.memory_space<vmem>>, vector<1x16x32xbf16>
    %276 = vector.shape_cast %275 : vector<1x16x32xbf16> to vector<16x32xbf16>
    %cst_243 = arith.constant dense<0.000000e+00> : vector<16x32xf32>
    %277 = tpu.matmul %274, %276, %cst_243 {dimension_numbers = #tpu.dot_dimension_numbers<[1], [0], [0], [1], [0, 0, 1, 1], [], []>} : vector<16x16xbf16>, vector<16x32xbf16>, vector<16x32xf32> -> vector<16x32xf32>
    %278 = arith.addf %270, %277 : vector<16x32xf32>
    %c14_244 = arith.constant 14 : index
    %c0_245 = arith.constant 0 : index
    %c0_246 = arith.constant 0 : index
    %279 = vector.load %arg7[%c14_244, %c0_245, %c0_246] : memref<16x16x64xbf16, #tpu.memory_space<vmem>>, vector<1x16x64xbf16>
    %280 = vector.shape_cast %279 : vector<1x16x64xbf16> to vector<16x64xbf16>
    %cst_247 = arith.constant dense<0.000000e+00> : vector<16x16xf32>
    %281 = tpu.matmul %280, %165, %cst_247 {dimension_numbers = #tpu.dot_dimension_numbers<[1], [0], [0], [1], [0, 0, 1, 1], [], []>} : vector<16x64xbf16>, vector<64x16xbf16>, vector<16x16xf32> -> vector<16x16xf32>
    %282 = arith.truncf %281 : vector<16x16xf32> to vector<16x16xbf16>
    %c14_248 = arith.constant 14 : index
    %c0_249 = arith.constant 0 : index
    %c0_250 = arith.constant 0 : index
    %283 = vector.load %arg8[%c14_248, %c0_249, %c0_250] : memref<16x16x32xbf16, #tpu.memory_space<vmem>>, vector<1x16x32xbf16>
    %284 = vector.shape_cast %283 : vector<1x16x32xbf16> to vector<16x32xbf16>
    %cst_251 = arith.constant dense<0.000000e+00> : vector<16x32xf32>
    %285 = tpu.matmul %282, %284, %cst_251 {dimension_numbers = #tpu.dot_dimension_numbers<[1], [0], [0], [1], [0, 0, 1, 1], [], []>} : vector<16x16xbf16>, vector<16x32xbf16>, vector<16x32xf32> -> vector<16x32xf32>
    %286 = arith.addf %278, %285 : vector<16x32xf32>
    %c15_252 = arith.constant 15 : index
    %c0_253 = arith.constant 0 : index
    %c0_254 = arith.constant 0 : index
    %287 = vector.load %arg7[%c15_252, %c0_253, %c0_254] : memref<16x16x64xbf16, #tpu.memory_space<vmem>>, vector<1x16x64xbf16>
    %288 = vector.shape_cast %287 : vector<1x16x64xbf16> to vector<16x64xbf16>
    %cst_255 = arith.constant dense<0.000000e+00> : vector<16x16xf32>
    %289 = tpu.matmul %288, %165, %cst_255 {dimension_numbers = #tpu.dot_dimension_numbers<[1], [0], [0], [1], [0, 0, 1, 1], [], []>} : vector<16x64xbf16>, vector<64x16xbf16>, vector<16x16xf32> -> vector<16x16xf32>
    %290 = arith.truncf %289 : vector<16x16xf32> to vector<16x16xbf16>
    %c15_256 = arith.constant 15 : index
    %c0_257 = arith.constant 0 : index
    %c0_258 = arith.constant 0 : index
    %291 = vector.load %arg8[%c15_256, %c0_257, %c0_258] : memref<16x16x32xbf16, #tpu.memory_space<vmem>>, vector<1x16x32xbf16>
    %292 = vector.shape_cast %291 : vector<1x16x32xbf16> to vector<16x32xbf16>
    %cst_259 = arith.constant dense<0.000000e+00> : vector<16x32xf32>
    %293 = tpu.matmul %290, %292, %cst_259 {dimension_numbers = #tpu.dot_dimension_numbers<[1], [0], [0], [1], [0, 0, 1, 1], [], []>} : vector<16x16xbf16>, vector<16x32xbf16>, vector<16x32xf32> -> vector<16x32xf32>
    %294 = arith.addf %286, %293 : vector<16x32xf32>
    %c0_260 = arith.constant 0 : index
    %c0_261 = arith.constant 0 : index
    %295 = vector.load %arg9[%c0_260, %c0_261] : memref<16x32xf32, #tpu.memory_space<vmem>>, vector<16x32xf32>
    %c0_262 = arith.constant 0 : index
    %c0_263 = arith.constant 0 : index
    %296 = vector.load %arg10[%c0_262, %c0_263] : memref<16x32xf32, #tpu.memory_space<vmem>>, vector<16x32xf32>
    %297 = vector.shape_cast %294 : vector<16x32xf32> to vector<1x16x32xf32>
    %cst_264 = arith.constant dense<0.000000e+00> : vector<1xf32>
    %298 = vector.multi_reduction <add>, %297, %cst_264 [1, 2] : vector<1x16x32xf32> to vector<1xf32>
    %299 = vector.shape_cast %298 : vector<1xf32> to vector<1x1x1xf32>
    %300 = vector.extract %299[0, 0, 0] : f32 from vector<1x1x1xf32>
    %cst_265 = arith.constant 5.120000e+02 : f32
    %301 = arith.divf %300, %cst_265 : f32
    %302 = vector.broadcast %301 : f32 to vector<16x32xf32>
    %303 = arith.subf %294, %302 : vector<16x32xf32>
    %304 = arith.mulf %303, %303 : vector<16x32xf32>
    %305 = vector.shape_cast %304 : vector<16x32xf32> to vector<1x16x32xf32>
    %cst_266 = arith.constant dense<0.000000e+00> : vector<1xf32>
    %306 = vector.multi_reduction <add>, %305, %cst_266 [1, 2] : vector<1x16x32xf32> to vector<1xf32>
    %307 = vector.shape_cast %306 : vector<1xf32> to vector<1x1x1xf32>
    %308 = vector.extract %307[0, 0, 0] : f32 from vector<1x1x1xf32>
    %cst_267 = arith.constant 5.120000e+02 : f32
    %309 = arith.divf %308, %cst_267 : f32
    %cst_268 = arith.constant 9.99999974E-6 : f32
    %310 = arith.addf %309, %cst_268 : f32
    %311 = math.rsqrt %310 : f32
    %312 = vector.broadcast %311 : f32 to vector<16x32xf32>
    %313 = arith.mulf %303, %312 : vector<16x32xf32>
    %314 = arith.mulf %313, %295 : vector<16x32xf32>
    %315 = arith.addf %314, %296 : vector<16x32xf32>
    %cst_269 = arith.constant 0.000000e+00 : f32
    %316 = vector.broadcast %cst_269 : f32 to vector<16x32xf32>
    %317 = arith.cmpf oge, %315, %316 : vector<16x32xf32>
    %cst_270 = arith.constant 2.000000e-01 : f32
    %318 = vector.broadcast %cst_270 : f32 to vector<16x32xf32>
    %319 = arith.mulf %318, %315 : vector<16x32xf32>
    %320 = arith.select %317, %315, %319 : vector<16x32xi1>, vector<16x32xf32>
    %c0_271 = arith.constant 0 : index
    %c0_272 = arith.constant 0 : index
    %321 = vector.load %arg11[%c0_271, %c0_272] : memref<16x32xf32, #tpu.memory_space<vmem>>, vector<16x32xf32>
    %322 = arith.mulf %320, %321 : vector<16x32xf32>
    %323 = vector.shape_cast %322 : vector<16x32xf32> to vector<1x16x32xf32>
    %cst_273 = arith.constant dense<0.000000e+00> : vector<1xf32>
    %324 = vector.multi_reduction <add>, %323, %cst_273 [1, 2] : vector<1x16x32xf32> to vector<1xf32>
    %325 = vector.shape_cast %324 : vector<1xf32> to vector<1x1x1xf32>
    %326 = vector.extract %325[0, 0, 0] : f32 from vector<1x1x1xf32>
    %327 = vector.broadcast %326 : f32 to vector<1x1xf32>
    %c0_274 = arith.constant 0 : index
    %c0_275 = arith.constant 0 : index
    %328 = vector.load %arg12[%c0_274, %c0_275] : memref<1x1xf32, #tpu.memory_space<vmem>>, vector<1x1xf32>
    %329 = arith.addf %327, %328 : vector<1x1xf32>
    %c0_276 = arith.constant 0 : index
    %c0_277 = arith.constant 0 : index
    %c0_278 = arith.constant 0 : index
    %330 = vector.load %arg13[%c0_276, %c0_277, %c0_278] : memref<1x1x1xf32, #tpu.memory_space<vmem>>, vector<1x1x1xf32>
    %331 = vector.shape_cast %330 : vector<1x1x1xf32> to vector<1x1xf32>
    %332 = vector.shape_cast %329 : vector<1x1xf32> to vector<1x1x1xf32>
    tpu.vector_store %arg13[%c0_276, %c0_277, %c0_278], %332 {strides = array<i32>} : memref<1x1x1xf32, #tpu.memory_space<vmem>>, vector<1x1x1xf32>,
    return
  }
  func.func @transform_0(%arg0: i32) -> (i32, i32, i32) {
    %c0_i32 = arith.constant 0 : i32
    %c0_i32_0 = arith.constant 0 : i32
    %c0_i32_1 = arith.constant 0 : i32
    return %arg0, %c0_i32, %c0_i32_0 : i32, i32, i32
  }
  func.func @transform_1(%arg0: i32) -> (i32, i32) {
    %c0_i32 = arith.constant 0 : i32
    %c0_i32_0 = arith.constant 0 : i32
    %c0_i32_1 = arith.constant 0 : i32
    return %c0_i32, %c0_i32_0 : i32, i32
  }
  func.func @transform_2(%arg0: i32) -> (i32, i32, i32) {
    %c0_i32 = arith.constant 0 : i32
    %c0_i32_0 = arith.constant 0 : i32
    %c0_i32_1 = arith.constant 0 : i32
    %c0_i32_2 = arith.constant 0 : i32
    return %c0_i32, %c0_i32_0, %c0_i32_1 : i32, i32, i32
  }
  func.func @transform_3(%arg0: i32) -> (i32, i32, i32) {
    %c0_i32 = arith.constant 0 : i32
    %c0_i32_0 = arith.constant 0 : i32
    %c0_i32_1 = arith.constant 0 : i32
    %c0_i32_2 = arith.constant 0 : i32
    return %c0_i32, %c0_i32_0, %c0_i32_1 : i32, i32, i32
  }
  func.func @transform_4(%arg0: i32) -> (i32, i32) {
    %c0_i32 = arith.constant 0 : i32
    %c0_i32_0 = arith.constant 0 : i32
    %c0_i32_1 = arith.constant 0 : i32
    return %c0_i32, %c0_i32_0 : i32, i32
  }
  func.func @transform_5(%arg0: i32) -> (i32, i32) {
    %c0_i32 = arith.constant 0 : i32
    %c0_i32_0 = arith.constant 0 : i32
    %c0_i32_1 = arith.constant 0 : i32
    return %c0_i32, %c0_i32_0 : i32, i32
  }
  func.func @transform_6(%arg0: i32) -> (i32, i32, i32) {
    %c0_i32 = arith.constant 0 : i32
    %c0_i32_0 = arith.constant 0 : i32
    %c0_i32_1 = arith.constant 0 : i32
    %c0_i32_2 = arith.constant 0 : i32
    return %c0_i32, %c0_i32_0, %c0_i32_1 : i32, i32, i32
  }
  func.func @transform_7(%arg0: i32) -> (i32, i32, i32) {
    %c0_i32 = arith.constant 0 : i32
    %c0_i32_0 = arith.constant 0 : i32
    %c0_i32_1 = arith.constant 0 : i32
    %c0_i32_2 = arith.constant 0 : i32
    return %c0_i32, %c0_i32_0, %c0_i32_1 : i32, i32, i32
  }
  func.func @transform_8(%arg0: i32) -> (i32, i32) {
    %c0_i32 = arith.constant 0 : i32
    %c0_i32_0 = arith.constant 0 : i32
    %c0_i32_1 = arith.constant 0 : i32
    return %c0_i32, %c0_i32_0 : i32, i32
  }
  func.func @transform_9(%arg0: i32) -> (i32, i32) {
    %c0_i32 = arith.constant 0 : i32
    %c0_i32_0 = arith.constant 0 : i32
    %c0_i32_1 = arith.constant 0 : i32
    return %c0_i32, %c0_i32_0 : i32, i32
  }
  func.func @transform_10(%arg0: i32) -> (i32, i32) {
    %c0_i32 = arith.constant 0 : i32
    %c0_i32_0 = arith.constant 0 : i32
    %c0_i32_1 = arith.constant 0 : i32
    return %c0_i32, %c0_i32_0 : i32, i32
  }
  func.func @transform_11(%arg0: i32) -> (i32, i32) {
    %c0_i32 = arith.constant 0 : i32
    %c0_i32_0 = arith.constant 0 : i32
    %c0_i32_1 = arith.constant 0 : i32
    return %c0_i32, %c0_i32_0 : i32, i32
  }
  func.func @transform_12(%arg0: i32) -> (i32, i32, i32) {
    %c0_i32 = arith.constant 0 : i32
    %c0_i32_0 = arith.constant 0 : i32
    %c0_i32_1 = arith.constant 0 : i32
    return %arg0, %c0_i32, %c0_i32_0 : i32, i32, i32
  }
}

</mosaic_0001>

<bundles_post_ra>
// kernel: conv_discriminator_forward.1
= control target key start
LH: loop header
LB: loop body
LE: loop exit
PB: predicated region body
PF: predicated region fallthrough
CT: control target
= control target key end

     0   :  { %s8527_s23 = smov 0   ;;  %s10175_s0 = inlined_call_operand.vmem [shape: bf16[2,256,16], index: 0, kind: input, shape index: {}]   ;;  %s10176_s1 = inlined_call_operand.vmem [shape: bf16[16,8], index: 1, kind: input, shape index: {}]   ;;  %s10177_s2 = inlined_call_operand.vmem [shape: bf16[16,64,256], index: 2, kind: input, shape index: {}]   ;;  %s10178_s3 = inlined_call_operand.vmem [shape: bf16[16,8,16], index: 3, kind: input, shape index: {}]   ;;  %s10179_s4 = inlined_call_operand.vmem [shape: f32[64,16], index: 4, kind: input, shape index: {}]   ;;  %s10180_s5 = inlined_call_operand.vmem [shape: f32[64,16], index: 5, kind: input, shape index: {}]   ;;  %s10181_s6 = inlined_call_operand.vmem [shape: bf16[16,16,64], index: 6, kind: input, shape index: {}]   ;;  %s10182_s7 = inlined_call_operand.vmem [shape: bf16[16,16,32], index: 7, kind: input, shape index: {}]   ;;  %s10183_s8 = inlined_call_operand.vmem [shape: f32[16,32], index: 8, kind: input, shape index: {}]   ;;  %s10184_s9 = inlined_call_operand.vmem [shape: f32[16,32], index: 9, kind: input, shape index: {}]   ;;  %s10185_s10 = inlined_call_operand.vmem [shape: f32[16,32], index: 10, kind: input, shape index: {}]   ;;  %s10186_s11 = inlined_call_operand.<no memory space> [shape: f32[1,1], index: 11, kind: input, shape index: {}]   ;;  %s10187_s12 = inlined_call_operand.vmem [shape: f32[2,1,1], index: 12, kind: output, shape index: {}]  }
   0x1   :  { %v17_v0 = vstv %s10186_s11 }
   0x2   :  { %18 = vst [vmem:[#allocation2] sm:$0x1] %v17_v0 }
   0x3 LB: > { %s6159_s24 = sadd.s32 4294967295, %s8455_s23   ;;  %p6163_p0 = scmp.ge.s32.totalorder %s8455_s23, 1  ;;  %s8455_s23 = sphi %s8527_s23, %s24_s23  }
   0x4   : > { %p364_p1 = scmp.lt.s32.totalorder %s8455_s23, 3 }
   0x6   : > { %p365_p2 = pnand %p6163_p0, %p364_p1 }
   0x8   : > { %368 = sbr.rel (%p365_p2) target bundleno = 4323 (0x10e3), region = 68 }
   0xf   : > { %v8204_v1 = vld [vmem:[%s10176_s1] sm:$0xff]   ;;  %p404_p3 = scmp.lt.s32.totalorder %s6159_s24, 1  ;;  %vm533_vm0 = vcmask 130048  }
  0x10   : > { %7502 = vmatprep.subr.bf16.mxu0 %v8204_v1  ;;  %v8223_v18 = vld [vmem:[%s10177_s2 + $0x4] ss:$8 sps:$4 sm:$0xff]  }
  0x11   : > { %s10250_s24 = smov (!%p404_p3, %s6159_s24), 1  ;;  %7503 = vmatpush3.bf16.msra.mxu0 %v8204_v1  ;;  %935 = vmatprep.mubr.bf16.mxu1 %v8223_v18 }
  0x12   : > { %s6652_s11 = sshll.u32 %s10250_s24, 7 }
  0x13   : > { %s8544_s29 = scalar_lea.vmem %s10175_s0, %s6652_s11 }
  0x14   : > { %v8205_v2 = vld [vmem:[%s8544_s29] sm:$0xff]   ;;  %v8206_v3 = vld [vmem:[%s8544_s29 + $0x8] sm:$0xff]   ;;  %v8207_v4 = vld [vmem:[%s8544_s29 + $0x10] sm:$0xff]  }
  0x15   : > { %7504 = vmatprep.mubr.msk.bf16.mxu0 %vm533_vm0, %v8205_v2  ;;  %v8208_v5 = vld [vmem:[%s8544_s29 + $0x18] sm:$0xff]   ;;  %v8209_v6 = vld [vmem:[%s8544_s29 + $0x20] sm:$0xff]   ;;  %v8210_v7 = vld [vmem:[%s8544_s29 + $0x28] sm:$0xff]  }
  0x16   : > { %7505 = vmatmul.mubr.msk.bf16.vlgmr.msra.gmra.mrb[0].mxu0 %vm533_vm0, %v8206_v3  ;;  %v8211_v8 = vld [vmem:[%s8544_s29 + $0x30] sm:$0xff]   ;;  %v8212_v9 = vld [vmem:[%s8544_s29 + $0x38] sm:$0xff]   ;;  %v8213_v10 = vld [vmem:[%s8544_s29 + $0x40] sm:$0xff]  }
  0x17   : > { %7508 = vmatprep.mubr.msk.bf16.mxu0 %vm533_vm0, %v8207_v4  ;;  %v8214_v11 = vld [vmem:[%s8544_s29 + $0x48] sm:$0xff]   ;;  %v8215_v12 = vld [vmem:[%s8544_s29 + $0x50] sm:$0xff]   ;;  %v8216_v13 = vld [vmem:[%s8544_s29 + $0x58] sm:$0xff]  }
  0x18   : > { %v8217_v14 = vld [vmem:[%s8544_s29 + $0x60] sm:$0xff]   ;;  %v8218_v15 = vld [vmem:[%s8544_s29 + $0x68] sm:$0xff]   ;;  %v8219_v16 = vld [vmem:[%s8544_s29 + $0x70] sm:$0xff]  }
  0x19   : > { %v8220_v17 = vld [vmem:[%s8544_s29 + $0x78] sm:$0xff]  }
  0x1e   : > { %7509 = vmatmul.mubr.msk.bf16.gmra.mrb[4].mxu0 %vm533_vm0, %v8208_v5 }
  0x1f   : > { %7512 = vmatprep.mubr.msk.bf16.mxu0 %vm533_vm0, %v8209_v6 }
  0x26   : > { %7513 = vmatmul.mubr.msk.bf16.gmra.mrb[8].mxu0 %vm533_vm0, %v8210_v7 }
  0x27   : > { %7516 = vmatprep.mubr.msk.bf16.mxu0 %vm533_vm0, %v8211_v8 }
  0x2e   : > { %7517 = vmatmul.mubr.msk.bf16.gmra.mrb[12].mxu0 %vm533_vm0, %v8212_v9 }
  0x2f   : > { %7520 = vmatprep.mubr.msk.bf16.mxu0 %vm533_vm0, %v8213_v10 }
  0x36   : > { %7521 = vmatmul.mubr.msk.bf16.gmra.mrb[16].mxu0 %vm533_vm0, %v8214_v11 }
  0x37   : > { %7524 = vmatprep.mubr.msk.bf16.mxu0 %vm533_vm0, %v8215_v12 }
  0x3e   : > { %7525 = vmatmul.mubr.msk.bf16.gmra.mrb[20].mxu0 %vm533_vm0, %v8216_v13 }
  0x3f   : > { %7528 = vmatprep.mubr.msk.bf16.mxu0 %vm533_vm0, %v8217_v14 }
  0x46   : > { %7529 = vmatmul.mubr.msk.bf16.gmra.mrb[24].mxu0 %vm533_vm0, %v8218_v15 }
  0x47   : > { %7532 = vmatprep.mubr.msk.bf16.mxu0 %vm533_vm0, %v8219_v16 }
  0x4e   : > { %7533 = vmatmul.mubr.msk.bf16.gmra.mrb[28].mxu0 %vm533_vm0, %v8220_v17 }
  0xe9   : > { %v7506_v19 = vpop.f32.mrb[0].mxu0 }
  0xea   : > { %v777_v20 = vmul.f32 0.2, %v7506_v19  ;;  %v616_v21 = vpop.f32.mrb[1].mxu0  ;;  %vm745_vm1 = vcmp.ge.f32.partialorder %v7506_v19, 0.0 }
  0xeb   : > { %v775_v22 = vmul.f32 0.2, %v616_v21  ;;  %v7507_v23 = vpop.f32.mrb[2].mxu0  ;;  %vm743_vm2 = vcmp.ge.f32.partialorder %v616_v21, 0.0 }
  0xec   : > { %vm746_vm3 = vcmp.ge.f32.partialorder %v7507_v23, 0.0  ;;  %v778_v24 = vmul.f32 0.2, %v7507_v23  ;;  %v619_v25 = vpop.f32.mrb[3].mxu0  ;;  %v809_v27 = vsel %vm745_vm1, %v7506_v19, %v777_v20 }
  0xed   : > { %vm744_vm4 = vcmp.ge.f32.partialorder %v619_v25, 0.0  ;;  %v776_v26 = vmul.f32 0.2, %v619_v25  ;;  %v807_v29 = vsel %vm743_vm2, %v616_v21, %v775_v22 }
  0xee   : > { %v810_v28 = vsel %vm746_vm3, %v7507_v23, %v778_v24 }
  0xef   : > { %v8581_v30 = vpack.c.bf16 %v810_v28, %v809_v27  ;;  %v808_v31 = vsel %vm744_vm4, %v619_v25, %v776_v26 }
  0xf0   : > { %v8583_v32 = vpack.c.bf16 %v808_v31, %v807_v29 }
  0xf1   : > { %v7510_v33 = vpop.f32.mrb[4].mxu0 }
  0xf2   : > { %v781_v34 = vmul.f32 0.2, %v7510_v33  ;;  %v632_v35 = vpop.f32.mrb[5].mxu0  ;;  %vm749_vm5 = vcmp.ge.f32.partialorder %v7510_v33, 0.0 }
  0xf3   : > { %v779_v36 = vmul.f32 0.2, %v632_v35  ;;  %v7511_v37 = vpop.f32.mrb[6].mxu0  ;;  %vm747_vm6 = vcmp.ge.f32.partialorder %v632_v35, 0.0 }
  0xf4   : > { %vm750_vm7 = vcmp.ge.f32.partialorder %v7511_v37, 0.0  ;;  %v782_v38 = vmul.f32 0.2, %v7511_v37  ;;  %v635_v39 = vpop.f32.mrb[7].mxu0  ;;  %v813_v41 = vsel %vm749_vm5, %v7510_v33, %v781_v34 }
  0xf5   : > { %vm748_vm8 = vcmp.ge.f32.partialorder %v635_v39, 0.0  ;;  %v780_v40 = vmul.f32 0.2, %v635_v39  ;;  %v811_v43 = vsel %vm747_vm6, %v632_v35, %v779_v36 }
  0xf6   : > { %v814_v42 = vsel %vm750_vm7, %v7511_v37, %v782_v38 }
  0xf7   : > { %v8585_v44 = vpack.c.bf16 %v814_v42, %v813_v41  ;;  %v812_v45 = vsel %vm748_vm8, %v635_v39, %v780_v40 }
  0xf8   : > { %v8587_v46 = vpack.c.bf16 %v812_v45, %v811_v43 }
  0xf9   : > { %v7514_v47 = vpop.f32.mrb[8].mxu0 }
  0xfa   : > { %v785_v48 = vmul.f32 0.2, %v7514_v47  ;;  %v648_v49 = vpop.f32.mrb[9].mxu0  ;;  %vm753_vm9 = vcmp.ge.f32.partialorder %v7514_v47, 0.0 }
  0xfb   : > { %v783_v50 = vmul.f32 0.2, %v648_v49  ;;  %v7515_v51 = vpop.f32.mrb[10].mxu0  ;;  %vm751_vm10 = vcmp.ge.f32.partialorder %v648_v49, 0.0 }
  0xfc   : > { %vm754_vm11 = vcmp.ge.f32.partialorder %v7515_v51, 0.0  ;;  %v786_v52 = vmul.f32 0.2, %v7515_v51  ;;  %v651_v53 = vpop.f32.mrb[11].mxu0  ;;  %v817_v55 = vsel %vm753_vm9, %v7514_v47, %v785_v48 }
  0xfd   : > { %vm752_vm12 = vcmp.ge.f32.partialorder %v651_v53, 0.0  ;;  %v784_v54 = vmul.f32 0.2, %v651_v53  ;;  %v815_v57 = vsel %vm751_vm10, %v648_v49, %v783_v50 }
  0xfe   : > { %v818_v56 = vsel %vm754_vm11, %v7515_v51, %v786_v52 }
  0xff   : > { %v8589_v58 = vpack.c.bf16 %v818_v56, %v817_v55  ;;  %v816_v59 = vsel %vm752_vm12, %v651_v53, %v784_v54 }
 0x100   : > { %v8591_v60 = vpack.c.bf16 %v816_v59, %v815_v57 }
 0x101   : > { %10202 = vst [vmem:[#allocation3_spill] sm:$0xff] %v8589_v58  ;;  %v7518_v61 = vpop.f32.mrb[12].mxu0 }
 0x102   : > { %v789_v62 = vmul.f32 0.2, %v7518_v61  ;;  %v664_v63 = vpop.f32.mrb[13].mxu0  ;;  %vm757_vm13 = vcmp.ge.f32.partialorder %v7518_v61, 0.0 }
 0x103   : > { %v787_v0 = vmul.f32 0.2, %v664_v63  ;;  %v7519_v1 = vpop.f32.mrb[14].mxu0  ;;  %vm755_vm14 = vcmp.ge.f32.partialorder %v664_v63, 0.0 }
 0x104   : > { %vm758_vm15 = vcmp.ge.f32.partialorder %v7519_v1, 0.0  ;;  %v790_v2 = vmul.f32 0.2, %v7519_v1  ;;  %v667_v3 = vpop.f32.mrb[15].mxu0  ;;  %v821_v5 = vsel %vm757_vm13, %v7518_v61, %v789_v62 }
 0x105   : > { %vm756_vm1 = vcmp.ge.f32.partialorder %v667_v3, 0.0  ;;  %v788_v4 = vmul.f32 0.2, %v667_v3  ;;  %v819_v7 = vsel %vm755_vm14, %v664_v63, %v787_v0 }
 0x106   : > { %v822_v6 = vsel %vm758_vm15, %v7519_v1, %v790_v2 }
 0x107   : > { %v8593_v8 = vpack.c.bf16 %v822_v6, %v821_v5  ;;  %v820_v9 = vsel %vm756_vm1, %v667_v3, %v788_v4 }
 0x108   : > { %v8595_v10 = vpack.c.bf16 %v820_v9, %v819_v7 }
 0x109   : > { %10203 = vst [vmem:[#allocation4_spill] sm:$0xff] %v8593_v8  ;;  %v7522_v11 = vpop.f32.mrb[16].mxu0 }
 0x10a   : > { %10204 = vst [vmem:[#allocation5_spill] sm:$0xff] %v8595_v10  ;;  %v793_v12 = vmul.f32 0.2, %v7522_v11  ;;  %v680_v13 = vpop.f32.mrb[17].mxu0  ;;  %vm761_vm2 = vcmp.ge.f32.partialorder %v7522_v11, 0.0 }
 0x10b   : > { %v791_v14 = vmul.f32 0.2, %v680_v13  ;;  %v7523_v15 = vpop.f32.mrb[18].mxu0  ;;  %vm759_vm3 = vcmp.ge.f32.partialorder %v680_v13, 0.0 }
 0x10c   : > { %vm762_vm4 = vcmp.ge.f32.partialorder %v7523_v15, 0.0  ;;  %v794_v16 = vmul.f32 0.2, %v7523_v15  ;;  %v683_v17 = vpop.f32.mrb[19].mxu0  ;;  %v825_v19 = vsel %vm761_vm2, %v7522_v11, %v793_v12  ;;  %v8221_v11 = vld [vmem:[%s10177_s2] ss:$8 sps:$4 sm:$0xff]  }
 0x10d   : > { %vm760_vm5 = vcmp.ge.f32.partialorder %v683_v17, 0.0  ;;  %v792_v18 = vmul.f32 0.2, %v683_v17  ;;  %v823_v21 = vsel %vm759_vm3, %v680_v13, %v791_v14  ;;  %v8224_v12 = vld [vmem:[%s10177_s2 + $0x14] ss:$8 sps:$4 sm:$0xff]   ;;  %vm1106_vm3 = vcmask 1043456  }
 0x10e   : > { %v826_v20 = vsel %vm762_vm4, %v7523_v15, %v794_v16  ;;  %v8226_v13 = vld [vmem:[%s10177_s2 + $0x10] ss:$8 sps:$4 sm:$0xff]   ;;  %v8227_v14 = vld [vmem:[%s10177_s2 + $0x24] ss:$8 sps:$4 sm:$0xff]   ;;  %v8229_v15 = vld [vmem:[%s10177_s2 + $0x20] ss:$8 sps:$4 sm:$0xff]  }
 0x10f   : > { %v8597_v22 = vpack.c.bf16 %v826_v20, %v825_v19  ;;  %v824_v23 = vsel %vm760_vm5, %v683_v17, %v792_v18  ;;  %v8230_v16 = vld [vmem:[%s10177_s2 + $0x34] ss:$8 sps:$4 sm:$0xff]   ;;  %v8232_v17 = vld [vmem:[%s10177_s2 + $0x30] ss:$8 sps:$4 sm:$0xff]   ;;  %v8235_v18 = vld [vmem:[%s10177_s2 + $0x44] ss:$8 sps:$4 sm:$0xff]  }
 0x110   : > { %v8599_v24 = vpack.c.bf16 %v824_v23, %v823_v21  ;;  %v8233_v19 = vld [vmem:[%s10177_s2 + $0x40] ss:$8 sps:$4 sm:$0xff]   ;;  %v8236_v20 = vld [vmem:[%s10177_s2 + $0x54] ss:$8 sps:$4 sm:$0xff]   ;;  %v8238_v21 = vld [vmem:[%s10177_s2 + $0x50] ss:$8 sps:$4 sm:$0xff]  }
 0x111   : > { %v7526_v25 = vpop.f32.mrb[20].mxu0  ;;  %v8239_v23 = vld [vmem:[%s10177_s2 + $0x64] ss:$8 sps:$4 sm:$0xff]   ;;  %vm1093_vm4 = vcmask 64512   ;;  %vm8458_vm5 = vmmov 0  }
 0x112   : > { %v797_v26 = vmul.f32 0.2, %v7526_v25  ;;  %v696_v27 = vpop.f32.mrb[21].mxu0  ;;  %6670 = vmatprep.subr.bf16.mxu1 %v8599_v24  ;;  %vm765_vm6 = vcmp.ge.f32.partialorder %v7526_v25, 0.0 }
 0x113   : > { %v795_v28 = vmul.f32 0.2, %v696_v27  ;;  %v7527_v29 = vpop.f32.mrb[22].mxu0  ;;  %6671 = vmatpush3.bf16.msra.mxu1 %v8583_v32  ;;  %vm763_vm7 = vcmp.ge.f32.partialorder %v696_v27, 0.0 }
 0x114   : > { %vm766_vm8 = vcmp.ge.f32.partialorder %v7527_v29, 0.0  ;;  %v798_v31 = vmul.f32 0.2, %v7527_v29  ;;  %v699_v33 = vpop.f32.mrb[23].mxu0  ;;  %6672 = vmatprep.subr.bf16.mxu1 %v8597_v22  ;;  %v829_v35 = vsel %vm765_vm6, %v7526_v25, %v797_v26  ;;  %v8241_v25 = vld [vmem:[%s10177_s2 + $0x60] ss:$8 sps:$4 sm:$0xff]  }
 0x115   : > { %vm764_vm9 = vcmp.ge.f32.partialorder %v699_v33, 0.0  ;;  %v796_v34 = vmul.f32 0.2, %v699_v33  ;;  %v827_v37 = vsel %vm763_vm7, %v696_v27, %v795_v28  ;;  %v8242_v26 = vld [vmem:[%s10177_s2 + $0x74] ss:$8 sps:$4 sm:$0xff]  }
 0x116   : > { %v830_v36 = vsel %vm766_vm8, %v7527_v29, %v798_v31  ;;  %v8244_v27 = vld [vmem:[%s10177_s2 + $0x70] ss:$8 sps:$4 sm:$0xff]   ;;  %v8247_v28 = vld [vmem:[%s10177_s2 + $0x84] ss:$8 sps:$4 sm:$0xff]   ;;  %v8245_v29 = vld [vmem:[%s10177_s2 + $0x80] ss:$8 sps:$4 sm:$0xff]  }
 0x117   : > { %v8604_v38 = vpack.c.bf16 %v830_v36, %v829_v35  ;;  %v828_v39 = vsel %vm764_vm9, %v699_v33, %v796_v34  ;;  %6673 = vmatpush3.bf16.msra.mxu1 %v8581_v30  ;;  %v8248_v31 = vld [vmem:[%s10177_s2 + $0x94] ss:$8 sps:$4 sm:$0xff]   ;;  %v8250_v33 = vld [vmem:[%s10177_s2 + $0x90] ss:$8 sps:$4 sm:$0xff]   ;;  %v8251_v34 = vld [vmem:[%s10177_s2 + $0xa4] ss:$8 sps:$4 sm:$0xff]  }
 0x118   : > { %v8607_v40 = vpack.c.bf16 %v828_v39, %v827_v37  ;;  %v8253_v35 = vld [vmem:[%s10177_s2 + $0xa0] ss:$8 sps:$4 sm:$0xff]   ;;  %v8254_v36 = vld [vmem:[%s10177_s2 + $0xb4] ss:$8 sps:$4 sm:$0xff]   ;;  %v8256_v37 = vld [vmem:[%s10177_s2 + $0xb0] ss:$8 sps:$4 sm:$0xff]  }
 0x119   : > { %v7530_v41 = vpop.f32.mrb[24].mxu0  ;;  %v8259_v39 = vld [vmem:[%s10177_s2 + $0xc4] ss:$8 sps:$4 sm:$0xff]  }
 0x11a   : > { %v801_v42 = vmul.f32 0.2, %v7530_v41  ;;  %v712_v43 = vpop.f32.mrb[25].mxu0  ;;  %6674 = vmatprep.subr.bf16.mxu1 %v8607_v40  ;;  %vm769_vm10 = vcmp.ge.f32.partialorder %v7530_v41, 0.0 }
 0x11b   : > { %v799_v45 = vmul.f32 0.2, %v712_v43  ;;  %v7531_v47 = vpop.f32.mrb[26].mxu0  ;;  %6675 = vmatpush3.bf16.msra.mxu1 %v8587_v46  ;;  %vm767_vm11 = vcmp.ge.f32.partialorder %v712_v43, 0.0 }
 0x11c   : > { %vm770_vm12 = vcmp.ge.f32.partialorder %v7531_v47, 0.0  ;;  %v802_v48 = vmul.f32 0.2, %v7531_v47  ;;  %v715_v49 = vpop.f32.mrb[27].mxu0  ;;  %6676 = vmatprep.subr.bf16.mxu1 %v8604_v38  ;;  %v833_v51 = vsel %vm769_vm10, %v7530_v41, %v801_v42  ;;  %v8257_v41 = vld [vmem:[%s10177_s2 + $0xc0] ss:$8 sps:$4 sm:$0xff]  }
 0x11d   : > { %vm768_vm13 = vcmp.ge.f32.partialorder %v715_v49, 0.0  ;;  %v800_v50 = vmul.f32 0.2, %v715_v49  ;;  %v831_v53 = vsel %vm767_vm11, %v712_v43, %v799_v45  ;;  %v8260_v42 = vld [vmem:[%s10177_s2 + $0xd4] ss:$8 sps:$4 sm:$0xff]  }
 0x11e   : > { %v834_v52 = vsel %vm770_vm12, %v7531_v47, %v802_v48  ;;  %v6223_v43 = vld [vmem:[%s10178_s3 + $0x4] sm:$0xf]  ;;  %v8262_v47 = vld [vmem:[%s10177_s2 + $0xd0] ss:$8 sps:$4 sm:$0xff]  }
 0x11f   : > { %v8612_v54 = vpack.c.bf16 %v834_v52, %v833_v51  ;;  %v832_v55 = vsel %vm768_vm13, %v715_v49, %v800_v50  ;;  %6677 = vmatpush3.bf16.msra.mxu1 %v8585_v44  ;;  %8164 = vmatprep.subr.msk.bf16.mxu0 %vm1106_vm3, %v6223_v43  ;;  %v1108_v45 = vsel %vm1106_vm3, %v6223_v43, 0  ;;  %v8263_v48 = vld [vmem:[%s10177_s2 + $0xe4] ss:$8 sps:$4 sm:$0xff]   ;;  %v8265_v49 = vld [vmem:[%s10177_s2 + $0xe0] ss:$8 sps:$4 sm:$0xff]  }
 0x120   : > { %v8615_v56 = vpack.c.bf16 %v832_v55, %v831_v53  ;;  %7537 = vmatpush3.bf16.msra.mxu0 %v1108_v45  ;;  %v8266_v50 = vld [vmem:[%s10177_s2 + $0xf4] ss:$8 sps:$4 sm:$0xff]   ;;  %v8268_v51 = vld [vmem:[%s10177_s2 + $0xf0] ss:$8 sps:$4 sm:$0xff]   ;;  %v8271_v52 = vld [vmem:[%s10177_s2 + $0x144] ss:$8 sps:$4 sm:$0xff]  }
 0x121   : > { %10205 = vst [vmem:[#allocation6_spill] sm:$0xff] %v8612_v54  ;;  %v7534_v57 = vpop.f32.mrb[28].mxu0  ;;  %v8269_v53 = vld [vmem:[%s10177_s2 + $0x140] ss:$8 sps:$4 sm:$0xff]   ;;  %v8272_v55 = vld [vmem:[%s10177_s2 + $0x154] ss:$8 sps:$4 sm:$0xff]  }
 0x122   : > { %v805_v59 = vmul.f32 0.2, %v7534_v57  ;;  %v728_v61 = vpop.f32.mrb[29].mxu0  ;;  %6678 = vmatprep.subr.bf16.mxu1 %v8615_v56  ;;  %vm773_vm14 = vcmp.ge.f32.partialorder %v7534_v57, 0.0 }
 0x123   : > { %v803_v62 = vmul.f32 0.2, %v728_v61  ;;  %v7535_v63 = vpop.f32.mrb[30].mxu0  ;;  %6679 = vmatpush3.bf16.msra.mxu1 %v8591_v60  ;;  %vm771_vm15 = vcmp.ge.f32.partialorder %v728_v61, 0.0 }
 0x124   : > { %vm774_vm1 = vcmp.ge.f32.partialorder %v7535_v63, 0.0  ;;  %v806_v0 = vmul.f32 0.2, %v7535_v63  ;;  %v731_v1 = vpop.f32.mrb[31].mxu0  ;;  %6680 = vmatprep.subr.bf16.mxu1 %v8612_v54  ;;  %v837_v3 = vsel %vm773_vm14, %v7534_v57, %v805_v59  ;;  %v8274_v57 = vld [vmem:[%s10177_s2 + $0x150] ss:$8 sps:$4 sm:$0xff]  }
 0x125   : > { %vm772_vm2 = vcmp.ge.f32.partialorder %v731_v1, 0.0  ;;  %v804_v2 = vmul.f32 0.2, %v731_v1  ;;  %v835_v5 = vsel %vm771_vm15, %v728_v61, %v803_v62  ;;  %v8275_v59 = vld [vmem:[%s10177_s2 + $0x164] ss:$8 sps:$4 sm:$0xff]   ;;  %vm4318_vm14 = vcmask 523264  }
 0x126   : > { %v838_v4 = vsel %vm774_vm1, %v7535_v63, %v806_v0  ;;  %v8277_v61 = vld [vmem:[%s10177_s2 + $0x160] ss:$8 sps:$4 sm:$0xff]   ;;  %v8278_v62 = vld [vmem:[%s10177_s2 + $0x174] ss:$8 sps:$4 sm:$0xff]   ;;  %v8280_v63 = vld [vmem:[%s10177_s2 + $0x170] ss:$8 sps:$4 sm:$0xff]  }
 0x127   : > { %v8620_v6 = vpack.c.bf16 %v838_v4, %v837_v3  ;;  %v836_v7 = vsel %vm772_vm2, %v731_v1, %v804_v2  ;;  %6681 = vmatpush3.bf16.msra.mxu1 %v8589_v58  ;;  %v8283_v0 = vld [vmem:[%s10177_s2 + $0x184] ss:$8 sps:$4 sm:$0xff]   ;;  %v8834_v1 = vld [vmem:[%s10178_s3] sm:$0xf]  ;;  %v8284_v3 = vld [vmem:[%s10177_s2 + $0x194] ss:$8 sps:$4 sm:$0xff]  }
 0x128   : > { %v8623_v9 = vpack.c.bf16 %v836_v7, %v835_v5  ;;  %8165 = vmatprep.subr.msk.bf16.mxu0 %vm1106_vm3, %v8834_v1  ;;  %v8281_v2 = vld [vmem:[%s10177_s2 + $0x180] ss:$8 sps:$4 sm:$0xff]   ;;  %v8286_v4 = vld [vmem:[%s10177_s2 + $0x190] ss:$8 sps:$4 sm:$0xff]   ;;  %v8287_v5 = vld [vmem:[%s10177_s2 + $0x1a4] ss:$8 sps:$4 sm:$0xff]  }
 0x129   : > { %10206 = vst [vmem:[#allocation7_spill] sm:$0xff] %v8620_v6  ;;  %v8289_v7 = vld [vmem:[%s10177_s2 + $0x1a0] ss:$8 sps:$4 sm:$0xff]   ;;  %vm6038_vm15 = vcmask 261120   ;;  %vm6110_vm2 = vcmask 0  }
 0x12a   : > { %10207 = vst [vmem:[#allocation8_spill] sm:$0xff] %v8623_v9  ;;  %6682 = vmatprep.subr.bf16.mxu1 %v8623_v9 }
 0x12b   : > { %6683 = vmatpush3.bf16.msra.mxu1 %v8595_v10 }
 0x12c   : > { %6684 = vmatprep.subr.bf16.mxu1 %v8620_v6 }
 0x12f   : > { %6685 = vmatpush3.bf16.msra.mxu1 %v8593_v8 }
 0x130   : > { %6710 = vmatprep.subr.bf16.mxu1 %v8599_v24 }
 0x132   : > { %936 = vmatmul.mubr.bf16.vlgmr.msra.gmra.mrb[0].mxu1 %v8221_v11  ;;  %v8290_v11 = vld [vmem:[%s10177_s2 + $0x1b4] ss:$8 sps:$4 sm:$0xff]  }
 0x133   : > { %6711 = vmatpush3.bf16.msra.mxu1 %v8583_v32  ;;  %943 = vmatprep.mubr.bf16.mxu1 %v8224_v12  ;;  %v8292_v12 = vld [vmem:[%s10177_s2 + $0x1b0] ss:$8 sps:$4 sm:$0xff]  }
 0x134   : > { %6712 = vmatprep.subr.bf16.mxu1 %v8597_v22 }
 0x137   : > { %6713 = vmatpush3.bf16.msra.mxu1 %v8581_v30 }
 0x138   : > { %6714 = vmatprep.subr.bf16.mxu1 %v8607_v40 }
 0x13a   : > { %944 = vmatmul.mubr.bf16.gmra.mrb[4].mxu1 %v8226_v13  ;;  %v8295_v13 = vld [vmem:[%s10177_s2 + $0x1c4] ss:$8 sps:$4 sm:$0xff]  }
 0x13b   : > { %6715 = vmatpush3.bf16.msra.mxu1 %v8587_v46  ;;  %951 = vmatprep.mubr.bf16.mxu1 %v8227_v14  ;;  %v8293_v14 = vld [vmem:[%s10177_s2 + $0x1c0] ss:$8 sps:$4 sm:$0xff]  }
 0x13c   : > { %6716 = vmatprep.subr.bf16.mxu1 %v8604_v38 }
 0x13f   : > { %6717 = vmatpush3.bf16.msra.mxu1 %v8585_v44 }
 0x140   : > { %6718 = vmatprep.subr.bf16.mxu1 %v8615_v56 }
 0x142   : > { %952 = vmatmul.mubr.bf16.gmra.mrb[8].mxu1 %v8229_v15  ;;  %v8296_v15 = vld [vmem:[%s10177_s2 + $0x1d4] ss:$8 sps:$4 sm:$0xff]  }
 0x143   : > { %6719 = vmatpush3.bf16.msra.mxu1 %v8591_v60  ;;  %959 = vmatprep.mubr.bf16.mxu1 %v8230_v16  ;;  %v8298_v16 = vld [vmem:[%s10177_s2 + $0x1d0] ss:$8 sps:$4 sm:$0xff]  }
 0x144   : > { %6720 = vmatprep.subr.bf16.mxu1 %v8612_v54 }
 0x147   : > { %6721 = vmatpush3.bf16.msra.mxu1 %v8589_v58 }
 0x148   : > { %6722 = vmatprep.subr.bf16.mxu1 %v8623_v9 }
 0x14a   : > { %960 = vmatmul.mubr.bf16.gmra.mrb[12].mxu1 %v8232_v17  ;;  %v8299_v17 = vld [vmem:[%s10177_s2 + $0x1e4] ss:$8 sps:$4 sm:$0xff]  }
 0x14b   : > { %6723 = vmatpush3.bf16.msra.mxu1 %v8595_v10  ;;  %1054 = vmatprep.mubr.bf16.mxu1 %v8235_v18  ;;  %v8301_v18 = vld [vmem:[%s10177_s2 + $0x1e0] ss:$8 sps:$4 sm:$0xff]  }
 0x14c   : > { %6724 = vmatprep.subr.bf16.mxu1 %v8620_v6 }
 0x14f   : > { %6725 = vmatpush3.bf16.msra.mxu1 %v8593_v8 }
 0x150   : > { %6760 = vmatprep.subr.bf16.mxu1 %v8599_v24 }
 0x152   : > { %1055 = vmatmul.mubr.bf16.vlgmr.msra.gmra.mrb[16].mxu1 %v8233_v19  ;;  %v8302_v19 = vld [vmem:[%s10177_s2 + $0x1f4] ss:$8 sps:$4 sm:$0xff]  }
 0x153   : > { %6761 = vmatpush3.bf16.msra.mxu1 %v8583_v32  ;;  %1062 = vmatprep.mubr.bf16.mxu1 %v8236_v20 }
 0x154   : > { %6762 = vmatprep.subr.bf16.mxu1 %v8597_v22 }
 0x157   : > { %6763 = vmatpush3.bf16.msra.mxu1 %v8581_v30 }
 0x158   : > { %6764 = vmatprep.subr.bf16.mxu1 %v8607_v40 }
 0x15a   : > { %1063 = vmatmul.mubr.bf16.gmra.mrb[20].mxu1 %v8238_v21 }
 0x15b   : > { %6765 = vmatpush3.bf16.msra.mxu1 %v8587_v46  ;;  %1070 = vmatprep.mubr.bf16.mxu1 %v8239_v23  ;;  %v8304_v23 = vld [vmem:[%s10177_s2 + $0x1f0] ss:$8 sps:$4 sm:$0xff]  }
 0x15c   : > { %6766 = vmatprep.subr.bf16.mxu1 %v8604_v38 }
 0x15f   : > { %6767 = vmatpush3.bf16.msra.mxu1 %v8585_v44 }
 0x160   : > { %6768 = vmatprep.subr.bf16.mxu1 %v8615_v56 }
 0x162   : > { %1071 = vmatmul.mubr.bf16.gmra.mrb[24].mxu1 %v8241_v25 }
 0x163   : > { %6769 = vmatpush3.bf16.msra.mxu1 %v8591_v60  ;;  %1078 = vmatprep.mubr.bf16.mxu1 %v8242_v26 }
 0x164   : > { %6770 = vmatprep.subr.bf16.mxu1 %v8612_v54 }
 0x167   : > { %6771 = vmatpush3.bf16.msra.mxu1 %v8589_v58 }
 0x168   : > { %6772 = vmatprep.subr.bf16.mxu1 %v8623_v9 }
 0x16a   : > { %1079 = vmatmul.mubr.bf16.gmra.mrb[28].mxu1 %v8244_v27  ;;  %v8307_v27 = vld [vmem:[%s10177_s2 + $0x204] ss:$8 sps:$4 sm:$0xff]  }
 0x16b   : > { %6773 = vmatpush3.bf16.msra.mxu1 %v8595_v10  ;;  %1336 = vmatprep.mubr.bf16.mxu1 %v8247_v28 }
 0x16c   : > { %6774 = vmatprep.subr.bf16.mxu1 %v8620_v6 }
 0x16f   : > { %6775 = vmatpush3.bf16.msra.mxu1 %v8593_v8 }
 0x170   : > { %6805 = vmatprep.subr.bf16.mxu1 %v8599_v24 }
 0x172   : > { %1337 = vmatmul.mubr.bf16.vlgmr.msra.gmra.mrb[32].mxu1 %v8245_v29 }
 0x173   : > { %6806 = vmatpush3.bf16.msra.mxu1 %v8583_v32  ;;  %1344 = vmatprep.mubr.bf16.mxu1 %v8248_v31 }
 0x174   : > { %6807 = vmatprep.subr.bf16.mxu1 %v8597_v22 }
 0x177   : > { %6808 = vmatpush3.bf16.msra.mxu1 %v8581_v30 }
 0x178   : > { %6809 = vmatprep.subr.bf16.mxu1 %v8607_v40 }
 0x17a   : > { %1345 = vmatmul.mubr.bf16.gmra.mrb[36].mxu1 %v8250_v33 }
 0x17b   : > { %6810 = vmatpush3.bf16.msra.mxu1 %v8587_v46  ;;  %1352 = vmatprep.mubr.bf16.mxu1 %v8251_v34 }
 0x17c   : > { %6811 = vmatprep.subr.bf16.mxu1 %v8604_v38 }
 0x17f   : > { %6812 = vmatpush3.bf16.msra.mxu1 %v8585_v44 }
 0x180   : > { %6813 = vmatprep.subr.bf16.mxu1 %v8615_v56 }
 0x182   : > { %1353 = vmatmul.mubr.bf16.gmra.mrb[40].mxu1 %v8253_v35  ;;  %v8305_v35 = vld [vmem:[%s10177_s2 + $0x200] ss:$8 sps:$4 sm:$0xff]  }
 0x183   : > { %6814 = vmatpush3.bf16.msra.mxu1 %v8591_v60  ;;  %1360 = vmatprep.mubr.bf16.mxu1 %v8254_v36 }
 0x184   : > { %6815 = vmatprep.subr.bf16.mxu1 %v8612_v54 }
 0x187   : > { %6816 = vmatpush3.bf16.msra.mxu1 %v8589_v58 }
 0x188   : > { %6817 = vmatprep.subr.bf16.mxu1 %v8623_v9 }
 0x18a   : > { %1361 = vmatmul.mubr.bf16.gmra.mrb[44].mxu1 %v8256_v37 }
 0x18b   : > { %6818 = vmatpush3.bf16.msra.mxu1 %v8595_v10  ;;  %1544 = vmatprep.mubr.bf16.mxu1 %v8259_v39  ;;  %v8308_v39 = vld [vmem:[%s10177_s2 + $0x214] ss:$8 sps:$4 sm:$0xff]  }
 0x18c   : > { %6819 = vmatprep.subr.bf16.mxu1 %v8620_v6 }
 0x18f   : > { %6820 = vmatpush3.bf16.msra.mxu1 %v8593_v8 }
 0x190   : > { %6895 = vmatprep.subr.bf16.mxu1 %v8599_v24 }
 0x192   : > { %1545 = vmatmul.mubr.bf16.vlgmr.msra.gmra.mrb[48].mxu1 %v8257_v41 }
 0x193   : > { %6896 = vmatpush3.bf16.msra.mxu1 %v8583_v32  ;;  %1552 = vmatprep.mubr.bf16.mxu1 %v8260_v42 }
 0x194   : > { %6897 = vmatprep.subr.bf16.mxu1 %v8597_v22 }
 0x197   : > { %6898 = vmatpush3.bf16.msra.mxu1 %v8581_v30 }
 0x198   : > { %6899 = vmatprep.subr.bf16.mxu1 %v8607_v40 }
 0x19a   : > { %1553 = vmatmul.mubr.bf16.gmra.mrb[52].mxu1 %v8262_v47 }
 0x19b   : > { %6900 = vmatpush3.bf16.msra.mxu1 %v8587_v46  ;;  %1560 = vmatprep.mubr.bf16.mxu1 %v8263_v48  ;;  %v8310_v48 = vld [vmem:[%s10177_s2 + $0x210] ss:$8 sps:$4 sm:$0xff]  }
 0x19c   : > { %6901 = vmatprep.subr.bf16.mxu1 %v8604_v38 }
 0x19f   : > { %6902 = vmatpush3.bf16.msra.mxu1 %v8585_v44 }
 0x1a0   : > { %6903 = vmatprep.subr.bf16.mxu1 %v8615_v56 }
 0x1a2   : > { %1561 = vmatmul.mubr.bf16.gmra.mrb[56].mxu1 %v8265_v49 }
 0x1a3   : > { %6904 = vmatpush3.bf16.msra.mxu1 %v8591_v60  ;;  %1568 = vmatprep.mubr.bf16.mxu1 %v8266_v50 }
 0x1a4   : > { %6905 = vmatprep.subr.bf16.mxu1 %v8612_v54 }
 0x1a7   : > { %6906 = vmatpush3.bf16.msra.mxu1 %v8589_v58 }
 0x1a8   : > { %6907 = vmatprep.subr.bf16.mxu1 %v8623_v9 }
 0x1aa   : > { %1569 = vmatmul.mubr.bf16.gmra.mrb[60].mxu1 %v8268_v51  ;;  %v8311_v51 = vld [vmem:[%s10177_s2 + $0x224] ss:$8 sps:$4 sm:$0xff]  }
 0x1ab   : > { %6908 = vmatpush3.bf16.msra.mxu1 %v8595_v10  ;;  %1960 = vmatprep.mubr.bf16.mxu1 %v8271_v52 }
 0x1ac   : > { %6909 = vmatprep.subr.bf16.mxu1 %v8620_v6 }
 0x1af   : > { %6910 = vmatpush3.bf16.msra.mxu1 %v8593_v8 }
 0x1b0   : > { %6940 = vmatprep.subr.bf16.mxu1 %v8599_v24 }
 0x1b2   : > { %1961 = vmatmul.mubr.bf16.vlgmr.msra.gmra.mrb[64].mxu1 %v8269_v53 }
 0x1b3   : > { %6941 = vmatpush3.bf16.msra.mxu1 %v8583_v32  ;;  %1968 = vmatprep.mubr.bf16.mxu1 %v8272_v55 }
 0x1b4   : > { %6942 = vmatprep.subr.bf16.mxu1 %v8597_v22 }
 0x1b7   : > { %6943 = vmatpush3.bf16.msra.mxu1 %v8581_v30 }
 0x1b8   : > { %6944 = vmatprep.subr.bf16.mxu1 %v8607_v40 }
 0x1ba   : > { %1969 = vmatmul.mubr.bf16.gmra.mrb[68].mxu1 %v8274_v57 }
 0x1bb   : > { %6945 = vmatpush3.bf16.msra.mxu1 %v8587_v46  ;;  %1976 = vmatprep.mubr.bf16.mxu1 %v8275_v59 }
 0x1bc   : > { %6946 = vmatprep.subr.bf16.mxu1 %v8604_v38 }
 0x1bf   : > { %6947 = vmatpush3.bf16.msra.mxu1 %v8585_v44 }
 0x1c0   : > { %6948 = vmatprep.subr.bf16.mxu1 %v8615_v56 }
 0x1c2   : > { %1977 = vmatmul.mubr.bf16.gmra.mrb[72].mxu1 %v8277_v61  ;;  %v8313_v61 = vld [vmem:[%s10177_s2 + $0x220] ss:$8 sps:$4 sm:$0xff]  }
 0x1c3   : > { %6949 = vmatpush3.bf16.msra.mxu1 %v8591_v60  ;;  %1984 = vmatprep.mubr.bf16.mxu1 %v8278_v62 }
 0x1c4   : > { %6950 = vmatprep.subr.bf16.mxu1 %v8612_v54 }
 0x1c7   : > { %6951 = vmatpush3.bf16.msra.mxu1 %v8589_v58 }
 0x1c8   : > { %6952 = vmatprep.subr.bf16.mxu1 %v8623_v9 }
 0x1ca   : > { %1985 = vmatmul.mubr.bf16.gmra.mrb[76].mxu1 %v8280_v63 }
 0x1cb   : > { %6953 = vmatpush3.bf16.msra.mxu1 %v8595_v10  ;;  %2168 = vmatprep.mubr.bf16.mxu1 %v8283_v0  ;;  %v8314_v0 = vld [vmem:[%s10177_s2 + $0x234] ss:$8 sps:$4 sm:$0xff]  }
 0x1cc   : > { %6954 = vmatprep.subr.bf16.mxu1 %v8620_v6 }
 0x1cf   : > { %6955 = vmatpush3.bf16.msra.mxu1 %v8593_v8 }
 0x1d0   : > { %6985 = vmatprep.subr.bf16.mxu1 %v8599_v24 }
 0x1d2   : > { %2169 = vmatmul.mubr.bf16.vlgmr.msra.gmra.mrb[80].mxu1 %v8281_v2 }
 0x1d3   : > { %6986 = vmatpush3.bf16.msra.mxu1 %v8583_v32  ;;  %2176 = vmatprep.mubr.bf16.mxu1 %v8284_v3 }
 0x1d4   : > { %6987 = vmatprep.subr.bf16.mxu1 %v8597_v22 }
 0x1d7   : > { %6988 = vmatpush3.bf16.msra.mxu1 %v8581_v30 }
 0x1d8   : > { %6989 = vmatprep.subr.bf16.mxu1 %v8607_v40 }
 0x1da   : > { %2177 = vmatmul.mubr.bf16.gmra.mrb[84].mxu1 %v8286_v4 }
 0x1db   : > { %6990 = vmatpush3.bf16.msra.mxu1 %v8587_v46  ;;  %2184 = vmatprep.mubr.bf16.mxu1 %v8287_v5 }
 0x1dc   : > { %6991 = vmatprep.subr.bf16.mxu1 %v8604_v38 }
 0x1df   : > { %6992 = vmatpush3.bf16.msra.mxu1 %v8585_v44 }
 0x1e0   : > { %6993 = vmatprep.subr.bf16.mxu1 %v8615_v56 }
 0x1e2   : > { %2185 = vmatmul.mubr.bf16.gmra.mrb[88].mxu1 %v8289_v7 }
 0x1e3   : > { %6994 = vmatpush3.bf16.msra.mxu1 %v8591_v60  ;;  %2192 = vmatprep.mubr.bf16.mxu1 %v8290_v11  ;;  %v8316_v11 = vld [vmem:[%s10177_s2 + $0x230] ss:$8 sps:$4 sm:$0xff]  }
 0x1e4   : > { %6995 = vmatprep.subr.bf16.mxu1 %v8612_v54 }
 0x1e7   : > { %6996 = vmatpush3.bf16.msra.mxu1 %v8589_v58 }
 0x1e8   : > { %6997 = vmatprep.subr.bf16.mxu1 %v8623_v9 }
 0x1ea   : > { %2193 = vmatmul.mubr.bf16.gmra.mrb[92].mxu1 %v8292_v12 }
 0x1eb   : > { %6998 = vmatpush3.bf16.msra.mxu1 %v8595_v10  ;;  %2376 = vmatprep.mubr.bf16.mxu1 %v8295_v13 }
 0x1ec   : > { %6999 = vmatprep.subr.bf16.mxu1 %v8620_v6 }
 0x1ef   : > { %7000 = vmatpush3.bf16.msra.mxu1 %v8593_v8 }
 0x1f0   : > { %7030 = vmatprep.subr.bf16.mxu1 %v8599_v24 }
 0x1f2   : > { %2377 = vmatmul.mubr.bf16.vlgmr.msra.gmra.mrb[96].mxu1 %v8293_v14  ;;  %v8319_v14 = vld [vmem:[%s10177_s2 + $0x284] ss:$8 sps:$4 sm:$0xff]  }
 0x1f3   : > { %7031 = vmatpush3.bf16.msra.mxu1 %v8583_v32  ;;  %2384 = vmatprep.mubr.bf16.mxu1 %v8296_v15 }
 0x1f4   : > { %7032 = vmatprep.subr.bf16.mxu1 %v8597_v22 }
 0x1f7   : > { %7033 = vmatpush3.bf16.msra.mxu1 %v8581_v30 }
 0x1f8   : > { %7034 = vmatprep.subr.bf16.mxu1 %v8607_v40 }
 0x1fa   : > { %2385 = vmatmul.mubr.bf16.gmra.mrb[100].mxu1 %v8298_v16 }
 0x1fb   : > { %7035 = vmatpush3.bf16.msra.mxu1 %v8587_v46  ;;  %2392 = vmatprep.mubr.bf16.mxu1 %v8299_v17 }
 0x1fc   : > { %7036 = vmatprep.subr.bf16.mxu1 %v8604_v38 }
 0x1ff   : > { %7037 = vmatpush3.bf16.msra.mxu1 %v8585_v44 }
 0x200   : > { %7038 = vmatprep.subr.bf16.mxu1 %v8615_v56 }
 0x202   : > { %2393 = vmatmul.mubr.bf16.gmra.mrb[104].mxu1 %v8301_v18 }
 0x203   : > { %7039 = vmatpush3.bf16.msra.mxu1 %v8591_v60  ;;  %2400 = vmatprep.mubr.bf16.mxu1 %v8302_v19 }
 0x204   : > { %7040 = vmatprep.subr.bf16.mxu1 %v8612_v54 }
 0x205   : > { %v6686_v20 = vpop.f32.mrb[0].mxu1 }
 0x206   : > { %v6687_v21 = vpop.f32.mrb[1].mxu1 }
 0x207   : > { %v8913_v25 = vadd.f32 %v6687_v21, %v6686_v20  ;;  %v6689_v26 = vpop.f32.mrb[2].mxu1  ;;  %7041 = vmatpush3.bf16.msra.mxu1 %v8589_v58  ;;  %v8317_v20 = vld [vmem:[%s10177_s2 + $0x280] ss:$8 sps:$4 sm:$0xff]  }
 0x208   : > { %v6690_v28 = vpop.f32.mrb[3].mxu1  ;;  %7042 = vmatprep.subr.bf16.mxu1 %v8623_v9 }
 0x209   : > { %v8920_v29 = vadd.f32 %v6690_v28, %v6689_v26  ;;  %v8320_v26 = vld [vmem:[%s10177_s2 + $0x294] ss:$8 sps:$4 sm:$0xff]  }
 0x20a   : > { %2401 = vmatmul.mubr.bf16.gmra.mrb[108].mxu1 %v8304_v23 }
 0x20b   : > { %v968_v31 = vpack.c.bf16 %v8920_v29, %v8913_v25  ;;  %7043 = vmatpush3.bf16.msra.mxu1 %v8595_v10  ;;  %2584 = vmatprep.mubr.bf16.mxu1 %v8307_v27 }
 0x20c   : > { %7044 = vmatprep.subr.bf16.mxu1 %v8620_v6 }
 0x20d   : > { %v6692_v33 = vpop.f32.mrb[4].mxu1 }
 0x20e   : > { %v6693_v34 = vpop.f32.mrb[5].mxu1 }
 0x20f   : > { %v8929_v36 = vadd.f32 %v6693_v34, %v6692_v33  ;;  %v6695_v37 = vpop.f32.mrb[6].mxu1  ;;  %7045 = vmatpush3.bf16.msra.mxu1 %v8593_v8  ;;  %v1188_v34 = vsel %vm1106_vm3, %v8834_v1, 0  ;;  %v8323_v1 = vld [vmem:[%s10177_s2 + $0x2a4] ss:$8 sps:$4 sm:$0xff]  }
 0x210   : > { %v6696_v41 = vpop.f32.mrb[7].mxu1  ;;  %7120 = vmatprep.subr.bf16.mxu1 %v8599_v24 }
 0x211   : > { %v8936_v42 = vadd.f32 %v6696_v41, %v6695_v37  ;;  %v8322_v41 = vld [vmem:[%s10177_s2 + $0x290] ss:$8 sps:$4 sm:$0xff]  }
 0x212   : > { %2585 = vmatmul.mubr.bf16.vlgmr.msra.gmra.mrb[112].mxu1 %v8305_v35  ;;  %v6248_v35 = vld [vmem:[%s10178_s3 + $0x8] sm:$0xf] }
 0x213   : > { %v969_v43 = vpack.c.bf16 %v8936_v42, %v8929_v36  ;;  %7121 = vmatpush3.bf16.msra.mxu1 %v8583_v32  ;;  %2592 = vmatprep.mubr.bf16.mxu1 %v8308_v39  ;;  %v1388_v29 = vsel %vm1106_vm3, %v6248_v35, 0  ;;  %v8332_v36 = vld [vmem:[%s10177_s2 + $0x2d4] ss:$8 sps:$4 sm:$0xff]  }
 0x214   : > { %7122 = vmatprep.subr.bf16.mxu1 %v8597_v22 }
 0x215   : > { %v6698_v45 = vpop.f32.mrb[8].mxu1 }
 0x216   : > { %v6699_v47 = vpop.f32.mrb[9].mxu1 }
 0x217   : > { %v8945_v49 = vadd.f32 %v6699_v47, %v6698_v45  ;;  %v6701_v50 = vpop.f32.mrb[10].mxu1  ;;  %7123 = vmatpush3.bf16.msra.mxu1 %v8581_v30 }
 0x218   : > { %v6702_v52 = vpop.f32.mrb[11].mxu1  ;;  %7124 = vmatprep.subr.bf16.mxu1 %v8607_v40 }
 0x219   : > { %v8952_v53 = vadd.f32 %v6702_v52, %v6701_v50 }
 0x21a   : > { %2593 = vmatmul.mubr.bf16.gmra.mrb[116].mxu1 %v8310_v48 }
 0x21b   : > { %v970_v55 = vpack.c.bf16 %v8952_v53, %v8945_v49  ;;  %7125 = vmatpush3.bf16.msra.mxu1 %v8587_v46  ;;  %2600 = vmatprep.mubr.bf16.mxu1 %v8311_v51 }
 0x21c   : > { %7126 = vmatprep.subr.bf16.mxu1 %v8604_v38 }
 0x21d   : > { %v6704_v57 = vpop.f32.mrb[12].mxu1 }
 0x21e   : > { %v6705_v59 = vpop.f32.mrb[13].mxu1 }
 0x21f   : > { %v8961_v62 = vadd.f32 %v6705_v59, %v6704_v57  ;;  %v6707_v63 = vpop.f32.mrb[14].mxu1  ;;  %7127 = vmatpush3.bf16.msra.mxu1 %v8585_v44  ;;  %v8325_v59 = vld [vmem:[%s10177_s2 + $0x2a0] ss:$8 sps:$4 sm:$0xff]  }
 0x220   : > { %v6708_v2 = vpop.f32.mrb[15].mxu1  ;;  %7128 = vmatprep.subr.bf16.mxu1 %v8615_v56 }
 0x221   : > { %v8968_v3 = vadd.f32 %v6708_v2, %v6707_v63 }
 0x222   : > { %2601 = vmatmul.mubr.bf16.gmra.mrb[120].mxu1 %v8313_v61 }
 0x223   : > { %v971_v4 = vpack.c.bf16 %v8968_v3, %v8961_v62  ;;  %7129 = vmatpush3.bf16.msra.mxu1 %v8591_v60  ;;  %2608 = vmatprep.mubr.bf16.mxu1 %v8314_v0  ;;  %v8326_v0 = vld [vmem:[%s10177_s2 + $0x2b4] ss:$8 sps:$4 sm:$0xff]  }
 0x224   : > { %7130 = vmatprep.subr.bf16.mxu1 %v8612_v54 }
 0x225   : > { %v6726_v5 = vpop.f32.mrb[16].mxu1 }
 0x226   : > { %v6727_v7 = vpop.f32.mrb[17].mxu1 }
 0x227   : > { %v6728_v12 = vadd.f32 %v6727_v7, %v6726_v5  ;;  %v6729_v13 = vpop.f32.mrb[18].mxu1  ;;  %7131 = vmatpush3.bf16.msra.mxu1 %v8589_v58 }
 0x228   : > { %v6730_v15 = vpop.f32.mrb[19].mxu1  ;;  %7132 = vmatprep.subr.bf16.mxu1 %v8623_v9 }
 0x229   : > { %v6731_v16 = vadd.f32 %v6730_v15, %v6729_v13  ;;  %v8328_v13 = vld [vmem:[%s10177_s2 + $0x2b0] ss:$8 sps:$4 sm:$0xff]  }
 0x22a   : > { %2609 = vmatmul.mubr.bf16.gmra.mrb[124].mxu1 %v8316_v11 }
 0x22b   : > { %v1087_v17 = vpack.c.bf16 %v6731_v16, %v6728_v12  ;;  %7133 = vmatpush3.bf16.msra.mxu1 %v8595_v10  ;;  %3000 = vmatprep.mubr.bf16.mxu1 %v8319_v14  ;;  %v8331_v16 = vld [vmem:[%s10177_s2 + $0x2c4] ss:$8 sps:$4 sm:$0xff]  }
 0x22c   : > { %7134 = vmatprep.subr.bf16.mxu1 %v8620_v6 }
 0x22d   : > { %v6732_v18 = vpop.f32.mrb[20].mxu1  ;;  %7538 = vmatprep.mubr.msk.bf16.mxu0 %vm1093_vm4, %v1087_v17 }
 0x22e   : > { %v6733_v19 = vpop.f32.mrb[21].mxu1 }
 0x22f   : > { %v6734_v21 = vadd.f32 %v6733_v19, %v6732_v18  ;;  %v6735_v23 = vpop.f32.mrb[22].mxu1  ;;  %7135 = vmatpush3.bf16.msra.mxu1 %v8593_v8 }
 0x230   : > { %v6736_v27 = vpop.f32.mrb[23].mxu1  ;;  %7165 = vmatprep.subr.bf16.mxu1 %v8599_v24 }
 0x231   : > { %v6737_v28 = vadd.f32 %v6736_v27, %v6735_v23  ;;  %v8334_v27 = vld [vmem:[%s10177_s2 + $0x2d0] ss:$8 sps:$4 sm:$0xff]  }
 0x232   : > { %3001 = vmatmul.mubr.bf16.vlgmr.msra.gmra.mrb[128].mxu1 %v8317_v20 }
 0x233   : > { %v1088_v33 = vpack.c.bf16 %v6737_v28, %v6734_v21  ;;  %7166 = vmatpush3.bf16.msra.mxu1 %v8583_v32  ;;  %3008 = vmatprep.mubr.bf16.mxu1 %v8320_v26  ;;  %v8329_v21 = vld [vmem:[%s10177_s2 + $0x2c0] ss:$8 sps:$4 sm:$0xff]  }
 0x234   : > { %7167 = vmatprep.subr.bf16.mxu1 %v8597_v22 }
 0x235   : > { %v6738_v37 = vpop.f32.mrb[24].mxu1  ;;  %7539 = vmatmul.mubr.msk.bf16.vlgmr.msra.gmra.mrb[32].mxu0 %vm1093_vm4, %v1088_v33 }
 0x236   : > { %v6739_v39 = vpop.f32.mrb[25].mxu1  ;;  %7547 = vmatpush3.bf16.msra.mxu0 %v1188_v34  ;;  %v8335_v34 = vld [vmem:[%s10177_s2 + $0x2e4] ss:$8 sps:$4 sm:$0xff]  }
 0x237   : > { %v6740_v45 = vadd.f32 %v6739_v39, %v6738_v37  ;;  %v6741_v47 = vpop.f32.mrb[26].mxu1  ;;  %7168 = vmatpush3.bf16.msra.mxu1 %v8581_v30  ;;  %8166 = vmatprep.subr.msk.bf16.mxu0 %vm1106_vm3, %v6248_v35 }
 0x238   : > { %v6742_v48 = vpop.f32.mrb[27].mxu1  ;;  %7169 = vmatprep.subr.bf16.mxu1 %v8607_v40 }
 0x239   : > { %v6743_v50 = vadd.f32 %v6742_v48, %v6741_v47 }
 0x23a   : > { %3009 = vmatmul.mubr.bf16.gmra.mrb[132].mxu1 %v8322_v41  ;;  %v8337_v41 = vld [vmem:[%s10177_s2 + $0x2e0] ss:$8 sps:$4 sm:$0xff]  }
 0x23b   : > { %v1089_v51 = vpack.c.bf16 %v6743_v50, %v6740_v45  ;;  %7170 = vmatpush3.bf16.msra.mxu1 %v8587_v46  ;;  %3016 = vmatprep.mubr.bf16.mxu1 %v8323_v1  ;;  %v8338_v1 = vld [vmem:[%s10177_s2 + $0x2f4] ss:$8 sps:$4 sm:$0xff]  }
 0x23c   : > { %7171 = vmatprep.subr.bf16.mxu1 %v8604_v38 }
 0x23d   : > { %v6744_v52 = vpop.f32.mrb[28].mxu1  ;;  %7542 = vmatprep.mubr.msk.bf16.mxu0 %vm1093_vm4, %v1089_v51 }
 0x23e   : > { %v6745_v57 = vpop.f32.mrb[29].mxu1 }
 0x23f   : > { %v6746_v61 = vadd.f32 %v6745_v57, %v6744_v52  ;;  %v6747_v63 = vpop.f32.mrb[30].mxu1  ;;  %7172 = vmatpush3.bf16.msra.mxu1 %v8585_v44 }
 0x240   : > { %v6748_v2 = vpop.f32.mrb[31].mxu1  ;;  %7173 = vmatprep.subr.bf16.mxu1 %v8615_v56 }
 0x241   : > { %v6749_v5 = vadd.f32 %v6748_v2, %v6747_v63 }
 0x242   : > { %3017 = vmatmul.mubr.bf16.gmra.mrb[136].mxu1 %v8325_v59  ;;  %v8340_v59 = vld [vmem:[%s10177_s2 + $0x2f0] ss:$8 sps:$4 sm:$0xff]  }
 0x243   : > { %v1090_v7 = vpack.c.bf16 %v6749_v5, %v6746_v61  ;;  %7174 = vmatpush3.bf16.msra.mxu1 %v8591_v60  ;;  %3024 = vmatprep.mubr.bf16.mxu1 %v8326_v0  ;;  %v8343_v0 = vld [vmem:[%s10177_s2 + $0x304] ss:$8 sps:$4 sm:$0xff]  }
 0x244   : > { %7175 = vmatprep.subr.bf16.mxu1 %v8612_v54 }
 0x245   : > { %7543 = vmatmul.mubr.msk.bf16.gmra.mrb[36].mxu0 %vm1093_vm4, %v1090_v7  ;;  %v6776_v11 = vpop.f32.mrb[32].mxu1 }
 0x246   : > { %7548 = vmatprep.mubr.msk.bf16.mxu0 %vm1093_vm4, %v968_v31  ;;  %v6777_v12 = vpop.f32.mrb[33].mxu1  ;;  %v6269_v31 = vld [vmem:[%s10178_s3 + $0xc] sm:$0xf] }
 0x247   : > { %v6778_v14 = vadd.f32 %v6777_v12, %v6776_v11  ;;  %v6779_v15 = vpop.f32.mrb[34].mxu1  ;;  %7176 = vmatpush3.bf16.msra.mxu1 %v8589_v58 }
 0x248   : > { %v6780_v17 = vpop.f32.mrb[35].mxu1  ;;  %7177 = vmatprep.subr.bf16.mxu1 %v8623_v9 }
 0x249   : > { %v6781_v18 = vadd.f32 %v6780_v17, %v6779_v15 }
 0x24a   : > { %3025 = vmatmul.mubr.bf16.gmra.mrb[140].mxu1 %v8328_v13  ;;  %v8341_v13 = vld [vmem:[%s10177_s2 + $0x300] ss:$8 sps:$4 sm:$0xff]  }
 0x24b   : > { %v1369_v25 = vpack.c.bf16 %v6781_v18, %v6778_v14  ;;  %7178 = vmatpush3.bf16.msra.mxu1 %v8595_v10  ;;  %3208 = vmatprep.mubr.bf16.mxu1 %v8331_v16  ;;  %v8344_v16 = vld [vmem:[%s10177_s2 + $0x314] ss:$8 sps:$4 sm:$0xff]  }
 0x24c   : > { %7179 = vmatprep.subr.bf16.mxu1 %v8620_v6 }
 0x24d   : > { %7549 = vmatmul.mubr.msk.bf16.vlgmr.msra.gmra.mrb[32].mxu0 %vm1093_vm4, %v969_v43  ;;  %v6782_v19 = vpop.f32.mrb[36].mxu1 }
 0x24e   : > { %7552 = vmatprep.mubr.msk.bf16.mxu0 %vm1093_vm4, %v970_v55  ;;  %v6783_v20 = vpop.f32.mrb[37].mxu1  ;;  %7557 = vmatpush3.bf16.msra.mxu0 %v1388_v29 }
 0x24f   : > { %v6784_v23 = vadd.f32 %v6783_v20, %v6782_v19  ;;  %v6785_v26 = vpop.f32.mrb[38].mxu1  ;;  %7180 = vmatpush3.bf16.msra.mxu1 %v8593_v8  ;;  %8167 = vmatprep.subr.msk.bf16.mxu0 %vm1106_vm3, %v6269_v31  ;;  %v8346_v19 = vld [vmem:[%s10177_s2 + $0x310] ss:$8 sps:$4 sm:$0xff]  }
 0x250   : > { %v6786_v42 = vpop.f32.mrb[39].mxu1  ;;  %7210 = vmatprep.subr.bf16.mxu1 %v8599_v24 }
 0x251   : > { %v6787_v43 = vadd.f32 %v6786_v42, %v6785_v26  ;;  %v8347_v26 = vld [vmem:[%s10177_s2 + $0x324] ss:$8 sps:$4 sm:$0xff]  }
 0x252   : > { %3209 = vmatmul.mubr.bf16.vlgmr.msra.gmra.mrb[144].mxu1 %v8329_v21 }
 0x253   : > { %v1370_v49 = vpack.c.bf16 %v6787_v43, %v6784_v23  ;;  %7211 = vmatpush3.bf16.msra.mxu1 %v8583_v32  ;;  %3216 = vmatprep.mubr.bf16.mxu1 %v8332_v36 }
 0x254   : > { %7212 = vmatprep.subr.bf16.mxu1 %v8597_v22 }
 0x255   : > { %7553 = vmatmul.mubr.msk.bf16.gmra.mrb[36].mxu0 %vm1093_vm4, %v971_v4  ;;  %v6788_v53 = vpop.f32.mrb[40].mxu1  ;;  %v1596_v4 = vsel %vm1106_vm3, %v6269_v31, 0 }
 0x256   : > { %v6789_v55 = vpop.f32.mrb[41].mxu1  ;;  %7558 = vmatprep.mubr.msk.bf16.mxu0 %vm1093_vm4, %v1369_v25 }
 0x257   : > { %v6790_v28 = vadd.f32 %v6789_v55, %v6788_v53  ;;  %v6791_v33 = vpop.f32.mrb[42].mxu1  ;;  %7213 = vmatpush3.bf16.msra.mxu1 %v8581_v30  ;;  %v8349_v53 = vld [vmem:[%s10177_s2 + $0x320] ss:$8 sps:$4 sm:$0xff]  }
 0x258   : > { %v6792_v35 = vpop.f32.mrb[43].mxu1  ;;  %7214 = vmatprep.subr.bf16.mxu1 %v8607_v40 }
 0x259   : > { %v6793_v62 = vadd.f32 %v6792_v35, %v6791_v33  ;;  %v8350_v33 = vld [vmem:[%s10177_s2 + $0x334] ss:$8 sps:$4 sm:$0xff]   ;;  %v8358_v35 = vld [vmem:[%s10177_s2 + $0x104] ss:$8 sps:$4 sm:$0xff]  }
 0x25a   : > { %3217 = vmatmul.mubr.bf16.gmra.mrb[148].mxu1 %v8334_v27 }
 0x25b   : > { %v1371_v3 = vpack.c.bf16 %v6793_v62, %v6790_v28  ;;  %7215 = vmatpush3.bf16.msra.mxu1 %v8587_v46  ;;  %3224 = vmatprep.mubr.bf16.mxu1 %v8335_v34 }
 0x25c   : > { %7216 = vmatprep.subr.bf16.mxu1 %v8604_v38 }
 0x25d   : > { %v6794_v37 = vpop.f32.mrb[44].mxu1  ;;  %7559 = vmatmul.mubr.msk.bf16.vlgmr.msra.gmra.mrb[32].mxu0 %vm1093_vm4, %v1370_v49 }
 0x25e   : > { %7567 = vmatpush3.bf16.msra.mxu0 %v1596_v4  ;;  %v6795_v39 = vpop.f32.mrb[45].mxu1  ;;  %7562 = vmatprep.mubr.msk.bf16.mxu0 %vm1093_vm4, %v1371_v3  ;;  %v8352_v4 = vld [vmem:[%s10177_s2 + $0x330] ss:$8 sps:$4 sm:$0xff]  }
 0x25f   : > { %v6796_v45 = vadd.f32 %v6795_v39, %v6794_v37  ;;  %6850 = vmatprep.subr.bf16.mxu0 %v8599_v24  ;;  %v6797_v47 = vpop.f32.mrb[46].mxu1  ;;  %7217 = vmatpush3.bf16.msra.mxu1 %v8585_v44 }
 0x260   : > { %v6798_v48 = vpop.f32.mrb[47].mxu1  ;;  %7218 = vmatprep.subr.bf16.mxu1 %v8615_v56 }
 0x261   : > { %v6799_v50 = vadd.f32 %v6798_v48, %v6797_v47 }
 0x262   : > { %3225 = vmatmul.mubr.bf16.gmra.mrb[152].mxu1 %v8337_v41 }
 0x263   : > { %v1372_v51 = vpack.c.bf16 %v6799_v50, %v6796_v45  ;;  %7219 = vmatpush3.bf16.msra.mxu1 %v8591_v60  ;;  %3232 = vmatprep.mubr.bf16.mxu1 %v8338_v1  ;;  %v8355_v45 = vld [vmem:[%s10177_s2 + $0x344] ss:$8 sps:$4 sm:$0xff]  }
 0x264   : > { %7220 = vmatprep.subr.bf16.mxu1 %v8612_v54 }
 0x265   : > { %7563 = vmatmul.mubr.msk.bf16.gmra.mrb[36].mxu0 %vm1093_vm4, %v1372_v51  ;;  %v6821_v52 = vpop.f32.mrb[48].mxu1  ;;  %v8353_v51 = vld [vmem:[%s10177_s2 + $0x340] ss:$8 sps:$4 sm:$0xff]  }
 0x266   : > { %v6822_v57 = vpop.f32.mrb[49].mxu1 }
 0x267   : > { %v6823_v61 = vadd.f32 %v6822_v57, %v6821_v52  ;;  %v6824_v63 = vpop.f32.mrb[50].mxu1  ;;  %7221 = vmatpush3.bf16.msra.mxu1 %v8589_v58 }
 0x268   : > { %v6825_v2 = vpop.f32.mrb[51].mxu1  ;;  %7222 = vmatprep.subr.bf16.mxu1 %v8623_v9 }
 0x269   : > { %v6826_v5 = vadd.f32 %v6825_v2, %v6824_v63  ;;  %v8356_v63 = vld [vmem:[%s10177_s2 + $0x100] ss:$8 sps:$4 sm:$0xff]   ;;  %v8359_v2 = vld [vmem:[%s10177_s2 + $0x114] ss:$8 sps:$4 sm:$0xff]  }
 0x26a   : > { %3233 = vmatmul.mubr.bf16.gmra.mrb[156].mxu1 %v8340_v59 }
 0x26b   : > { %v1577_v7 = vpack.c.bf16 %v6826_v5, %v6823_v61  ;;  %7223 = vmatpush3.bf16.msra.mxu1 %v8595_v10  ;;  %3416 = vmatprep.mubr.bf16.mxu1 %v8343_v0 }
 0x26c   : > { %7224 = vmatprep.subr.bf16.mxu1 %v8620_v6 }
 0x26d   : > { %v6827_v11 = vpop.f32.mrb[52].mxu1  ;;  %7568 = vmatprep.mubr.msk.bf16.mxu0 %vm1093_vm4, %v1577_v7 }
 0x26e   : > { %v6828_v12 = vpop.f32.mrb[53].mxu1 }
 0x26f   : > { %v6829_v14 = vadd.f32 %v6828_v12, %v6827_v11  ;;  %v6830_v15 = vpop.f32.mrb[54].mxu1  ;;  %7225 = vmatpush3.bf16.msra.mxu1 %v8593_v8 }
 0x270   : > { %v6831_v17 = vpop.f32.mrb[55].mxu1  ;;  %7255 = vmatprep.subr.bf16.mxu1 %v8599_v24 }
 0x271   : > { %v6832_v18 = vadd.f32 %v6831_v17, %v6830_v15  ;;  %v8361_v15 = vld [vmem:[%s10177_s2 + $0x110] ss:$8 sps:$4 sm:$0xff]   ;;  %v8362_v17 = vld [vmem:[%s10177_s2 + $0x124] ss:$8 sps:$4 sm:$0xff]  }
 0x272   : > { %3417 = vmatmul.mubr.bf16.vlgmr.msra.gmra.mrb[160].mxu1 %v8341_v13 }
 0x273   : > { %v1578_v25 = vpack.c.bf16 %v6832_v18, %v6829_v14  ;;  %7256 = vmatpush3.bf16.msra.mxu1 %v8583_v32  ;;  %3424 = vmatprep.mubr.bf16.mxu1 %v8344_v16 }
 0x274   : > { %7257 = vmatprep.subr.bf16.mxu1 %v8597_v22 }
 0x275   : > { %7569 = vmatmul.mubr.msk.bf16.vlgmr.msra.gmra.mrb[32].mxu0 %vm1093_vm4, %v1578_v25  ;;  %v6833_v29 = vpop.f32.mrb[56].mxu1 }
 0x276   : > { %6851 = vmatpush3.bf16.msra.mxu0 %v8583_v32  ;;  %v6834_v31 = vpop.f32.mrb[57].mxu1 }
 0x277   : > { %6852 = vmatprep.subr.bf16.mxu0 %v8597_v22  ;;  %7258 = vmatpush3.bf16.msra.mxu1 %v8581_v30  ;;  %v6835_v20 = vadd.f32 %v6834_v31, %v6833_v29  ;;  %v6836_v21 = vpop.f32.mrb[58].mxu1 }
 0x278   : > { %7259 = vmatprep.subr.bf16.mxu1 %v8607_v40  ;;  %v6837_v23 = vpop.f32.mrb[59].mxu1 }
 0x279   : > { %v6838_v36 = vadd.f32 %v6837_v23, %v6836_v21  ;;  %v8365_v21 = vld [vmem:[%s10177_s2 + $0x134] ss:$8 sps:$4 sm:$0xff]   ;;  %v8367_v23 = vld [vmem:[%s10177_s2 + $0x130] ss:$8 sps:$4 sm:$0xff]  }
 0x27a   : > { %6853 = vmatpush3.bf16.msra.mxu0 %v8581_v30  ;;  %3425 = vmatmul.mubr.bf16.gmra.mrb[164].mxu1 %v8346_v19 }
 0x27b   : > { %6854 = vmatprep.subr.bf16.mxu0 %v8607_v40  ;;  %7260 = vmatpush3.bf16.msra.mxu1 %v8587_v46  ;;  %v1579_v42 = vpack.c.bf16 %v6838_v36, %v6835_v20  ;;  %v8364_v20 = vld [vmem:[%s10177_s2 + $0x120] ss:$8 sps:$4 sm:$0xff]  }
 0x27c   : > { %7261 = vmatprep.subr.bf16.mxu1 %v8604_v38  ;;  %3432 = vmatprep.mubr.bf16.mxu1 %v8347_v26 }
 0x27d   : > { %v6839_v43 = vpop.f32.mrb[60].mxu1  ;;  %7572 = vmatprep.mubr.msk.bf16.mxu0 %vm1093_vm4, %v1579_v42 }
 0x27e   : > { %6855 = vmatpush3.bf16.msra.mxu0 %v8587_v46  ;;  %v6840_v49 = vpop.f32.mrb[61].mxu1 }
 0x27f   : > { %6856 = vmatprep.subr.bf16.mxu0 %v8604_v38  ;;  %7262 = vmatpush3.bf16.msra.mxu1 %v8585_v44  ;;  %v6841_v55 = vadd.f32 %v6840_v49, %v6839_v43  ;;  %v6842_v27 = vpop.f32.mrb[62].mxu1 }
 0x280   : > { %7263 = vmatprep.subr.bf16.mxu1 %v8615_v56  ;;  %v6843_v28 = vpop.f32.mrb[63].mxu1 }
 0x281   : > { %v6844_v34 = vadd.f32 %v6843_v28, %v6842_v27 }
 0x282   : > { %6857 = vmatpush3.bf16.msra.mxu0 %v8585_v44  ;;  %3433 = vmatmul.mubr.bf16.gmra.mrb[168].mxu1 %v8349_v53  ;;  %v6290_v53 = vld [vmem:[%s10178_s3 + $0x10] sm:$0xf] }
 0x283   : > { %6858 = vmatprep.subr.bf16.mxu0 %v8615_v56  ;;  %7264 = vmatpush3.bf16.msra.mxu1 %v8591_v60  ;;  %v1580_v62 = vpack.c.bf16 %v6844_v34, %v6841_v55  ;;  %v1804_v28 = vsel %vm1106_vm3, %v6290_v53, 0 }
 0x284   : > { %7265 = vmatprep.subr.bf16.mxu1 %v8612_v54  ;;  %3440 = vmatprep.mubr.bf16.mxu1 %v8350_v33 }
 0x285   : > { %7573 = vmatmul.mubr.msk.bf16.gmra.mrb[36].mxu0 %vm1093_vm4, %v1580_v62  ;;  %v6911_v3 = vpop.f32.mrb[64].mxu1 }
 0x286   : > { %6859 = vmatpush3.bf16.msra.mxu0 %v8591_v60  ;;  %1752 = vmatprep.mubr.bf16.mxu0 %v8358_v35  ;;  %v6912_v37 = vpop.f32.mrb[65].mxu1 }
 0x287   : > { %6860 = vmatprep.subr.bf16.mxu0 %v8612_v54  ;;  %7266 = vmatpush3.bf16.msra.mxu1 %v8589_v58  ;;  %v9152_v39 = vadd.f32 %v6912_v37, %v6911_v3  ;;  %v6914_v41 = vpop.f32.mrb[66].mxu1 }
 0x288   : > { %7267 = vmatprep.subr.bf16.mxu1 %v8623_v9  ;;  %v6915_v47 = vpop.f32.mrb[67].mxu1 }
 0x289   : > { %v9158_v1 = vadd.f32 %v6915_v47, %v6914_v41 }
 0x28a   : > { %6861 = vmatpush3.bf16.msra.mxu0 %v8589_v58  ;;  %3441 = vmatmul.mubr.bf16.gmra.mrb[172].mxu1 %v8352_v4 }
 0x28b   : > { %6862 = vmatprep.subr.bf16.mxu0 %v8623_v9  ;;  %7268 = vmatpush3.bf16.msra.mxu1 %v8595_v10 }
 0x28c   : > { %7269 = vmatprep.subr.bf16.mxu1 %v8620_v6  ;;  %3624 = vmatprep.mubr.bf16.mxu1 %v8355_v45 }
 0x28d   : > { %v6917_v50 = vpop.f32.mrb[68].mxu1 }
 0x28e   : > { %6863 = vmatpush3.bf16.msra.mxu0 %v8595_v10  ;;  %v6918_v52 = vpop.f32.mrb[69].mxu1 }
 0x28f   : > { %6864 = vmatprep.subr.bf16.mxu0 %v8620_v6  ;;  %7270 = vmatpush3.bf16.msra.mxu1 %v8593_v8  ;;  %v9172_v57 = vadd.f32 %v6918_v52, %v6917_v50  ;;  %v6920_v59 = vpop.f32.mrb[70].mxu1 }
 0x290   : > { %7345 = vmatprep.subr.bf16.mxu1 %v8599_v24  ;;  %v6921_v61 = vpop.f32.mrb[71].mxu1 }
 0x291   : > { %v9178_v0 = vadd.f32 %v6921_v61, %v6920_v59 }
 0x292   : > { %6865 = vmatpush3.bf16.msra.mxu0 %v8593_v8  ;;  %3625 = vmatmul.mubr.bf16.vlgmr.msra.gmra.mrb[176].mxu1 %v8353_v51 }
 0x293   : > { %7346 = vmatpush3.bf16.msra.mxu1 %v8583_v32  ;;  %8168 = vmatprep.subr.msk.bf16.mxu0 %vm1106_vm3, %v6290_v53 }
 0x294   : > { %7347 = vmatprep.subr.bf16.mxu1 %v8597_v22 }
 0x295   : > { %1753 = vmatmul.mubr.bf16.vlgmr.msra.gmra.mrb[40].mxu0 %v8356_v63  ;;  %v6923_v7 = vpop.f32.mrb[72].mxu1 }
 0x296   : > { %1760 = vmatprep.mubr.bf16.mxu0 %v8359_v2  ;;  %v6924_v11 = vpop.f32.mrb[73].mxu1  ;;  %7577 = vmatpush3.bf16.msra.mxu0 %v1804_v28 }
 0x297   : > { %7348 = vmatpush3.bf16.msra.mxu1 %v8581_v30  ;;  %v9189_v12 = vadd.f32 %v6924_v11, %v6923_v7  ;;  %v6926_v13 = vpop.f32.mrb[74].mxu1 }
 0x298   : > { %7349 = vmatprep.subr.bf16.mxu1 %v8607_v40  ;;  %v6927_v14 = vpop.f32.mrb[75].mxu1 }
 0x299   : > { %v9195_v16 = vadd.f32 %v6927_v14, %v6926_v13 }
 0x29b   : > { %7350 = vmatpush3.bf16.msra.mxu1 %v8587_v46 }
 0x29c   : > { %7351 = vmatprep.subr.bf16.mxu1 %v8604_v38 }
 0x29d   : > { %1761 = vmatmul.mubr.bf16.gmra.mrb[44].mxu0 %v8361_v15  ;;  %v6929_v25 = vpop.f32.mrb[76].mxu1 }
 0x29e   : > { %1768 = vmatprep.mubr.bf16.mxu0 %v8362_v17  ;;  %v6930_v29 = vpop.f32.mrb[77].mxu1 }
 0x29f   : > { %7352 = vmatpush3.bf16.msra.mxu1 %v8585_v44  ;;  %v9205_v31 = vadd.f32 %v6930_v29, %v6929_v25  ;;  %v6932_v19 = vpop.f32.mrb[78].mxu1  ;;  %v9258_v25 = vld [vmem:[%s10178_s3 + $0x14] sm:$0xf] }
 0x2a0   : > { %7353 = vmatprep.subr.bf16.mxu1 %v8615_v56  ;;  %v6933_v26 = vpop.f32.mrb[79].mxu1  ;;  %8169 = vmatprep.subr.msk.bf16.mxu0 %vm1106_vm3, %v9258_v25 }
 0x2a1   : > { %v9224_v36 = vadd.f32 %v6933_v26, %v6932_v19 }
 0x2a3   : > { %7354 = vmatpush3.bf16.msra.mxu1 %v8591_v60 }
 0x2a4   : > { %7355 = vmatprep.subr.bf16.mxu1 %v8612_v54 }
 0x2a5   : > { %1769 = vmatmul.mubr.bf16.gmra.mrb[48].mxu0 %v8364_v20  ;;  %v6956_v43 = vpop.f32.mrb[80].mxu1 }
 0x2a6   : > { %1776 = vmatprep.mubr.bf16.mxu0 %v8365_v21  ;;  %v6957_v49 = vpop.f32.mrb[81].mxu1 }
 0x2a7   : > { %7356 = vmatpush3.bf16.msra.mxu1 %v8589_v58  ;;  %v9231_v55 = vadd.f32 %v6957_v49, %v6956_v43  ;;  %v6959_v27 = vpop.f32.mrb[82].mxu1 }
 0x2a8   : > { %7357 = vmatprep.subr.bf16.mxu1 %v8623_v9  ;;  %v6960_v33 = vpop.f32.mrb[83].mxu1 }
 0x2a9   : > { %v9235_v34 = vadd.f32 %v6960_v33, %v6959_v27 }
 0x2ab   : > { %7358 = vmatpush3.bf16.msra.mxu1 %v8595_v10 }
 0x2ac   : > { %7359 = vmatprep.subr.bf16.mxu1 %v8620_v6 }
 0x2ad   : > { %1777 = vmatmul.mubr.bf16.gmra.mrb[52].mxu0 %v8367_v23  ;;  %v6962_v62 = vpop.f32.mrb[84].mxu1 }
 0x2ae   : > { %v6963_v3 = vpop.f32.mrb[85].mxu1 }
 0x2af   : > { %7360 = vmatpush3.bf16.msra.mxu1 %v8593_v8  ;;  %v9239_v4 = vadd.f32 %v6963_v3, %v6962_v62  ;;  %v6965_v37 = vpop.f32.mrb[86].mxu1 }
 0x2b0   : > { %v6966_v41 = vpop.f32.mrb[87].mxu1 }
 0x2b1   : > { %v9241_v45 = vadd.f32 %v6966_v41, %v6965_v37 }
 0x2b5   : > { %v6968_v50 = vpop.f32.mrb[88].mxu1 }
 0x2b6   : > { %v6969_v51 = vpop.f32.mrb[89].mxu1 }
 0x2b7   : > { %v9245_v52 = vadd.f32 %v6969_v51, %v6968_v50  ;;  %v6971_v59 = vpop.f32.mrb[90].mxu1 }
 0x2b8   : > { %v6972_v61 = vpop.f32.mrb[91].mxu1 }
 0x2b9   : > { %v9247_v63 = vadd.f32 %v6972_v61, %v6971_v59 }
 0x2bd   : > { %v6974_v7 = vpop.f32.mrb[92].mxu1 }
 0x2be   : > { %v6975_v11 = vpop.f32.mrb[93].mxu1 }
 0x2bf   : > { %v9251_v13 = vadd.f32 %v6975_v11, %v6974_v7  ;;  %v6977_v14 = vpop.f32.mrb[94].mxu1 }
 0x2c0   : > { %v6978_v15 = vpop.f32.mrb[95].mxu1 }
 0x2c1   : > { %v9253_v17 = vadd.f32 %v6978_v15, %v6977_v14 }
 0x2c5   : > { %v7001_v29 = vpop.f32.mrb[96].mxu1 }
 0x2c6   : > { %v7002_v19 = vpop.f32.mrb[97].mxu1 }
 0x2c7   : > { %v9264_v21 = vadd.f32 %v7002_v19, %v7001_v29  ;;  %v7004_v23 = vpop.f32.mrb[98].mxu1 }
 0x2c8   : > { %v7005_v26 = vpop.f32.mrb[99].mxu1 }
 0x2c9   : > { %v9266_v43 = vadd.f32 %v7005_v26, %v7004_v23 }
 0x2cd   : > { %v7007_v49 = vpop.f32.mrb[100].mxu1 }
 0x2ce   : > { %v7008_v53 = vpop.f32.mrb[101].mxu1 }
 0x2cf   : > { %v9270_v28 = vadd.f32 %v7008_v53, %v7007_v49  ;;  %v7010_v33 = vpop.f32.mrb[102].mxu1 }
 0x2d0   : > { %v7011_v62 = vpop.f32.mrb[103].mxu1 }
 0x2d1   : > { %v9272_v3 = vadd.f32 %v7011_v62, %v7010_v33 }
 0x2d5   : > { %v7013_v37 = vpop.f32.mrb[104].mxu1 }
 0x2d6   : > { %v7014_v41 = vpop.f32.mrb[105].mxu1 }
 0x2d7   : > { %v9276_v51 = vadd.f32 %v7014_v41, %v7013_v37  ;;  %v7016_v59 = vpop.f32.mrb[106].mxu1 }
 0x2d8   : > { %v7017_v61 = vpop.f32.mrb[107].mxu1 }
 0x2d9   : > { %v9278_v7 = vadd.f32 %v7017_v61, %v7016_v59 }
 0x2dd   : > { %v7019_v11 = vpop.f32.mrb[108].mxu1 }
 0x2de   : > { %v7020_v14 = vpop.f32.mrb[109].mxu1 }
 0x2df   : > { %v9282_v29 = vadd.f32 %v7020_v14, %v7019_v11  ;;  %v7022_v19 = vpop.f32.mrb[110].mxu1 }
 0x2e0   : > { %v7023_v23 = vpop.f32.mrb[111].mxu1 }
 0x2e1   : > { %v9284_v26 = vadd.f32 %v7023_v23, %v7022_v19 }
 0x2e5   : > { %v7046_v49 = vpop.f32.mrb[112].mxu1 }
 0x2e6   : > { %v7047_v53 = vpop.f32.mrb[113].mxu1 }
 0x2e7   : > { %v9288_v62 = vadd.f32 %v7047_v53, %v7046_v49  ;;  %v7049_v37 = vpop.f32.mrb[114].mxu1 }
 0x2e8   : > { %v7050_v41 = vpop.f32.mrb[115].mxu1 }
 0x2e9   : > { %v9290_v59 = vadd.f32 %v7050_v41, %v7049_v37 }
 0x2ed   : > { %v7052_v61 = vpop.f32.mrb[116].mxu1 }
 0x2ee   : > { %v7053_v14 = vpop.f32.mrb[117].mxu1 }
 0x2ef   : > { %v9294_v15 = vadd.f32 %v7053_v14, %v7052_v61  ;;  %v7055_v19 = vpop.f32.mrb[118].mxu1 }
 0x2f0   : > { %v7056_v23 = vpop.f32.mrb[119].mxu1 }
 0x2f1   : > { %v9296_v50 = vadd.f32 %v7056_v23, %v7055_v19 }
 0x2f5   : > { %v7058_v49 = vpop.f32.mrb[120].mxu1 }
 0x2f6   : > { %v7059_v53 = vpop.f32.mrb[121].mxu1 }
 0x2f7   : > { %v9300_v27 = vadd.f32 %v7059_v53, %v7058_v49  ;;  %v7061_v37 = vpop.f32.mrb[122].mxu1 }
 0x2f8   : > { %v7062_v41 = vpop.f32.mrb[123].mxu1 }
 0x2f9   : > { %v9302_v20 = vadd.f32 %v7062_v41, %v7061_v37 }
 0x2fd   : > { %v7064_v61 = vpop.f32.mrb[124].mxu1 }
 0x2fe   : > { %v7065_v14 = vpop.f32.mrb[125].mxu1 }
 0x2ff   : > { %v9306_v2 = vadd.f32 %v7065_v14, %v7064_v61  ;;  %v7067_v19 = vpop.f32.mrb[126].mxu1 }
 0x300   : > { %v7068_v23 = vpop.f32.mrb[127].mxu1 }
 0x301   : > { %v9308_v47 = vadd.f32 %v7068_v23, %v7067_v19  ;;  %v2012_v23 = vsel %vm1106_vm3, %v9258_v25, 0 }
 0x368   : > { %v6866_v49 = vpop.f32.mrb[40].mxu0 }
 0x369   : > { %v6867_v53 = vpop.f32.mrb[41].mxu0 }
 0x36a   : > { %v6868_v35 = vadd.f32 %v6867_v53, %v6866_v49  ;;  %v6869_v42 = vpop.f32.mrb[42].mxu0  ;;  %v6332_v49 = vld [vmem:[%s10178_s3 + $0x18] sm:$0xf] }
 0x36b   : > { %v6870_v37 = vpop.f32.mrb[43].mxu0 }
 0x36c   : > { %v6871_v41 = vadd.f32 %v6870_v37, %v6869_v42  ;;  %v8383_v42 = vld [vmem:[%s10177_s2 + $0x364] ss:$8 sps:$4 sm:$0xff]  }
 0x36e   : > { %v1785_v18 = vpack.c.bf16 %v6871_v41, %v6868_v35 }
 0x370   : > { %v6872_v5 = vpop.f32.mrb[44].mxu0  ;;  %7578 = vmatprep.mubr.msk.bf16.mxu0 %vm1093_vm4, %v1785_v18  ;;  %v8380_v18 = vld [vmem:[%s10177_s2 + $0x354] ss:$8 sps:$4 sm:$0xff]  }
 0x371   : > { %v6873_v11 = vpop.f32.mrb[45].mxu0  ;;  %3632 = vmatprep.mubr.bf16.mxu1 %v8380_v18  ;;  %v8385_v18 = vld [vmem:[%s10177_s2 + $0x360] ss:$8 sps:$4 sm:$0xff]  }
 0x372   : > { %v6874_v61 = vadd.f32 %v6873_v11, %v6872_v5  ;;  %v6875_v14 = vpop.f32.mrb[46].mxu0  ;;  %v8382_v5 = vld [vmem:[%s10177_s2 + $0x350] ss:$8 sps:$4 sm:$0xff]  }
 0x373   : > { %v6876_v48 = vpop.f32.mrb[47].mxu0  ;;  %3633 = vmatmul.mubr.bf16.gmra.mrb[180].mxu1 %v8382_v5 }
 0x374   : > { %v6877_v8 = vadd.f32 %v6876_v48, %v6875_v14  ;;  %v7136_v48 = vpop.f32.mrb[128].mxu1  ;;  %3640 = vmatprep.mubr.bf16.mxu1 %v8383_v42  ;;  %v8386_v42 = vld [vmem:[%s10177_s2 + $0x374] ss:$8 sps:$4 sm:$0xff]  }
 0x375   : > { %v7137_v35 = vpop.f32.mrb[129].mxu1 }
 0x376   : > { %v1786_v19 = vpack.c.bf16 %v6877_v8, %v6874_v61  ;;  %v9329_v37 = vadd.f32 %v7137_v35, %v7136_v48  ;;  %v7139_v41 = vpop.f32.mrb[130].mxu1 }
 0x377   : > { %v7140_v14 = vpop.f32.mrb[131].mxu1 }
 0x378   : > { %v6878_v53 = vpop.f32.mrb[48].mxu0  ;;  %7579 = vmatmul.mubr.msk.bf16.vlgmr.msra.gmra.mrb[32].mxu0 %vm1093_vm4, %v1786_v19  ;;  %10208 = vst [vmem:[#allocation9_spill] sm:$0xff] %v9329_v37  ;;  %v9331_v33 = vadd.f32 %v7140_v14, %v7139_v41 }
 0x379   : > { %v6879_v8 = vpop.f32.mrb[49].mxu0  ;;  %7587 = vmatpush3.bf16.msra.mxu0 %v2012_v23  ;;  %v7142_v23 = vpop.f32.mrb[132].mxu1 }
 0x37a   : > { %v6880_v25 = vadd.f32 %v6879_v8, %v6878_v53  ;;  %v6881_v11 = vpop.f32.mrb[50].mxu0  ;;  %8170 = vmatprep.subr.msk.bf16.mxu0 %vm1106_vm3, %v6332_v49  ;;  %10209 = vst [vmem:[#allocation10_spill] sm:$0xff] %v9331_v33  ;;  %v7143_v6 = vpop.f32.mrb[133].mxu1 }
 0x37b   : > { %v6882_v61 = vpop.f32.mrb[51].mxu0  ;;  %v9335_v8 = vadd.f32 %v7143_v6, %v7142_v23  ;;  %v7145_v9 = vpop.f32.mrb[134].mxu1  ;;  %3641 = vmatmul.mubr.bf16.gmra.mrb[184].mxu1 %v8385_v18  ;;  %v6353_v18 = vld [vmem:[%s10178_s3 + $0x1c] sm:$0xf] }
 0x37c   : > { %v6883_v19 = vadd.f32 %v6882_v61, %v6881_v11  ;;  %v7146_v48 = vpop.f32.mrb[135].mxu1  ;;  %3648 = vmatprep.mubr.bf16.mxu1 %v8386_v42  ;;  %v10211_v42 = vpack.c.bf16 %v9178_v0, %v9172_v57  ;;  %v2428_v57 = vsel %vm1106_vm3, %v6353_v18, 0  ;;  %v6374_v0 = vld [vmem:[%s10178_s3 + $0x20] sm:$0xf] }
 0x37d   : > { %v9344_v35 = vadd.f32 %v7146_v48, %v7145_v9 }
 0x37e   : > { %v1787_v10 = vpack.c.bf16 %v6883_v19, %v6880_v25  ;;  %v7148_v25 = vpop.f32.mrb[136].mxu1 }
 0x37f   : > { %v7149_v41 = vpop.f32.mrb[137].mxu1  ;;  %v3034_v14 = vpack.c.bf16 %v9344_v35, %v9335_v8 }
 0x380   : > { %v6884_v5 = vpop.f32.mrb[52].mxu0  ;;  %7582 = vmatprep.mubr.msk.bf16.mxu0 %vm1093_vm4, %v1787_v10  ;;  %v9348_v19 = vadd.f32 %v7149_v41, %v7148_v25  ;;  %v7151_v23 = vpop.f32.mrb[138].mxu1  ;;  %v8388_v25 = vld [vmem:[%s10177_s2 + $0x370] ss:$8 sps:$4 sm:$0xff]  }
 0x381   : > { %v6885_v11 = vpop.f32.mrb[53].mxu0  ;;  %v7152_v10 = vpop.f32.mrb[139].mxu1 }
 0x382   : > { %v6886_v6 = vadd.f32 %v6885_v11, %v6884_v5  ;;  %v6887_v61 = vpop.f32.mrb[54].mxu0  ;;  %v9350_v33 = vadd.f32 %v7152_v10, %v7151_v23  ;;  %v7154_v9 = vpop.f32.mrb[140].mxu1 }
 0x383   : > { %v6888_v53 = vpop.f32.mrb[55].mxu0  ;;  %v7155_v48 = vpop.f32.mrb[141].mxu1  ;;  %3649 = vmatmul.mubr.bf16.gmra.mrb[188].mxu1 %v8388_v25 }
 0x384   : > { %v6889_v37 = vadd.f32 %v6888_v53, %v6887_v61  ;;  %v9354_v11 = vadd.f32 %v7155_v48, %v7154_v9  ;;  %v9356_v54 = vpop.f32.mrb[142].mxu1  ;;  %v10210_v53 = vpack.c.bf16 %v9158_v1, %v9152_v39  ;;  %v10213_v39 = vpack.c.bf16 %v9224_v36, %v9205_v31  ;;  %v6395_v61 = vld [vmem:[%s10178_s3 + $0x24] sm:$0xf] }
 0x385   : > { %v10214_v1 = vpack.c.bf16 %v9235_v34, %v9231_v55  ;;  %v10217_v31 = vpack.c.bf16 %v9253_v17, %v9251_v13  ;;  %v10218_v36 = vpack.c.bf16 %v9266_v43, %v9264_v21  ;;  %v2636_v55 = vsel %vm1106_vm3, %v6374_v0, 0  ;;  %v8370_v17 = vld [vmem:[%s10177_s2 + $0x244] ss:$8 sps:$4 sm:$0xff]  }
 0x386   : > { %v1788_v58 = vpack.c.bf16 %v6889_v37, %v6886_v6  ;;  %v2220_v37 = vsel %vm1106_vm3, %v6332_v49, 0  ;;  %v10219_v34 = vpack.c.bf16 %v9272_v3, %v9270_v28  ;;  %v10224_v13 = vpack.c.bf16 %v9302_v20, %v9300_v27  ;;  %v10226_v20 = vld [vmem:[#allocation6_spill] sm:$0xff]  ;;  %v10227_v43 = vld [vmem:[#allocation3_spill] sm:$0xff]  ;;  %v10228_v27 = vld [vmem:[#allocation8_spill] sm:$0xff] }
 0x387   : > { %v10225_v21 = vpack.c.bf16 %v9308_v47, %v9306_v2  ;;  %v10229_v47 = vld [vmem:[#allocation5_spill] sm:$0xff]  ;;  %v10230_v2 = vld [vmem:[#allocation7_spill] sm:$0xff]  ;;  %v10231_v3 = vld [vmem:[#allocation4_spill] sm:$0xff]  ;;  %v2844_v9 = vsel %vm1106_vm3, %v6395_v61, 0 }
 0x388   : > { %7583 = vmatmul.mubr.msk.bf16.gmra.mrb[36].mxu0 %vm1093_vm4, %v1788_v58  ;;  %v10212_v58 = vpack.c.bf16 %v9195_v16, %v9189_v12  ;;  %v10215_v12 = vpack.c.bf16 %v9241_v45, %v9239_v4  ;;  %v10216_v16 = vpack.c.bf16 %v9247_v63, %v9245_v52  ;;  %v10220_v4 = vpack.c.bf16 %v9278_v7, %v9276_v51  ;;  %v8368_v28 = vld [vmem:[%s10177_s2 + $0x240] ss:$8 sps:$4 sm:$0xff]   ;;  %v8373_v51 = vld [vmem:[%s10177_s2 + $0x250] ss:$8 sps:$4 sm:$0xff]   ;;  %v8374_v7 = vld [vmem:[%s10177_s2 + $0x264] ss:$8 sps:$4 sm:$0xff]  }
 0x389   : > { %7588 = vmatprep.mubr.msk.bf16.mxu0 %vm1093_vm4, %v10210_v53  ;;  %v10221_v45 = vpack.c.bf16 %v9284_v26, %v9282_v29  ;;  %v10222_v52 = vpack.c.bf16 %v9290_v59, %v9288_v62  ;;  %v10223_v63 = vpack.c.bf16 %v9296_v50, %v9294_v15  ;;  %v8371_v50 = vld [vmem:[%s10177_s2 + $0x254] ss:$8 sps:$4 sm:$0xff]   ;;  %v8376_v15 = vld [vmem:[%s10177_s2 + $0x260] ss:$8 sps:$4 sm:$0xff]   ;;  %v8379_v26 = vld [vmem:[%s10177_s2 + $0x270] ss:$8 sps:$4 sm:$0xff]  }
 0x38a   : > { %v8377_v29 = vld [vmem:[%s10177_s2 + $0x274] ss:$8 sps:$4 sm:$0xff]   ;;  %v7158_v62 = vpop.f32.mrb[143].mxu1 }
 0x38b   : > { %v9478_v59 = vadd.f32 %v7158_v62, %v9356_v54  ;;  %v7181_v41 = vpop.f32.mrb[144].mxu1 }
 0x38c   : > { %v7182_v6 = vpop.f32.mrb[145].mxu1 }
 0x38d   : > { %v9485_v23 = vadd.f32 %v7182_v6, %v7181_v41  ;;  %v7184_v10 = vpop.f32.mrb[146].mxu1 }
 0x38e   : > { %v7185_v48 = vpop.f32.mrb[147].mxu1 }
 0x38f   : > { %v9489_v54 = vadd.f32 %v7185_v48, %v7184_v10  ;;  %v7187_v53 = vpop.f32.mrb[148].mxu1 }
 0x390   : > { %7589 = vmatmul.mubr.msk.bf16.vlgmr.msra.gmra.mrb[32].mxu0 %vm1093_vm4, %v10211_v42 }
 0x391   : > { %7592 = vmatprep.mubr.msk.bf16.mxu0 %vm1093_vm4, %v10212_v58  ;;  %7597 = vmatpush3.bf16.msra.mxu0 %v2220_v37  ;;  %v7188_v37 = vpop.f32.mrb[149].mxu1 }
 0x392   : > { %8171 = vmatprep.subr.msk.bf16.mxu0 %vm1106_vm3, %v6353_v18  ;;  %v9493_v18 = vadd.f32 %v7188_v37, %v7187_v53  ;;  %v7190_v42 = vpop.f32.mrb[150].mxu1 }
 0x393   : > { %v7191_v58 = vpop.f32.mrb[151].mxu1 }
 0x398   : > { %7593 = vmatmul.mubr.msk.bf16.gmra.mrb[36].mxu0 %vm1093_vm4, %v10213_v39  ;;  %v9495_v39 = vadd.f32 %v7191_v58, %v7190_v42 }
 0x399   : > { %7598 = vmatprep.mubr.msk.bf16.mxu0 %vm1093_vm4, %v10214_v1 }
 0x39a   : > { %v10238_v35 = vpack.c.bf16 %v9495_v39, %v9493_v18 }
 0x3a0   : > { %7599 = vmatmul.mubr.msk.bf16.vlgmr.msra.gmra.mrb[32].mxu0 %vm1093_vm4, %v10215_v12 }
 0x3a1   : > { %7602 = vmatprep.mubr.msk.bf16.mxu0 %vm1093_vm4, %v10216_v16  ;;  %7607 = vmatpush3.bf16.msra.mxu0 %v2428_v57  ;;  %v7193_v57 = vpop.f32.mrb[152].mxu1 }
 0x3a2   : > { %8172 = vmatprep.subr.msk.bf16.mxu0 %vm1106_vm3, %v6374_v0  ;;  %v7194_v0 = vpop.f32.mrb[153].mxu1 }
 0x3a3   : > { %v9499_v12 = vadd.f32 %v7194_v0, %v7193_v57  ;;  %v7196_v16 = vpop.f32.mrb[154].mxu1 }
 0x3a8   : > { %7603 = vmatmul.mubr.msk.bf16.gmra.mrb[36].mxu0 %vm1093_vm4, %v10217_v31  ;;  %v7197_v31 = vpop.f32.mrb[155].mxu1 }
 0x3a9   : > { %7608 = vmatprep.mubr.msk.bf16.mxu0 %vm1093_vm4, %v10218_v36  ;;  %v9501_v36 = vadd.f32 %v7197_v31, %v7196_v16 }
 0x3b0   : > { %7609 = vmatmul.mubr.msk.bf16.vlgmr.msra.gmra.mrb[32].mxu0 %vm1093_vm4, %v10219_v34  ;;  %v7199_v34 = vpop.f32.mrb[156].mxu1 }
 0x3b1   : > { %7617 = vmatpush3.bf16.msra.mxu0 %v2636_v55  ;;  %7612 = vmatprep.mubr.msk.bf16.mxu0 %vm1093_vm4, %v10220_v4  ;;  %v7200_v4 = vpop.f32.mrb[157].mxu1  ;;  %v8403_v55 = vld [vmem:[%s10177_s2 + $0x3d0] ss:$8 sps:$4 sm:$0xff]  }
 0x3b2   : > { %7075 = vmatprep.subr.bf16.mxu0 %v8599_v24 }
 0x3b8   : > { %7613 = vmatmul.mubr.msk.bf16.gmra.mrb[36].mxu0 %vm1093_vm4, %v10221_v45  ;;  %v9505_v45 = vadd.f32 %v7200_v4, %v7199_v34 }
 0x3b9   : > { %7618 = vmatprep.mubr.msk.bf16.mxu0 %vm1093_vm4, %v10222_v52  ;;  %v7202_v52 = vpop.f32.mrb[158].mxu1 }
 0x3c0   : > { %7619 = vmatmul.mubr.msk.bf16.vlgmr.msra.gmra.mrb[32].mxu0 %vm1093_vm4, %v10223_v63  ;;  %v7203_v63 = vpop.f32.mrb[159].mxu1 }
 0x3c1   : > { %7076 = vmatpush3.bf16.msra.mxu0 %v8583_v32  ;;  %7622 = vmatprep.mubr.msk.bf16.mxu0 %vm1093_vm4, %v10224_v13  ;;  %v9507_v13 = vadd.f32 %v7203_v63, %v7202_v52 }
 0x3c2   : > { %7077 = vmatprep.subr.bf16.mxu0 %v8597_v22 }
 0x3c5   : > { %7078 = vmatpush3.bf16.msra.mxu0 %v8581_v30 }
 0x3c6   : > { %7079 = vmatprep.subr.bf16.mxu0 %v8607_v40 }
 0x3c8   : > { %7623 = vmatmul.mubr.msk.bf16.gmra.mrb[36].mxu0 %vm1093_vm4, %v10225_v21  ;;  %v7226_v21 = vpop.f32.mrb[160].mxu1 }
 0x3c9   : > { %7080 = vmatpush3.bf16.msra.mxu0 %v8587_v46  ;;  %2792 = vmatprep.mubr.bf16.mxu0 %v8370_v17  ;;  %v9512_v17 = vld [vmem:[%s10178_s3 + $0x28] sm:$0xf] }
 0x3ca   : > { %7081 = vmatprep.subr.bf16.mxu0 %v8604_v38 }
 0x3cd   : > { %7082 = vmatpush3.bf16.msra.mxu0 %v8585_v44 }
 0x3ce   : > { %7083 = vmatprep.subr.bf16.mxu0 %v8615_v56 }
 0x3d1   : > { %7084 = vmatpush3.bf16.msra.mxu0 %v8591_v60 }
 0x3d2   : > { %7085 = vmatprep.subr.bf16.mxu0 %v10226_v20 }
 0x3d5   : > { %7086 = vmatpush3.bf16.msra.mxu0 %v10227_v43 }
 0x3d6   : > { %7087 = vmatprep.subr.bf16.mxu0 %v10228_v27 }
 0x3d9   : > { %7088 = vmatpush3.bf16.msra.mxu0 %v10229_v47 }
 0x3da   : > { %7089 = vmatprep.subr.bf16.mxu0 %v10230_v2 }
 0x3dd   : > { %7090 = vmatpush3.bf16.msra.mxu0 %v10231_v3 }
 0x3de   : > { %8173 = vmatprep.subr.msk.bf16.mxu0 %vm1106_vm3, %v6395_v61 }
 0x3e0   : > { %2793 = vmatmul.mubr.bf16.vlgmr.msra.gmra.mrb[56].mxu0 %v8368_v28  ;;  %v7227_v28 = vpop.f32.mrb[161].mxu1 }
 0x3e1   : > { %2800 = vmatprep.mubr.bf16.mxu0 %v8371_v50  ;;  %7627 = vmatpush3.bf16.msra.mxu0 %v2844_v9 }
 0x3e2   : > { %8174 = vmatprep.subr.msk.bf16.mxu0 %vm1106_vm3, %v9512_v17 }
 0x3e8   : > { %2801 = vmatmul.mubr.bf16.gmra.mrb[60].mxu0 %v8373_v51  ;;  %v9518_v51 = vadd.f32 %v7227_v28, %v7226_v21 }
 0x3e9   : > { %2808 = vmatprep.mubr.bf16.mxu0 %v8374_v7  ;;  %v7229_v7 = vpop.f32.mrb[162].mxu1 }
 0x3f0   : > { %2809 = vmatmul.mubr.bf16.gmra.mrb[64].mxu0 %v8376_v15  ;;  %v7230_v15 = vpop.f32.mrb[163].mxu1 }
 0x3f1   : > { %2816 = vmatprep.mubr.bf16.mxu0 %v8377_v29  ;;  %v9520_v29 = vadd.f32 %v7230_v15, %v7229_v7 }
 0x3f8   : > { %2817 = vmatmul.mubr.bf16.gmra.mrb[68].mxu0 %v8379_v26  ;;  %v7232_v26 = vpop.f32.mrb[164].mxu1 }
 0x3f9   : > { %v7233_v62 = vpop.f32.mrb[165].mxu1 }
 0x3fa   : > { %v9524_v6 = vadd.f32 %v7233_v62, %v7232_v26  ;;  %v7235_v61 = vpop.f32.mrb[166].mxu1 }
 0x3fb   : > { %v7236_v10 = vpop.f32.mrb[167].mxu1 }
 0x3fc   : > { %v9526_v9 = vadd.f32 %v7236_v10, %v7235_v61  ;;  %v7238_v48 = vpop.f32.mrb[168].mxu1 }
 0x3fd   : > { %v7239_v53 = vpop.f32.mrb[169].mxu1 }
 0x3fe   : > { %v9530_v42 = vadd.f32 %v7239_v53, %v7238_v48  ;;  %v7241_v58 = vpop.f32.mrb[170].mxu1 }
 0x3ff   : > { %v7242_v57 = vpop.f32.mrb[171].mxu1 }
 0x400   : > { %v9532_v0 = vadd.f32 %v7242_v57, %v7241_v58  ;;  %v7244_v16 = vpop.f32.mrb[172].mxu1 }
 0x401   : > { %v7245_v31 = vpop.f32.mrb[173].mxu1 }
 0x402   : > { %v9536_v4 = vadd.f32 %v7245_v31, %v7244_v16  ;;  %v7247_v52 = vpop.f32.mrb[174].mxu1 }
 0x403   : > { %v7248_v63 = vpop.f32.mrb[175].mxu1 }
 0x404   : > { %v9538_v21 = vadd.f32 %v7248_v63, %v7247_v52  ;;  %v7271_v28 = vpop.f32.mrb[176].mxu1  ;;  %v8401_v63 = vld [vmem:[%s10177_s2 + $0x3d4] ss:$8 sps:$4 sm:$0xff]  }
 0x405   : > { %v7272_v7 = vpop.f32.mrb[177].mxu1 }
 0x406   : > { %v9542_v26 = vadd.f32 %v7272_v7, %v7271_v28  ;;  %v7274_v62 = vpop.f32.mrb[178].mxu1  ;;  %v10244_v18 = vpack.c.bf16 %v9538_v21, %v9536_v4 }
 0x407   : > { %v7275_v61 = vpop.f32.mrb[179].mxu1 }
 0x408   : > { %v9544_v10 = vadd.f32 %v7275_v61, %v7274_v62 }
 0x40a   : > { %v10245_v39 = vpack.c.bf16 %v9544_v10, %v9542_v26  ;;  %v6521_v10 = vld [vmem:[%s10178_s3 + $0x3c] sm:$0xf] }
 0x446   : > { %v7277_v48 = vpop.f32.mrb[180].mxu1 }
 0x447   : > { %v7278_v58 = vpop.f32.mrb[181].mxu1 }
 0x448   : > { %v9548_v57 = vadd.f32 %v7278_v58, %v7277_v48  ;;  %v7280_v16 = vpop.f32.mrb[182].mxu1 }
 0x449   : > { %v7281_v31 = vpop.f32.mrb[183].mxu1 }
 0x44a   : > { %v9550_v52 = vadd.f32 %v7281_v31, %v7280_v16 }
 0x44e   : > { %v7283_v28 = vpop.f32.mrb[184].mxu1 }
 0x44f   : > { %v7284_v7 = vpop.f32.mrb[185].mxu1 }
 0x450   : > { %v9554_v15 = vadd.f32 %v7284_v7, %v7283_v28  ;;  %v7286_v62 = vpop.f32.mrb[186].mxu1  ;;  %v8395_v7 = vld [vmem:[%s10177_s2 + $0x3c0] ss:$8 sps:$4 sm:$0xff]  }
 0x451   : > { %v7287_v61 = vpop.f32.mrb[187].mxu1 }
 0x452   : > { %v9556_v34 = vadd.f32 %v7287_v61, %v7286_v62  ;;  %v8397_v62 = vld [vmem:[%s10177_s2 + $0x3c4] ss:$8 sps:$4 sm:$0xff]  }
 0x453   : > { %4040 = vmatprep.mubr.bf16.mxu1 %v8397_v62 }
 0x454   : > { %4041 = vmatmul.mubr.bf16.vlgmr.msra.gmra.mrb[192].mxu1 %v8395_v7 }
 0x455   : > { %4048 = vmatprep.mubr.bf16.mxu1 %v8401_v63 }
 0x456   : > { %v7289_v48 = vpop.f32.mrb[188].mxu1 }
 0x457   : > { %v7290_v58 = vpop.f32.mrb[189].mxu1 }
 0x458   : > { %v9560_v37 = vadd.f32 %v7290_v58, %v7289_v48  ;;  %v7292_v16 = vpop.f32.mrb[190].mxu1 }
 0x459   : > { %v7293_v31 = vpop.f32.mrb[191].mxu1 }
 0x45a   : > { %v9562_v41 = vadd.f32 %v7293_v31, %v7292_v16 }
 0x45c   : > { %4049 = vmatmul.mubr.bf16.gmra.mrb[196].mxu1 %v8403_v55  ;;  %v8409_v55 = vld [vmem:[%s10177_s2 + $0x3e0] ss:$8 sps:$4 sm:$0xff]  }
 0x4b3   : > { %v7091_v28 = vpop.f32.mrb[56].mxu0 }
 0x4b4   : > { %v7092_v61 = vpop.f32.mrb[57].mxu0 }
 0x4b5   : > { %v7093_v53 = vadd.f32 %v7092_v61, %v7091_v28  ;;  %v7094_v48 = vpop.f32.mrb[58].mxu0 }
 0x4b6   : > { %v7095_v58 = vpop.f32.mrb[59].mxu0 }
 0x4b7   : > { %v7096_v16 = vadd.f32 %v7095_v58, %v7094_v48  ;;  %v6437_v48 = vld [vmem:[%s10178_s3 + $0x2c] sm:$0xf] }
 0x4b9   : > { %v2825_v31 = vpack.c.bf16 %v7096_v16, %v7093_v53  ;;  %v3052_v53 = vsel %vm1106_vm3, %v9512_v17, 0 }
 0x4bb   : > { %v7097_v50 = vpop.f32.mrb[60].mxu0  ;;  %7628 = vmatprep.mubr.msk.bf16.mxu0 %vm1093_vm4, %v2825_v31 }
 0x4bc   : > { %v7098_v1 = vpop.f32.mrb[61].mxu0 }
 0x4bd   : > { %v7099_v25 = vadd.f32 %v7098_v1, %v7097_v50  ;;  %v7100_v28 = vpop.f32.mrb[62].mxu0  ;;  %v8407_v1 = vld [vmem:[%s10177_s2 + $0x3e4] ss:$8 sps:$4 sm:$0xff]  }
 0x4be   : > { %v7101_v62 = vpop.f32.mrb[63].mxu0  ;;  %4056 = vmatprep.mubr.bf16.mxu1 %v8407_v1  ;;  %v10232_v1 = vld [vmem:[#allocation10_spill] sm:$0xff] }
 0x4bf   : > { %v7102_v7 = vadd.f32 %v7101_v62, %v7100_v28  ;;  %4057 = vmatmul.mubr.bf16.gmra.mrb[200].mxu1 %v8409_v55  ;;  %v8412_v62 = vld [vmem:[%s10177_s2 + $0x3f0] ss:$8 sps:$4 sm:$0xff]  }
 0x4c0   : > { %v10233_v55 = vld [vmem:[#allocation9_spill] sm:$0xff] }
 0x4c1   : > { %v2826_v61 = vpack.c.bf16 %v7102_v7, %v7099_v25  ;;  %v8410_v25 = vld [vmem:[%s10177_s2 + $0x3f4] ss:$8 sps:$4 sm:$0xff]  }
 0x4c2   : > { %4064 = vmatprep.mubr.bf16.mxu1 %v8410_v25  ;;  %v10234_v25 = vpack.c.bf16 %v10232_v1, %v10233_v55 }
 0x4c3   : > { %v7103_v58 = vpop.f32.mrb[64].mxu0  ;;  %7629 = vmatmul.mubr.msk.bf16.vlgmr.msra.gmra.mrb[32].mxu0 %vm1093_vm4, %v2826_v61 }
 0x4c4   : > { %v7104_v50 = vpop.f32.mrb[65].mxu0  ;;  %7637 = vmatpush3.bf16.msra.mxu0 %v3052_v53 }
 0x4c5   : > { %v7105_v17 = vadd.f32 %v7104_v50, %v7103_v58  ;;  %v7106_v63 = vpop.f32.mrb[66].mxu0  ;;  %8175 = vmatprep.subr.msk.bf16.mxu0 %vm1106_vm3, %v6437_v48 }
 0x4c6   : > { %v7107_v16 = vpop.f32.mrb[67].mxu0 }
 0x4c7   : > { %v7108_v31 = vadd.f32 %v7107_v16, %v7106_v63  ;;  %4065 = vmatmul.mubr.bf16.gmra.mrb[204].mxu1 %v8412_v62  ;;  %v6458_v63 = vld [vmem:[%s10178_s3 + $0x30] sm:$0xf] }
 0x4c8   : > { %v3468_v8 = vsel %vm1106_vm3, %v6458_v63, 0 }
 0x4c9   : > { %v2827_v28 = vpack.c.bf16 %v7108_v31, %v7105_v17  ;;  %v3260_v17 = vsel %vm1106_vm3, %v6437_v48, 0  ;;  %v10237_v48 = vpack.c.bf16 %v9489_v54, %v9485_v23  ;;  %v10242_v23 = vpack.c.bf16 %v9526_v9, %v9524_v6 }
 0x4ca   : > { %v10243_v54 = vpack.c.bf16 %v9532_v0, %v9530_v42 }
 0x4cb   : > { %v7109_v7 = vpop.f32.mrb[68].mxu0  ;;  %7632 = vmatprep.mubr.msk.bf16.mxu0 %vm1093_vm4, %v2827_v28 }
 0x4cc   : > { %v7110_v61 = vpop.f32.mrb[69].mxu0 }
 0x4cd   : > { %v7111_v53 = vadd.f32 %v7110_v61, %v7109_v7  ;;  %v7112_v49 = vpop.f32.mrb[70].mxu0 }
 0x4ce   : > { %v7113_v58 = vpop.f32.mrb[71].mxu0 }
 0x4cf   : > { %v7114_v50 = vadd.f32 %v7113_v58, %v7112_v49  ;;  %v10235_v49 = vpack.c.bf16 %v9350_v33, %v9348_v19  ;;  %v6479_v33 = vld [vmem:[%s10178_s3 + $0x34] sm:$0xf]  ;;  %v10240_v19 = vpack.c.bf16 %v9507_v13, %v9505_v45  ;;  %v10248_v45 = vpack.c.bf16 %v9562_v41, %v9560_v37 }
 0x4d1   : > { %v2828_v5 = vpack.c.bf16 %v7114_v50, %v7111_v53 }
 0x4d3   : > { %7633 = vmatmul.mubr.msk.bf16.gmra.mrb[36].mxu0 %vm1093_vm4, %v2828_v5  ;;  %v10236_v5 = vpack.c.bf16 %v9478_v59, %v9354_v11  ;;  %v10241_v11 = vpack.c.bf16 %v9520_v29, %v9518_v51  ;;  %v3676_v59 = vsel %vm1106_vm3, %v6479_v33, 0 }
 0x4d4   : > { %7638 = vmatprep.mubr.msk.bf16.mxu0 %vm1093_vm4, %v10234_v25 }
 0x4db   : > { %7639 = vmatmul.mubr.msk.bf16.vlgmr.msra.gmra.mrb[32].mxu0 %vm1093_vm4, %v3034_v14  ;;  %v10239_v14 = vpack.c.bf16 %v9501_v36, %v9499_v12  ;;  %v10246_v12 = vpack.c.bf16 %v9550_v52, %v9548_v57  ;;  %v8391_v36 = vld [vmem:[%s10177_s2 + $0x384] ss:$8 sps:$4 sm:$0xff]  }
 0x4dc   : > { %7642 = vmatprep.mubr.msk.bf16.mxu0 %vm1093_vm4, %v10235_v49  ;;  %7647 = vmatpush3.bf16.msra.mxu0 %v3260_v17 }
 0x4dd   : > { %8176 = vmatprep.subr.msk.bf16.mxu0 %vm1106_vm3, %v6458_v63 }
 0x4e3   : > { %7643 = vmatmul.mubr.msk.bf16.gmra.mrb[36].mxu0 %vm1093_vm4, %v10236_v5 }
 0x4e4   : > { %7648 = vmatprep.mubr.msk.bf16.mxu0 %vm1093_vm4, %v10237_v48 }
 0x4eb   : > { %7649 = vmatmul.mubr.msk.bf16.vlgmr.msra.gmra.mrb[32].mxu0 %vm1093_vm4, %v10238_v35 }
 0x4ec   : > { %7652 = vmatprep.mubr.msk.bf16.mxu0 %vm1093_vm4, %v10239_v14  ;;  %7657 = vmatpush3.bf16.msra.mxu0 %v3468_v8  ;;  %v4092_v14 = vsel %vm1106_vm3, %v6521_v10, 0 }
 0x4ed   : > { %8177 = vmatprep.subr.msk.bf16.mxu0 %vm1106_vm3, %v6479_v33 }
 0x4f3   : > { %7653 = vmatmul.mubr.msk.bf16.gmra.mrb[36].mxu0 %vm1093_vm4, %v10240_v19 }
 0x4f4   : > { %7658 = vmatprep.mubr.msk.bf16.mxu0 %vm1093_vm4, %v10241_v11 }
 0x4fb   : > { %7659 = vmatmul.mubr.msk.bf16.vlgmr.msra.gmra.mrb[32].mxu0 %vm1093_vm4, %v10242_v23 }
 0x4fc   : > { %7667 = vmatpush3.bf16.msra.mxu0 %v3676_v59  ;;  %7662 = vmatprep.mubr.msk.bf16.mxu0 %vm1093_vm4, %v10243_v54 }
 0x4fd   : > { %7300 = vmatprep.subr.bf16.mxu0 %v8599_v24  ;;  %v10247_v24 = vpack.c.bf16 %v9556_v34, %v9554_v15 }
 0x503   : > { %7663 = vmatmul.mubr.msk.bf16.gmra.mrb[36].mxu0 %vm1093_vm4, %v10244_v18 }
 0x504   : > { %7668 = vmatprep.mubr.msk.bf16.mxu0 %vm1093_vm4, %v10245_v39 }
 0x50b   : > { %7669 = vmatmul.mubr.msk.bf16.vlgmr.msra.gmra.mrb[32].mxu0 %vm1093_vm4, %v10246_v12 }
 0x50c   : > { %7301 = vmatpush3.bf16.msra.mxu0 %v8583_v32  ;;  %7672 = vmatprep.mubr.msk.bf16.mxu0 %vm1093_vm4, %v10247_v24  ;;  %v8392_v32 = vld [vmem:[%s10177_s2 + $0x394] ss:$8 sps:$4 sm:$0xff]  }
 0x50d   : > { %7302 = vmatprep.subr.bf16.mxu0 %v8597_v22  ;;  %v8404_v22 = vld [vmem:[%s10177_s2 + $0x3b4] ss:$8 sps:$4 sm:$0xff]  }
 0x510   : > { %7303 = vmatpush3.bf16.msra.mxu0 %v8581_v30  ;;  %v8389_v30 = vld [vmem:[%s10177_s2 + $0x380] ss:$8 sps:$4 sm:$0xff]  }
 0x511   : > { %7304 = vmatprep.subr.bf16.mxu0 %v8607_v40  ;;  %v6500_v40 = vld [vmem:[%s10178_s3 + $0x38] sm:$0xf] }
 0x513   : > { %7673 = vmatmul.mubr.msk.bf16.gmra.mrb[36].mxu0 %vm1093_vm4, %v10248_v45 }
 0x514   : > { %7305 = vmatpush3.bf16.msra.mxu0 %v8587_v46  ;;  %3832 = vmatprep.mubr.bf16.mxu0 %v8391_v36  ;;  %v8398_v46 = vld [vmem:[%s10177_s2 + $0x3a4] ss:$8 sps:$4 sm:$0xff]  }
 0x515   : > { %7306 = vmatprep.subr.bf16.mxu0 %v8604_v38  ;;  %v8406_v38 = vld [vmem:[%s10177_s2 + $0x3b0] ss:$8 sps:$4 sm:$0xff]  }
 0x518   : > { %7307 = vmatpush3.bf16.msra.mxu0 %v8585_v44  ;;  %v8394_v44 = vld [vmem:[%s10177_s2 + $0x390] ss:$8 sps:$4 sm:$0xff]  }
 0x519   : > { %7308 = vmatprep.subr.bf16.mxu0 %v8615_v56  ;;  %v3884_v56 = vsel %vm1106_vm3, %v6500_v40, 0 }
 0x51c   : > { %7309 = vmatpush3.bf16.msra.mxu0 %v8591_v60  ;;  %v8400_v60 = vld [vmem:[%s10177_s2 + $0x3a0] ss:$8 sps:$4 sm:$0xff]  }
 0x51d   : > { %7310 = vmatprep.subr.bf16.mxu0 %v10226_v20 }
 0x520   : > { %7311 = vmatpush3.bf16.msra.mxu0 %v10227_v43 }
 0x521   : > { %7312 = vmatprep.subr.bf16.mxu0 %v10228_v27 }
 0x524   : > { %7313 = vmatpush3.bf16.msra.mxu0 %v10229_v47 }
 0x525   : > { %7314 = vmatprep.subr.bf16.mxu0 %v10230_v2 }
 0x527   : > { %v7361_v20 = vpop.f32.mrb[192].mxu1 }
 0x528   : > { %7315 = vmatpush3.bf16.msra.mxu0 %v10231_v3  ;;  %v7362_v43 = vpop.f32.mrb[193].mxu1 }
 0x529   : > { %8178 = vmatprep.subr.msk.bf16.mxu0 %vm1106_vm3, %v6500_v40  ;;  %v9720_v27 = vadd.f32 %v7362_v43, %v7361_v20  ;;  %v7364_v47 = vpop.f32.mrb[194].mxu1 }
 0x52a   : > { %v7365_v2 = vpop.f32.mrb[195].mxu1 }
 0x52b   : > { %3833 = vmatmul.mubr.bf16.vlgmr.msra.gmra.mrb[72].mxu0 %v8389_v30  ;;  %v7366_v3 = vadd.f32 %v7365_v2, %v7364_v47 }
 0x52c   : > { %3840 = vmatprep.mubr.bf16.mxu0 %v8392_v32  ;;  %7677 = vmatpush3.bf16.msra.mxu0 %v3884_v56 }
 0x52d   : > { %v4073_v13 = vpack.c.bf16 %v7366_v3, %v9720_v27  ;;  %8179 = vmatprep.subr.msk.bf16.mxu0 %vm1106_vm3, %v6521_v10 }
 0x52f   : > { %v7367_v51 = vpop.f32.mrb[196].mxu1 }
 0x530   : > { %v7368_v29 = vpop.f32.mrb[197].mxu1 }
 0x531   : > { %v7369_v41 = vadd.f32 %v7368_v29, %v7367_v51  ;;  %v7370_v6 = vpop.f32.mrb[198].mxu1 }
 0x532   : > { %v7371_v9 = vpop.f32.mrb[199].mxu1 }
 0x533   : > { %3841 = vmatmul.mubr.bf16.gmra.mrb[76].mxu0 %v8394_v44  ;;  %v7372_v37 = vadd.f32 %v7371_v9, %v7370_v6 }
 0x534   : > { %3848 = vmatprep.mubr.bf16.mxu0 %v8398_v46 }
 0x535   : > { %v4074_v42 = vpack.c.bf16 %v7372_v37, %v7369_v41 }
 0x53b   : > { %3849 = vmatmul.mubr.bf16.gmra.mrb[80].mxu0 %v8400_v60 }
 0x53c   : > { %3856 = vmatprep.mubr.bf16.mxu0 %v8404_v22 }
 0x543   : > { %3857 = vmatmul.mubr.bf16.gmra.mrb[84].mxu0 %v8406_v38 }
 0x592   : > { %v7373_v0 = vpop.f32.mrb[200].mxu1 }
 0x593   : > { %v7374_v34 = vpop.f32.mrb[201].mxu1 }
 0x594   : > { %v7375_v4 = vadd.f32 %v7374_v34, %v7373_v0  ;;  %v7376_v21 = vpop.f32.mrb[202].mxu1 }
 0x595   : > { %v7377_v15 = vpop.f32.mrb[203].mxu1 }
 0x596   : > { %v7378_v26 = vadd.f32 %v7377_v15, %v7376_v21 }
 0x598   : > { %v4075_v57 = vpack.c.bf16 %v7378_v26, %v7375_v4 }
 0x59a   : > { %v7379_v52 = vpop.f32.mrb[204].mxu1 }
 0x59b   : > { %v7380_v16 = vpop.f32.mrb[205].mxu1 }
 0x59c   : > { %v7381_v31 = vadd.f32 %v7380_v16, %v7379_v52  ;;  %v7382_v28 = vpop.f32.mrb[206].mxu1 }
 0x59d   : > { %v7383_v62 = vpop.f32.mrb[207].mxu1 }
 0x59e   : > { %v7384_v7 = vadd.f32 %v7383_v62, %v7382_v28 }
 0x5a0   : > { %v4076_v61 = vpack.c.bf16 %v7384_v7, %v7381_v31 }
 0x5fe   : > { %v7316_v53 = vpop.f32.mrb[72].mxu0 }
 0x5ff   : > { %v7317_v58 = vpop.f32.mrb[73].mxu0 }
 0x600   : > { %v7318_v50 = vadd.f32 %v7317_v58, %v7316_v53  ;;  %v7319_v1 = vpop.f32.mrb[74].mxu0 }
 0x601   : > { %v7320_v55 = vpop.f32.mrb[75].mxu0 }
 0x602   : > { %v7321_v25 = vadd.f32 %v7320_v55, %v7319_v1 }
 0x604   : > { %v3865_v17 = vpack.c.bf16 %v7321_v25, %v7318_v50 }
 0x606   : > { %v7322_v63 = vpop.f32.mrb[76].mxu0  ;;  %7678 = vmatprep.mubr.msk.bf16.mxu0 %vm1093_vm4, %v3865_v17 }
 0x607   : > { %v7323_v49 = vpop.f32.mrb[77].mxu0 }
 0x608   : > { %v7324_v5 = vadd.f32 %v7323_v49, %v7322_v63  ;;  %v7325_v48 = vpop.f32.mrb[78].mxu0 }
 0x609   : > { %v7326_v8 = vpop.f32.mrb[79].mxu0 }
 0x60a   : > { %v7327_v33 = vadd.f32 %v7326_v8, %v7325_v48 }
 0x60c   : > { %v3866_v35 = vpack.c.bf16 %v7327_v33, %v7324_v5 }
 0x60e   : > { %v7328_v19 = vpop.f32.mrb[80].mxu0  ;;  %7679 = vmatmul.mubr.msk.bf16.vlgmr.msra.gmra.mrb[32].mxu0 %vm1093_vm4, %v3866_v35 }
 0x60f   : > { %v7329_v11 = vpop.f32.mrb[81].mxu0  ;;  %7687 = vmatpush3.bf16.msra.mxu0 %v4092_v14 }
 0x610   : > { %v7330_v59 = vadd.f32 %v7329_v11, %v7328_v19  ;;  %v7331_v23 = vpop.f32.mrb[82].mxu0 }
 0x611   : > { %v7332_v54 = vpop.f32.mrb[83].mxu0 }
 0x612   : > { %v7333_v18 = vadd.f32 %v7332_v54, %v7331_v23 }
 0x614   : > { %v3867_v39 = vpack.c.bf16 %v7333_v18, %v7330_v59 }
 0x616   : > { %v7334_v12 = vpop.f32.mrb[84].mxu0  ;;  %7682 = vmatprep.mubr.msk.bf16.mxu0 %vm1093_vm4, %v3867_v39 }
 0x617   : > { %v7335_v24 = vpop.f32.mrb[85].mxu0 }
 0x618   : > { %v7336_v36 = vadd.f32 %v7335_v24, %v7334_v12  ;;  %v7337_v45 = vpop.f32.mrb[86].mxu0 }
 0x619   : > { %v7338_v30 = vpop.f32.mrb[87].mxu0 }
 0x61a   : > { %v7339_v32 = vadd.f32 %v7338_v30, %v7337_v45 }
 0x61c   : > { %v3868_v44 = vpack.c.bf16 %v7339_v32, %v7336_v36 }
 0x61e   : > { %7683 = vmatmul.mubr.msk.bf16.gmra.mrb[36].mxu0 %vm1093_vm4, %v3868_v44 }
 0x61f   : > { %7688 = vmatprep.mubr.msk.bf16.mxu0 %vm1093_vm4, %v4073_v13 }
 0x626   : > { %7689 = vmatmul.mubr.msk.bf16.vlgmr.msra.gmra.mrb[32].mxu0 %vm1093_vm4, %v4074_v42 }
 0x627   : > { %7692 = vmatprep.mubr.msk.bf16.mxu0 %vm1093_vm4, %v4075_v57 }
 0x62e   : > { %7693 = vmatmul.mubr.msk.bf16.gmra.mrb[36].mxu0 %vm1093_vm4, %v4076_v61 }
 0x6f9   : > { %v7690_v46 = vpop.f32.mrb[32].mxu0 }
 0x6fa   : > { %v4128_v60 = vpop.f32.mrb[33].mxu0  ;;  %v4186_v43 = vsel %vm533_vm0, %v7690_v46, 0.0 }
 0x6fb   : > { %v7691_v22 = vpop.f32.mrb[34].mxu0  ;;  %v4183_v40 = vsel %vm533_vm0, %v4128_v60, 0.0 }
 0x6fc   : > { %v4131_v38 = vpop.f32.mrb[35].mxu0  ;;  %v4188_v47 = vsel %vm533_vm0, %v7691_v22, 0.0 }
 0x6fd   : > { %v4184_v56 = vsel %vm533_vm0, %v4131_v38, 0.0 }
 0x6fe   : > { %v4185_v20 = vadd.f32 %v4184_v56, %v4183_v40  ;;  %v8457_v56 = vmov 0.0  }
 0x6ff   : > { %7696 = vmatprep.subr.bf16.mxu1 %v8457_v56  ;;  %7720 = vmatprep.subr.bf16.mxu0 %v8457_v56 }
 0x700   : > { %v4187_v27 = vadd.f32 %v4186_v43, %v4185_v20  ;;  %7704 = vmatprep.mubr.msk.bf16.mxu1 %vm8458_vm5, %v8457_v56  ;;  %7722 = vmatprep.mubr.msk.bf16.mxu0 %vm8458_vm5, %v8457_v56 }
 0x701   : > { %v7694_v2 = vpop.f32.mrb[36].mxu0 }
 0x702   : > { %v4144_v3 = vpop.f32.mrb[37].mxu0  ;;  %v4189_v13 = vadd.f32 %v4188_v47, %v4187_v27  ;;  %v4194_v42 = vsel %vm533_vm0, %v7694_v2, 0.0  ;;  %v4167_v27 = vld [vmem:[%s10179_s4] sm:$0xff]  ;;  %v4168_v47 = vld [vmem:[%s10179_s4 + $0x8] sm:$0xff] }
 0x703   : > { %v4190_v51 = vsel %vm533_vm0, %v4144_v3, 0.0  ;;  %v7695_v29 = vpop.f32.mrb[38].mxu0 }
 0x704   : > { %v4191_v41 = vadd.f32 %v4190_v51, %v4189_v13  ;;  %v4147_v6 = vpop.f32.mrb[39].mxu0  ;;  %v4196_v34 = vsel %vm533_vm0, %v7695_v29, 0.0 }
 0x705   : > { %v4192_v9 = vsel %vm533_vm0, %v4147_v6, 0.0 }
 0x706   : > { %v4193_v37 = vadd.f32 %v4192_v9, %v4191_v41  ;;  %v4171_v9 = vld [vmem:[%s10179_s4 + $0x20] sm:$0xff] }
 0x708   : > { %v4195_v0 = vadd.f32 %v4194_v42, %v4193_v37  ;;  %v4175_v37 = vld [vmem:[%s10180_s5] sm:$0xff]  ;;  %v4176_v42 = vld [vmem:[%s10180_s5 + $0x8] sm:$0xff] }
 0x70a   : > { %v4197_v4 = vadd.f32 %v4196_v34, %v4195_v0 }
 0x70c   : > { %4198 = vadd.xlane.f32.xlu0 %v4197_v4  ;;  %v4172_v4 = vld [vmem:[%s10179_s4 + $0x28] sm:$0xff] }
 0x799   : > { %v4199_v21 = vpop.xlane.xlu0 %4198 }
 0x79a   : > { %v4200_v15 = vrot.slane %v4199_v21, 4 }
 0x79c   : > { %v4201_v26 = vadd.f32 %v4200_v15, %v4199_v21  ;;  %v4177_v21 = vld [vmem:[%s10180_s5 + $0x10] sm:$0xff]  ;;  %v4178_v15 = vld [vmem:[%s10180_s5 + $0x18] sm:$0xff] }
 0x79e   : > { %v4202_v10 = vrot.slane %v4201_v26, 2 }
 0x7a0   : > { %v4203_v57 = vadd.f32 %v4202_v10, %v4201_v26 }
 0x7a2   : > { %v4204_v52 = vrot.slane %v4203_v57, 1 }
 0x7a4   : > { %v4205_v16 = vadd.f32 %v4204_v52, %v4203_v57 }
 0x7a6   : > { %8180 = vpush %v4205_v16 }
 0x7d7   : > { %s8181_s29 = spop %8180 }
 0x7d8   : > { %s4209_s30 = smul.f32 0.0009765625, %s8181_s29 }
 0x7da   : > { %v4210_v31 = vstv %s4209_s30 }
 0x7db   : > { %v4211_v28 = vsub.f32 %v4128_v60, %v4210_v31  ;;  %v4212_v62 = vsub.f32 %v4131_v38, %v4210_v31  ;;  %v4213_v7 = vsub.f32 %v7690_v46, %v4210_v31  ;;  %v4214_v61 = vsub.f32 %v7691_v22, %v4210_v31 }
 0x7dc   : > { %v4215_v53 = vsub.f32 %v4144_v3, %v4210_v31  ;;  %v4216_v55 = vsub.f32 %v4147_v6, %v4210_v31  ;;  %v4217_v5 = vsub.f32 %v7694_v2, %v4210_v31  ;;  %v4218_v35 = vsub.f32 %v7695_v29, %v4210_v31  ;;  %v4169_v2 = vld [vmem:[%s10179_s4 + $0x10] sm:$0xff]  ;;  %v4170_v3 = vld [vmem:[%s10179_s4 + $0x18] sm:$0xff] }
 0x7dd   : > { %v4219_v58 = vmul.f32 %v4211_v28, %v4211_v28  ;;  %v4220_v50 = vmul.f32 %v4212_v62, %v4212_v62  ;;  %v4221_v1 = vmul.f32 %v4213_v7, %v4213_v7  ;;  %v4222_v25 = vmul.f32 %v4214_v61, %v4214_v61 }
 0x7de   : > { %v4223_v48 = vmul.f32 %v4215_v53, %v4215_v53  ;;  %v4224_v14 = vmul.f32 %v4216_v55, %v4216_v55  ;;  %v4225_v59 = vmul.f32 %v4217_v5, %v4217_v5  ;;  %v4226_v18 = vmul.f32 %v4218_v35, %v4218_v35 }
 0x7df   : > { %v4227_v17 = vsel %vm533_vm0, %v4219_v58, 0.0  ;;  %v4228_v63 = vsel %vm533_vm0, %v4220_v50, 0.0  ;;  %v4230_v8 = vsel %vm533_vm0, %v4221_v1, 0.0  ;;  %v4232_v19 = vsel %vm533_vm0, %v4222_v25, 0.0  ;;  %v4180_v25 = vld [vmem:[%s10180_s5 + $0x28] sm:$0xff] }
 0x7e0   : > { %v4229_v49 = vadd.f32 %v4228_v63, %v4227_v17  ;;  %v4234_v23 = vsel %vm533_vm0, %v4223_v48, 0.0  ;;  %v4236_v39 = vsel %vm533_vm0, %v4224_v14, 0.0  ;;  %v4238_v24 = vsel %vm533_vm0, %v4225_v59, 0.0  ;;  %v4181_v48 = vld [vmem:[%s10180_s5 + $0x30] sm:$0xff] }
 0x7e1   : > { %v4240_v45 = vsel %vm533_vm0, %v4226_v18, 0.0 }
 0x7e2   : > { %v4231_v33 = vadd.f32 %v4230_v8, %v4229_v49  ;;  %v4182_v8 = vld [vmem:[%s10180_s5 + $0x38] sm:$0xff] }
 0x7e4   : > { %v4233_v11 = vadd.f32 %v4232_v19, %v4231_v33 }
 0x7e6   : > { %v4235_v54 = vadd.f32 %v4234_v23, %v4233_v11 }
 0x7e8   : > { %v4237_v12 = vadd.f32 %v4236_v39, %v4235_v54 }
 0x7ea   : > { %v4239_v36 = vadd.f32 %v4238_v24, %v4237_v12 }
 0x7ec   : > { %v4241_v30 = vadd.f32 %v4240_v45, %v4239_v36 }
 0x7ee   : > { %4242 = vadd.xlane.f32.xlu0 %v4241_v30 }
 0x87b   : > { %v4243_v32 = vpop.xlane.xlu0 %4242 }
 0x87c   : > { %v4244_v44 = vrot.slane %v4243_v32, 4 }
 0x87e   : > { %v4245_v46 = vadd.f32 %v4244_v44, %v4243_v32 }
 0x880   : > { %v4246_v60 = vrot.slane %v4245_v46, 2 }
 0x882   : > { %v4247_v22 = vadd.f32 %v4246_v60, %v4245_v46 }
 0x884   : > { %v4248_v38 = vrot.slane %v4247_v22, 1 }
 0x886   : > { %v4249_v40 = vadd.f32 %v4248_v38, %v4247_v22 }
 0x888   : > { %8182 = vpush %v4249_v40 }
 0x8b9   : > { %s8183_s13 = spop %8182 }
 0x8ba   : > { %s4253_s14 = smul.f32 0.0009765625, %s8183_s13 }
 0x8bc   : > { %s4254_s15 = sadd.f32 1e-05, %s4253_s14 }
 0x8be   : > { %v4255_v20 = vstv %s4254_s15 }
 0x8bf   : > { %8445 = vrsqrt.f32 %v4255_v20  ;;  %v8413_v20 = vld [vmem:[%s10181_s6] sm:$0xff]  }
 0x8c9   : > { %v8446_v43 = vpop.eup %8445 }
 0x8ca   : > { %8184 = vpush %v8446_v43  ;;  %v8414_v43 = vld [vmem:[%s10181_s6 + $0x8] sm:$0xff]  }
 0x8fb   : > { %s8185_s18 = spop %8184 }
 0x8fc   : > { %v4258_v13 = vstv %s8185_s18 }
 0x8fd   : > { %v4259_v51 = vmul.f32 %v4258_v13, %v4211_v28  ;;  %v4260_v29 = vmul.f32 %v4258_v13, %v4212_v62  ;;  %v4261_v41 = vmul.f32 %v4258_v13, %v4213_v7  ;;  %v4262_v6 = vmul.f32 %v4258_v13, %v4214_v61  ;;  %v4173_v7 = vld [vmem:[%s10179_s4 + $0x30] sm:$0xff]  ;;  %v4174_v61 = vld [vmem:[%s10179_s4 + $0x38] sm:$0xff] }
 0x8fe   : > { %v4263_v0 = vmul.f32 %v4258_v13, %v4215_v53  ;;  %v4264_v34 = vmul.f32 %v4258_v13, %v4216_v55  ;;  %v4265_v16 = vmul.f32 %v4258_v13, %v4217_v5  ;;  %v4266_v31 = vmul.f32 %v4258_v13, %v4218_v35  ;;  %v4179_v55 = vld [vmem:[%s10180_s5 + $0x20] sm:$0xff]  ;;  %v8419_v13 = vld [vmem:[%s10181_s6 + $0x38] sm:$0xff]  }
 0x8ff   : > { %v4267_v26 = vmul.f32 %v4259_v51, %v4167_v27  ;;  %v4268_v10 = vmul.f32 %v4260_v29, %v4168_v47  ;;  %v4269_v57 = vmul.f32 %v4261_v41, %v4169_v2  ;;  %v4270_v52 = vmul.f32 %v4262_v6, %v4170_v3  ;;  %v8415_v27 = vld [vmem:[%s10181_s6 + $0x10] sm:$0xff]   ;;  %v8416_v47 = vld [vmem:[%s10181_s6 + $0x18] sm:$0xff]   ;;  %v8417_v2 = vld [vmem:[%s10181_s6 + $0x28] sm:$0xff]  }
 0x900   : > { %v4271_v53 = vmul.f32 %v4263_v0, %v4171_v9  ;;  %v4272_v58 = vmul.f32 %v4264_v34, %v4172_v4  ;;  %v4273_v17 = vmul.f32 %v4265_v16, %v4173_v7  ;;  %v4274_v63 = vmul.f32 %v4266_v31, %v4174_v61  ;;  %v8418_v3 = vld [vmem:[%s10181_s6 + $0x30] sm:$0xff]   ;;  %v8425_v51 = vld [vmem:[%s10182_s7 + $0x8] sm:$0xff]   ;;  %v8422_v6 = vld [vmem:[%s10181_s6 + $0x58] sm:$0xff]  }
 0x901   : > { %v4275_v28 = vadd.f32 %v4267_v26, %v4175_v37  ;;  %v4276_v62 = vadd.f32 %v4268_v10, %v4176_v42  ;;  %v4277_v50 = vadd.f32 %v4269_v57, %v4177_v21  ;;  %v4278_v1 = vadd.f32 %v4270_v52, %v4178_v15  ;;  %7721 = vmatpush3.bf16.msra.mxu0 %v8425_v51  ;;  %v8420_v29 = vld [vmem:[%s10181_s6 + $0x48] sm:$0xff]   ;;  %v8421_v41 = vld [vmem:[%s10181_s6 + $0x50] sm:$0xff]   ;;  %v8426_v57 = vld [vmem:[%s10182_s7] sm:$0xff]  }
 0x902   : > { %v4279_v33 = vadd.f32 %v4271_v53, %v4179_v55  ;;  %v4280_v35 = vadd.f32 %v4272_v58, %v4180_v25  ;;  %v4281_v23 = vadd.f32 %v4273_v17, %v4181_v48  ;;  %v4282_v54 = vadd.f32 %v4274_v63, %v4182_v8  ;;  %7726 = vmatprep.subr.bf16.mxu0 %v8457_v56  ;;  %v8423_v9 = vld [vmem:[%s10181_s6 + $0x68] sm:$0xff]   ;;  %v8424_v37 = vld [vmem:[%s10181_s6 + $0x70] sm:$0xff]   ;;  %v8428_v58 = vld [vmem:[%s10182_s7 + $0x18] sm:$0xff]  }
 0x903   : > { %vm4283_vm6 = vcmp.ge.f32.partialorder %v4275_v28, 0.0  ;;  %vm4284_vm7 = vcmp.ge.f32.partialorder %v4276_v62, 0.0  ;;  %v4291_v49 = vmul.f32 0.2, %v4275_v28  ;;  %v4292_v5 = vmul.f32 0.2, %v4276_v62 }
 0x904   : > { %v4293_v14 = vmul.f32 0.2, %v4277_v50  ;;  %v4294_v19 = vmul.f32 0.2, %v4278_v1  ;;  %vm4285_vm8 = vcmp.ge.f32.partialorder %v4277_v50, 0.0  ;;  %vm4286_vm9 = vcmp.ge.f32.partialorder %v4278_v1, 0.0 }
 0x905   : > { %v4299_v11 = vsel %vm4283_vm6, %v4275_v28, %v4291_v49  ;;  %v4300_v59 = vsel %vm4284_vm7, %v4276_v62, %v4292_v5  ;;  %v4295_v39 = vmul.f32 0.2, %v4279_v33  ;;  %v4296_v12 = vmul.f32 0.2, %v4280_v35  ;;  %v8427_v31 = vld [vmem:[%s10182_s7 + $0x10] sm:$0xff]   ;;  %v8429_v63 = vld [vmem:[%s10181_s6 + $0x20] sm:$0xff]  }
 0x906   : > { %v9806_v18 = vpack.c.bf16 %v4300_v59, %v4299_v11  ;;  %v4301_v24 = vsel %vm4285_vm8, %v4277_v50, %v4293_v14  ;;  %v4302_v36 = vsel %vm4286_vm9, %v4278_v1, %v4294_v19  ;;  %vm4287_vm10 = vcmp.ge.f32.partialorder %v4279_v33, 0.0  ;;  %v8430_v49 = vld [vmem:[%s10182_s7 + $0x20] sm:$0xff]  }
 0x907   : > { %vm4288_vm11 = vcmp.ge.f32.partialorder %v4280_v35, 0.0  ;;  %v9810_v45 = vpack.c.bf16 %v4302_v36, %v4301_v24  ;;  %v4297_v30 = vmul.f32 0.2, %v4281_v23  ;;  %v4298_v32 = vmul.f32 0.2, %v4282_v54 }
 0x908   : > { %7697 = vmatpush3.bf16.msra.mxu1 %v9806_v18  ;;  %v4303_v44 = vsel %vm4287_vm10, %v4279_v33, %v4295_v39  ;;  %v4304_v46 = vsel %vm4288_vm11, %v4280_v35, %v4296_v12  ;;  %vm4289_vm12 = vcmp.ge.f32.partialorder %v4281_v23, 0.0  ;;  %vm4290_vm13 = vcmp.ge.f32.partialorder %v4282_v54, 0.0 }
 0x909   : > { %7698 = vmatprep.subr.bf16.mxu1 %v8457_v56  ;;  %v9814_v60 = vpack.c.bf16 %v4304_v46, %v4303_v44  ;;  %v4305_v22 = vsel %vm4289_vm12, %v4281_v23, %v4297_v30  ;;  %v4306_v38 = vsel %vm4290_vm13, %v4282_v54, %v4298_v32  ;;  %v8431_v46 = vld [vmem:[%s10182_s7 + $0x28] sm:$0xff]  }
 0x90a   : > { %v9818_v40 = vpack.c.bf16 %v4306_v38, %v4305_v22 }
 0x90c   : > { %7699 = vmatpush3.bf16.msra.mxu1 %v9810_v45 }
 0x90d   : > { %7700 = vmatprep.subr.bf16.mxu1 %v8457_v56 }
 0x910   : > { %7701 = vmatpush3.bf16.msra.mxu1 %v9814_v60 }
 0x911   : > { %7702 = vmatprep.subr.bf16.mxu1 %v8457_v56 }
 0x914   : > { %7703 = vmatpush3.bf16.msra.mxu1 %v9818_v40 }
 0x915   : > { %7708 = vmatprep.subr.bf16.mxu1 %v8457_v56 }
 0x917   : > { %7705 = vmatmul.mubr.msk.bf16.vlgmr.msra.gmra.mrb[208].mxu1 %vm4318_vm14, %v8413_v20  ;;  %v8432_v20 = vld [vmem:[%s10182_s7 + $0x30] sm:$0xff]  }
 0x918   : > { %7709 = vmatpush3.bf16.msra.mxu1 %v9806_v18  ;;  %7716 = vmatprep.mubr.msk.bf16.mxu1 %vm8458_vm5, %v8457_v56 }
 0x919   : > { %7710 = vmatprep.subr.bf16.mxu1 %v8457_v56 }
 0x91c   : > { %7711 = vmatpush3.bf16.msra.mxu1 %v9810_v45 }
 0x91d   : > { %7712 = vmatprep.subr.bf16.mxu1 %v8457_v56 }
 0x920   : > { %7713 = vmatpush3.bf16.msra.mxu1 %v9814_v60 }
 0x921   : > { %7714 = vmatprep.subr.bf16.mxu1 %v8457_v56 }
 0x924   : > { %7715 = vmatpush3.bf16.msra.mxu1 %v9818_v40 }
 0x925   : > { %7732 = vmatprep.subr.bf16.mxu1 %v8457_v56 }
 0x927   : > { %7717 = vmatmul.mubr.msk.bf16.vlgmr.msra.gmra.mrb[212].mxu1 %vm4318_vm14, %v8414_v43  ;;  %v8433_v43 = vld [vmem:[%s10182_s7 + $0x38] sm:$0xff]  }
 0x928   : > { %7733 = vmatpush3.bf16.msra.mxu1 %v9806_v18  ;;  %7740 = vmatprep.mubr.msk.bf16.mxu1 %vm8458_vm5, %v8457_v56 }
 0x929   : > { %7734 = vmatprep.subr.bf16.mxu1 %v8457_v56 }
 0x92c   : > { %7735 = vmatpush3.bf16.msra.mxu1 %v9810_v45 }
 0x92d   : > { %7736 = vmatprep.subr.bf16.mxu1 %v8457_v56 }
 0x930   : > { %7737 = vmatpush3.bf16.msra.mxu1 %v9814_v60 }
 0x931   : > { %7738 = vmatprep.subr.bf16.mxu1 %v8457_v56 }
 0x934   : > { %7739 = vmatpush3.bf16.msra.mxu1 %v9818_v40 }
 0x935   : > { %7750 = vmatprep.subr.bf16.mxu1 %v8457_v56 }
 0x937   : > { %7741 = vmatmul.mubr.msk.bf16.vlgmr.msra.gmra.mrb[216].mxu1 %vm4318_vm14, %v8415_v27  ;;  %v8434_v27 = vld [vmem:[%s10181_s6 + $0x40] sm:$0xff]  }
 0x938   : > { %7751 = vmatpush3.bf16.msra.mxu1 %v9806_v18  ;;  %7758 = vmatprep.mubr.msk.bf16.mxu1 %vm8458_vm5, %v8457_v56 }
 0x939   : > { %7752 = vmatprep.subr.bf16.mxu1 %v8457_v56 }
 0x93c   : > { %7753 = vmatpush3.bf16.msra.mxu1 %v9810_v45 }
 0x93d   : > { %7754 = vmatprep.subr.bf16.mxu1 %v8457_v56 }
 0x940   : > { %7755 = vmatpush3.bf16.msra.mxu1 %v9814_v60 }
 0x941   : > { %7756 = vmatprep.subr.bf16.mxu1 %v8457_v56 }
 0x944   : > { %7757 = vmatpush3.bf16.msra.mxu1 %v9818_v40 }
 0x945   : > { %7786 = vmatprep.subr.bf16.mxu1 %v8457_v56 }
 0x947   : > { %7759 = vmatmul.mubr.msk.bf16.vlgmr.msra.gmra.mrb[220].mxu1 %vm4318_vm14, %v8416_v47  ;;  %v8435_v47 = vld [vmem:[%s10182_s7 + $0x40] sm:$0xff]  }
 0x948   : > { %7787 = vmatpush3.bf16.msra.mxu1 %v9806_v18  ;;  %7794 = vmatprep.mubr.msk.bf16.mxu1 %vm8458_vm5, %v8457_v56 }
 0x949   : > { %7788 = vmatprep.subr.bf16.mxu1 %v8457_v56 }
 0x94c   : > { %7789 = vmatpush3.bf16.msra.mxu1 %v9810_v45 }
 0x94d   : > { %7790 = vmatprep.subr.bf16.mxu1 %v8457_v56 }
 0x950   : > { %7791 = vmatpush3.bf16.msra.mxu1 %v9814_v60 }
 0x951   : > { %7792 = vmatprep.subr.bf16.mxu1 %v8457_v56 }
 0x954   : > { %7793 = vmatpush3.bf16.msra.mxu1 %v9818_v40 }
 0x955   : > { %7804 = vmatprep.subr.bf16.mxu1 %v8457_v56 }
 0x957   : > { %7795 = vmatmul.mubr.msk.bf16.vlgmr.msra.gmra.mrb[224].mxu1 %vm4318_vm14, %v8417_v2 }
 0x958   : > { %7805 = vmatpush3.bf16.msra.mxu1 %v9806_v18  ;;  %7812 = vmatprep.mubr.msk.bf16.mxu1 %vm8458_vm5, %v8457_v56 }
 0x959   : > { %7806 = vmatprep.subr.bf16.mxu1 %v8457_v56 }
 0x95c   : > { %7807 = vmatpush3.bf16.msra.mxu1 %v9810_v45 }
 0x95d   : > { %7808 = vmatprep.subr.bf16.mxu1 %v8457_v56 }
 0x960   : > { %7809 = vmatpush3.bf16.msra.mxu1 %v9814_v60 }
 0x961   : > { %7810 = vmatprep.subr.bf16.mxu1 %v8457_v56 }
 0x964   : > { %7811 = vmatpush3.bf16.msra.mxu1 %v9818_v40 }
 0x965   : > { %7822 = vmatprep.subr.bf16.mxu1 %v8457_v56 }
 0x967   : > { %7813 = vmatmul.mubr.msk.bf16.vlgmr.msra.gmra.mrb[228].mxu1 %vm4318_vm14, %v8418_v3 }
 0x968   : > { %7823 = vmatpush3.bf16.msra.mxu1 %v9806_v18  ;;  %7830 = vmatprep.mubr.msk.bf16.mxu1 %vm8458_vm5, %v8457_v56 }
 0x969   : > { %7824 = vmatprep.subr.bf16.mxu1 %v8457_v56 }
 0x96c   : > { %7825 = vmatpush3.bf16.msra.mxu1 %v9810_v45 }
 0x96d   : > { %7826 = vmatprep.subr.bf16.mxu1 %v8457_v56 }
 0x970   : > { %7827 = vmatpush3.bf16.msra.mxu1 %v9814_v60 }
 0x971   : > { %7828 = vmatprep.subr.bf16.mxu1 %v8457_v56 }
 0x974   : > { %7829 = vmatpush3.bf16.msra.mxu1 %v9818_v40 }
 0x975   : > { %7858 = vmatprep.subr.bf16.mxu1 %v8457_v56 }
 0x977   : > { %7831 = vmatmul.mubr.msk.bf16.vlgmr.msra.gmra.mrb[232].mxu1 %vm4318_vm14, %v8419_v13 }
 0x978   : > { %7859 = vmatpush3.bf16.msra.mxu1 %v9806_v18  ;;  %7866 = vmatprep.mubr.msk.bf16.mxu1 %vm8458_vm5, %v8457_v56 }
 0x979   : > { %7860 = vmatprep.subr.bf16.mxu1 %v8457_v56 }
 0x97c   : > { %7861 = vmatpush3.bf16.msra.mxu1 %v9810_v45 }
 0x97d   : > { %7862 = vmatprep.subr.bf16.mxu1 %v8457_v56 }
 0x980   : > { %7863 = vmatpush3.bf16.msra.mxu1 %v9814_v60 }
 0x981   : > { %7864 = vmatprep.subr.bf16.mxu1 %v8457_v56 }
 0x984   : > { %7865 = vmatpush3.bf16.msra.mxu1 %v9818_v40 }
 0x985   : > { %7876 = vmatprep.subr.bf16.mxu1 %v8457_v56 }
 0x987   : > { %7867 = vmatmul.mubr.msk.bf16.vlgmr.msra.gmra.mrb[236].mxu1 %vm4318_vm14, %v8420_v29 }
 0x988   : > { %7877 = vmatpush3.bf16.msra.mxu1 %v9806_v18  ;;  %7884 = vmatprep.mubr.msk.bf16.mxu1 %vm8458_vm5, %v8457_v56 }
 0x989   : > { %7878 = vmatprep.subr.bf16.mxu1 %v8457_v56 }
 0x98c   : > { %7879 = vmatpush3.bf16.msra.mxu1 %v9810_v45 }
 0x98d   : > { %7880 = vmatprep.subr.bf16.mxu1 %v8457_v56 }
 0x990   : > { %7881 = vmatpush3.bf16.msra.mxu1 %v9814_v60 }
 0x991   : > { %7882 = vmatprep.subr.bf16.mxu1 %v8457_v56 }
 0x994   : > { %7883 = vmatpush3.bf16.msra.mxu1 %v9818_v40 }
 0x995   : > { %7894 = vmatprep.subr.bf16.mxu1 %v8457_v56 }
 0x997   : > { %7885 = vmatmul.mubr.msk.bf16.vlgmr.msra.gmra.mrb[240].mxu1 %vm4318_vm14, %v8421_v41 }
 0x998   : > { %7895 = vmatpush3.bf16.msra.mxu1 %v9806_v18  ;;  %7902 = vmatprep.mubr.msk.bf16.mxu1 %vm8458_vm5, %v8457_v56 }
 0x999   : > { %7896 = vmatprep.subr.bf16.mxu1 %v8457_v56 }
 0x99c   : > { %7897 = vmatpush3.bf16.msra.mxu1 %v9810_v45 }
 0x99d   : > { %7898 = vmatprep.subr.bf16.mxu1 %v8457_v56 }
 0x9a0   : > { %7899 = vmatpush3.bf16.msra.mxu1 %v9814_v60 }
 0x9a1   : > { %7900 = vmatprep.subr.bf16.mxu1 %v8457_v56 }
 0x9a4   : > { %7901 = vmatpush3.bf16.msra.mxu1 %v9818_v40 }
 0x9a5   : > { %7930 = vmatprep.subr.bf16.mxu1 %v8457_v56 }
 0x9a7   : > { %7903 = vmatmul.mubr.msk.bf16.vlgmr.msra.gmra.mrb[244].mxu1 %vm4318_vm14, %v8422_v6 }
 0x9a8   : > { %7931 = vmatpush3.bf16.msra.mxu1 %v9806_v18  ;;  %7938 = vmatprep.mubr.msk.bf16.mxu1 %vm8458_vm5, %v8457_v56 }
 0x9a9   : > { %7932 = vmatprep.subr.bf16.mxu1 %v8457_v56 }
 0x9ac   : > { %7933 = vmatpush3.bf16.msra.mxu1 %v9810_v45 }
 0x9ad   : > { %7934 = vmatprep.subr.bf16.mxu1 %v8457_v56 }
 0x9b0   : > { %7935 = vmatpush3.bf16.msra.mxu1 %v9814_v60 }
 0x9b1   : > { %7936 = vmatprep.subr.bf16.mxu1 %v8457_v56 }
 0x9b4   : > { %7937 = vmatpush3.bf16.msra.mxu1 %v9818_v40 }
 0x9b5   : > { %7948 = vmatprep.subr.bf16.mxu1 %v8457_v56 }
 0x9b7   : > { %7939 = vmatmul.mubr.msk.bf16.vlgmr.msra.gmra.mrb[248].mxu1 %vm4318_vm14, %v8423_v9 }
 0x9b8   : > { %7949 = vmatpush3.bf16.msra.mxu1 %v9806_v18  ;;  %7956 = vmatprep.mubr.msk.bf16.mxu1 %vm8458_vm5, %v8457_v56 }
 0x9b9   : > { %7950 = vmatprep.subr.bf16.mxu1 %v8457_v56 }
 0x9bc   : > { %7951 = vmatpush3.bf16.msra.mxu1 %v9810_v45 }
 0x9bd   : > { %7952 = vmatprep.subr.bf16.mxu1 %v8457_v56 }
 0x9c0   : > { %7953 = vmatpush3.bf16.msra.mxu1 %v9814_v60 }
 0x9c1   : > { %7954 = vmatprep.subr.bf16.mxu1 %v8457_v56 }
 0x9c4   : > { %7955 = vmatpush3.bf16.msra.mxu1 %v9818_v40 }
 0x9c5   : > { %7966 = vmatprep.subr.bf16.mxu1 %v8457_v56 }
 0x9c7   : > { %7957 = vmatmul.mubr.msk.bf16.vlgmr.msra.gmra.mrb[252].mxu1 %vm4318_vm14, %v8424_v37 }
 0x9c8   : > { %7967 = vmatpush3.bf16.msra.mxu1 %v9806_v18  ;;  %7974 = vmatprep.mubr.msk.bf16.mxu1 %vm8458_vm5, %v8457_v56 }
 0x9c9   : > { %7968 = vmatprep.subr.bf16.mxu1 %v8457_v56 }
 0x9cc   : > { %7969 = vmatpush3.bf16.msra.mxu1 %v9810_v45 }
 0x9cd   : > { %7970 = vmatprep.subr.bf16.mxu1 %v8457_v56 }
 0x9d0   : > { %7971 = vmatpush3.bf16.msra.mxu1 %v9814_v60 }
 0x9d1   : > { %7972 = vmatprep.subr.bf16.mxu1 %v8457_v56 }
 0x9d4   : > { %7973 = vmatpush3.bf16.msra.mxu1 %v9818_v40 }
 0x9ea   : > { %v4356_v42 = vpop.f32.mrb[208].mxu1 }
 0x9eb   : > { %v7706_v0 = vpop.f32.mrb[209].mxu1 }
 0x9ec   : > { %v4359_v34 = vpop.f32.mrb[210].mxu1 }
 0x9ed   : > { %v4363_v4 = vpack.c.bf16 %v4359_v34, %v4356_v42  ;;  %v7707_v21 = vpop.f32.mrb[211].mxu1 }
 0x9fa   : > { %v4411_v15 = vpop.f32.mrb[212].mxu1 }
 0x9fb   : > { %v7718_v26 = vpop.f32.mrb[213].mxu1 }
 0x9fc   : > { %v4414_v10 = vpop.f32.mrb[214].mxu1  ;;  %v8440_v26 = vld [vmem:[%s10181_s6 + $0x78] sm:$0xff]  }
 0x9fd   : > { %v4418_v52 = vpack.c.bf16 %v4414_v10, %v4411_v15  ;;  %v7719_v16 = vpop.f32.mrb[215].mxu1  ;;  %7975 = vmatmul.mubr.msk.bf16.vlgmr.msra.gmra.mrb[0].mxu1 %vm4318_vm14, %v8440_v26 }
 0x9fe   : > { %v8436_v16 = vld [vmem:[%s10182_s7 + $0x48] sm:$0xff]  }
 0x9ff   : > { %7723 = vmatmul.mubr.msk.bf16.vlgmr.msra.gmra.mrb[88].mxu0 %vm533_vm0, %v4418_v52 }
 0xa00   : > { %7727 = vmatpush3.bf16.msra.mxu0 %v8426_v57  ;;  %7728 = vmatprep.mubr.msk.bf16.mxu0 %vm8458_vm5, %v8457_v56 }
 0xa01   : > { %7744 = vmatprep.subr.bf16.mxu0 %v8457_v56 }
 0xa0a   : > { %v4567_v28 = vpop.f32.mrb[216].mxu1 }
 0xa0b   : > { %7729 = vmatmul.mubr.msk.bf16.vlgmr.msra.gmra.mrb[88].mxu0 %vm533_vm0, %v4363_v4  ;;  %v7742_v62 = vpop.f32.mrb[217].mxu1 }
 0xa0c   : > { %v4570_v7 = vpop.f32.mrb[218].mxu1  ;;  %7745 = vmatpush3.bf16.msra.mxu0 %v8427_v31  ;;  %7746 = vmatprep.mubr.msk.bf16.mxu0 %vm8458_vm5, %v8457_v56  ;;  %v8437_v62 = vld [vmem:[%s10182_s7 + $0x50] sm:$0xff]  }
 0xa0d   : > { %v4574_v61 = vpack.c.bf16 %v4570_v7, %v4567_v28  ;;  %v7743_v53 = vpop.f32.mrb[219].mxu1  ;;  %7762 = vmatprep.subr.bf16.mxu0 %v8457_v56  ;;  %v8438_v7 = vld [vmem:[%s10182_s7 + $0x58] sm:$0xff]  }
 0xa17   : > { %7747 = vmatmul.mubr.msk.bf16.vlgmr.msra.gmra.mrb[88].mxu0 %vm533_vm0, %v4574_v61  ;;  %v8439_v61 = vld [vmem:[%s10181_s6 + $0x60] sm:$0xff]  }
 0xa18   : > { %7763 = vmatpush3.bf16.msra.mxu0 %v8428_v58  ;;  %7764 = vmatprep.mubr.msk.bf16.mxu0 %vm8458_vm5, %v8457_v56 }
 0xa19   : > { %7768 = vmatprep.subr.bf16.mxu0 %v8457_v56 }
 0xa1a   : > { %v4675_v50 = vpop.f32.mrb[220].mxu1 }
 0xa1b   : > { %v7760_v1 = vpop.f32.mrb[221].mxu1 }
 0xa1c   : > { %v4678_v55 = vpop.f32.mrb[222].mxu1 }
 0xa1d   : > { %v4682_v25 = vpack.c.bf16 %v4678_v55, %v4675_v50  ;;  %v7761_v17 = vpop.f32.mrb[223].mxu1 }
 0xa23   : > { %7765 = vmatmul.mubr.msk.bf16.vlgmr.msra.gmra.mrb[88].mxu0 %vm533_vm0, %v4682_v25 }
 0xa24   : > { %7769 = vmatpush3.bf16.msra.mxu0 %v9806_v18  ;;  %7776 = vmatprep.mubr.msk.bf16.mxu0 %vm8458_vm5, %v8457_v56 }
 0xa25   : > { %7770 = vmatprep.subr.bf16.mxu0 %v8457_v56 }
 0xa28   : > { %7771 = vmatpush3.bf16.msra.mxu0 %v9810_v45 }
 0xa29   : > { %7772 = vmatprep.subr.bf16.mxu0 %v8457_v56 }
 0xa2a   : > { %v4891_v5 = vpop.f32.mrb[224].mxu1 }
 0xa2b   : > { %v7796_v48 = vpop.f32.mrb[225].mxu1 }
 0xa2c   : > { %7773 = vmatpush3.bf16.msra.mxu0 %v9814_v60  ;;  %v4894_v8 = vpop.f32.mrb[226].mxu1 }
 0xa2d   : > { %7774 = vmatprep.subr.bf16.mxu0 %v8457_v56  ;;  %v4898_v33 = vpack.c.bf16 %v4894_v8, %v4891_v5  ;;  %v7797_v35 = vpop.f32.mrb[227].mxu1 }
 0xa30   : > { %7775 = vmatpush3.bf16.msra.mxu0 %v9818_v40 }
 0xa31   : > { %7780 = vmatprep.subr.bf16.mxu0 %v8457_v56 }
 0xa33   : > { %7777 = vmatmul.mubr.msk.bf16.vlgmr.msra.gmra.mrb[92].mxu0 %vm4318_vm14, %v8429_v63 }
 0xa34   : > { %7782 = vmatprep.mubr.msk.bf16.mxu0 %vm8458_vm5, %v8457_v56  ;;  %7781 = vmatpush3.bf16.msra.mxu0 %v8430_v49 }
 0xa35   : > { %7798 = vmatprep.subr.bf16.mxu0 %v8457_v56 }
 0xa3a   : > { %v4999_v14 = vpop.f32.mrb[228].mxu1 }
 0xa3b   : > { %v7814_v19 = vpop.f32.mrb[229].mxu1 }
 0xa3c   : > { %v5002_v11 = vpop.f32.mrb[230].mxu1  ;;  %v8442_v19 = vld [vmem:[%s10182_s7 + $0x68] sm:$0xff]  }
 0xa3d   : > { %v5006_v59 = vpack.c.bf16 %v5002_v11, %v4999_v14  ;;  %v7815_v23 = vpop.f32.mrb[231].mxu1 }
 0xa3e   : > { %v8443_v23 = vld [vmem:[%s10182_s7 + $0x70] sm:$0xff]  }
 0xa4a   : > { %v5107_v54 = vpop.f32.mrb[232].mxu1 }
 0xa4b   : > { %v7832_v39 = vpop.f32.mrb[233].mxu1 }
 0xa4c   : > { %v5110_v12 = vpop.f32.mrb[234].mxu1 }
 0xa4d   : > { %v5114_v24 = vpack.c.bf16 %v5110_v12, %v5107_v54  ;;  %v7833_v36 = vpop.f32.mrb[235].mxu1  ;;  %v8444_v54 = vld [vmem:[%s10182_s7 + $0x78] sm:$0xff]  }
 0xa5a   : > { %v5323_v2 = vpop.f32.mrb[236].mxu1 }
 0xa5b   : > { %v7868_v3 = vpop.f32.mrb[237].mxu1 }
 0xa5c   : > { %v5326_v13 = vpop.f32.mrb[238].mxu1 }
 0xa5d   : > { %v5330_v51 = vpack.c.bf16 %v5326_v13, %v5323_v2  ;;  %v7869_v29 = vpop.f32.mrb[239].mxu1 }
 0xa6a   : > { %v5431_v41 = vpop.f32.mrb[240].mxu1 }
 0xa6b   : > { %v7886_v6 = vpop.f32.mrb[241].mxu1 }
 0xa6c   : > { %v5434_v9 = vpop.f32.mrb[242].mxu1 }
 0xa6d   : > { %v5438_v37 = vpack.c.bf16 %v5434_v9, %v5431_v41  ;;  %v7887_v42 = vpop.f32.mrb[243].mxu1 }
 0xa7a   : > { %v5539_v0 = vpop.f32.mrb[244].mxu1 }
 0xa7b   : > { %v7904_v34 = vpop.f32.mrb[245].mxu1 }
 0xa7c   : > { %v5542_v4 = vpop.f32.mrb[246].mxu1 }
 0xa7d   : > { %v5546_v21 = vpack.c.bf16 %v5542_v4, %v5539_v0  ;;  %v7905_v15 = vpop.f32.mrb[247].mxu1 }
 0xb06   : > { %v4783_v30 = vpop.f32.mrb[92].mxu0 }
 0xb07   : > { %v7778_v32 = vpop.f32.mrb[93].mxu0 }
 0xb08   : > { %v4786_v44 = vpop.f32.mrb[94].mxu0 }
 0xb09   : > { %v4790_v22 = vpack.c.bf16 %v4786_v44, %v4783_v30  ;;  %v7779_v38 = vpop.f32.mrb[95].mxu0 }
 0xb0b   : > { %7783 = vmatmul.mubr.msk.bf16.vlgmr.msra.gmra.mrb[88].mxu0 %vm533_vm0, %v4790_v22 }
 0xb0c   : > { %7799 = vmatpush3.bf16.msra.mxu0 %v8431_v46  ;;  %7800 = vmatprep.mubr.msk.bf16.mxu0 %vm8458_vm5, %v8457_v56 }
 0xb0d   : > { %7816 = vmatprep.subr.bf16.mxu0 %v8457_v56 }
 0xb17   : > { %7801 = vmatmul.mubr.msk.bf16.vlgmr.msra.gmra.mrb[88].mxu0 %vm533_vm0, %v4898_v33 }
 0xb18   : > { %7817 = vmatpush3.bf16.msra.mxu0 %v8432_v20  ;;  %7818 = vmatprep.mubr.msk.bf16.mxu0 %vm8458_vm5, %v8457_v56 }
 0xb19   : > { %7834 = vmatprep.subr.bf16.mxu0 %v8457_v56 }
 0xb23   : > { %7819 = vmatmul.mubr.msk.bf16.vlgmr.msra.gmra.mrb[88].mxu0 %vm533_vm0, %v5006_v59 }
 0xb24   : > { %7835 = vmatpush3.bf16.msra.mxu0 %v8433_v43  ;;  %7836 = vmatprep.mubr.msk.bf16.mxu0 %vm8458_vm5, %v8457_v56 }
 0xb25   : > { %7840 = vmatprep.subr.bf16.mxu0 %v8457_v56 }
 0xb2f   : > { %7837 = vmatmul.mubr.msk.bf16.vlgmr.msra.gmra.mrb[88].mxu0 %vm533_vm0, %v5114_v24 }
 0xb30   : > { %7841 = vmatpush3.bf16.msra.mxu0 %v9806_v18  ;;  %7848 = vmatprep.mubr.msk.bf16.mxu0 %vm8458_vm5, %v8457_v56 }
 0xb31   : > { %7842 = vmatprep.subr.bf16.mxu0 %v8457_v56 }
 0xb34   : > { %7843 = vmatpush3.bf16.msra.mxu0 %v9810_v45 }
 0xb35   : > { %7844 = vmatprep.subr.bf16.mxu0 %v8457_v56 }
 0xb38   : > { %7845 = vmatpush3.bf16.msra.mxu0 %v9814_v60 }
 0xb39   : > { %7846 = vmatprep.subr.bf16.mxu0 %v8457_v56 }
 0xb3c   : > { %7847 = vmatpush3.bf16.msra.mxu0 %v9818_v40 }
 0xb3d   : > { %7852 = vmatprep.subr.bf16.mxu0 %v8457_v56 }
 0xb3f   : > { %7849 = vmatmul.mubr.msk.bf16.vlgmr.msra.gmra.mrb[96].mxu0 %vm4318_vm14, %v8434_v27 }
 0xb40   : > { %7854 = vmatprep.mubr.msk.bf16.mxu0 %vm8458_vm5, %v8457_v56  ;;  %7853 = vmatpush3.bf16.msra.mxu0 %v8435_v47 }
 0xb41   : > { %7870 = vmatprep.subr.bf16.mxu0 %v8457_v56 }
 0xc12   : > { %v5215_v10 = vpop.f32.mrb[96].mxu0 }
 0xc13   : > { %v7850_v57 = vpop.f32.mrb[97].mxu0 }
 0xc14   : > { %v5218_v52 = vpop.f32.mrb[98].mxu0  ;;  %v6035_v57 = vld [vmem:[%s10183_s8 + $0x8] sm:$0xff] }
 0xc15   : > { %v5222_v31 = vpack.c.bf16 %v5218_v52, %v5215_v10  ;;  %v7851_v28 = vpop.f32.mrb[99].mxu0  ;;  %v6034_v10 = vld [vmem:[%s10183_s8] sm:$0xff] }
 0xc16   : > { %v6036_v28 = vld [vmem:[%s10184_s9] sm:$0xff] }
 0xc17   : > { %7855 = vmatmul.mubr.msk.bf16.vlgmr.msra.gmra.mrb[88].mxu0 %vm533_vm0, %v5222_v31 }
 0xc18   : > { %7871 = vmatpush3.bf16.msra.mxu0 %v8436_v16  ;;  %7872 = vmatprep.mubr.msk.bf16.mxu0 %vm8458_vm5, %v8457_v56 }
 0xc19   : > { %7888 = vmatprep.subr.bf16.mxu0 %v8457_v56 }
 0xc23   : > { %7873 = vmatmul.mubr.msk.bf16.vlgmr.msra.gmra.mrb[88].mxu0 %vm533_vm0, %v5330_v51 }
 0xc24   : > { %7889 = vmatpush3.bf16.msra.mxu0 %v8437_v62  ;;  %7890 = vmatprep.mubr.msk.bf16.mxu0 %vm8458_vm5, %v8457_v56  ;;  %v6037_v62 = vld [vmem:[%s10184_s9 + $0x8] sm:$0xff] }
 0xc25   : > { %7906 = vmatprep.subr.bf16.mxu0 %v8457_v56 }
 0xc2f   : > { %7891 = vmatmul.mubr.msk.bf16.vlgmr.msra.gmra.mrb[88].mxu0 %vm533_vm0, %v5438_v37 }
 0xc30   : > { %7907 = vmatpush3.bf16.msra.mxu0 %v8438_v7  ;;  %7908 = vmatprep.mubr.msk.bf16.mxu0 %vm8458_vm5, %v8457_v56 }
 0xc31   : > { %7912 = vmatprep.subr.bf16.mxu0 %v8457_v56 }
 0xc3b   : > { %7909 = vmatmul.mubr.msk.bf16.vlgmr.msra.gmra.mrb[88].mxu0 %vm533_vm0, %v5546_v21 }
 0xc3c   : > { %7913 = vmatpush3.bf16.msra.mxu0 %v9806_v18  ;;  %7920 = vmatprep.mubr.msk.bf16.mxu0 %vm8458_vm5, %v8457_v56  ;;  %v8441_v18 = vld [vmem:[%s10182_s7 + $0x60] sm:$0xff]  }
 0xc3d   : > { %7914 = vmatprep.subr.bf16.mxu0 %v8457_v56 }
 0xc40   : > { %7915 = vmatpush3.bf16.msra.mxu0 %v9810_v45  ;;  %v5755_v45 = vpop.f32.mrb[248].mxu1 }
 0xc41   : > { %7916 = vmatprep.subr.bf16.mxu0 %v8457_v56 }
 0xc44   : > { %7917 = vmatpush3.bf16.msra.mxu0 %v9814_v60  ;;  %v7940_v60 = vpop.f32.mrb[249].mxu1 }
 0xc45   : > { %7918 = vmatprep.subr.bf16.mxu0 %v8457_v56  ;;  %v5758_v53 = vpop.f32.mrb[250].mxu1  ;;  %v6091_v60 = vld [vmem:[%s10185_s10] sm:$0xff] }
 0xc46   : > { %v5762_v58 = vpack.c.bf16 %v5758_v53, %v5755_v45  ;;  %v7941_v50 = vpop.f32.mrb[251].mxu1  ;;  %v6092_v53 = vld [vmem:[%s10185_s10 + $0x8] sm:$0xff] }
 0xc48   : > { %7919 = vmatpush3.bf16.msra.mxu0 %v9818_v40  ;;  %v5863_v40 = vpop.f32.mrb[252].mxu1 }
 0xc49   : > { %7924 = vmatprep.subr.bf16.mxu0 %v8457_v56  ;;  %v7958_v1 = vpop.f32.mrb[253].mxu1 }
 0xc4a   : > { %v5866_v55 = vpop.f32.mrb[254].mxu1 }
 0xc4b   : > { %7921 = vmatmul.mubr.msk.bf16.vlgmr.msra.gmra.mrb[100].mxu0 %vm4318_vm14, %v8439_v61  ;;  %v5870_v25 = vpack.c.bf16 %v5866_v55, %v5863_v40  ;;  %v7959_v17 = vpop.f32.mrb[255].mxu1 }
 0xc4c   : > { %7926 = vmatprep.mubr.msk.bf16.mxu0 %vm8458_vm5, %v8457_v56  ;;  %7925 = vmatpush3.bf16.msra.mxu0 %v8441_v18  ;;  %v5971_v63 = vpop.f32.mrb[0].mxu1 }
 0xc4d   : > { %7942 = vmatprep.subr.bf16.mxu0 %v8457_v56  ;;  %v7976_v49 = vpop.f32.mrb[1].mxu1 }
 0xc4e   : > { %v5974_v5 = vpop.f32.mrb[2].mxu1 }
 0xc4f   : > { %v5978_v48 = vpack.c.bf16 %v5974_v5, %v5971_v63  ;;  %v7977_v8 = vpop.f32.mrb[3].mxu1 }
 0xd1e   : > { %v5647_v33 = vpop.f32.mrb[100].mxu0 }
 0xd1f   : > { %v7922_v35 = vpop.f32.mrb[101].mxu0 }
 0xd20   : > { %v5650_v14 = vpop.f32.mrb[102].mxu0 }
 0xd21   : > { %v5654_v11 = vpack.c.bf16 %v5650_v14, %v5647_v33  ;;  %v7923_v59 = vpop.f32.mrb[103].mxu0 }
 0xd23   : > { %7927 = vmatmul.mubr.msk.bf16.vlgmr.msra.gmra.mrb[88].mxu0 %vm533_vm0, %v5654_v11  ;;  %v6108_v11 = vld [vmem:[#allocation2] sm:$0x1] }
 0xd24   : > { %7943 = vmatpush3.bf16.msra.mxu0 %v8442_v19  ;;  %7944 = vmatprep.mubr.msk.bf16.mxu0 %vm8458_vm5, %v8457_v56 }
 0xd25   : > { %7960 = vmatprep.subr.bf16.mxu0 %v8457_v56 }
 0xd2f   : > { %7945 = vmatmul.mubr.msk.bf16.vlgmr.msra.gmra.mrb[88].mxu0 %vm533_vm0, %v5762_v58 }
 0xd30   : > { %7961 = vmatpush3.bf16.msra.mxu0 %v8443_v23  ;;  %7962 = vmatprep.mubr.msk.bf16.mxu0 %vm8458_vm5, %v8457_v56 }
 0xd31   : > { %7978 = vmatprep.subr.bf16.mxu0 %v8457_v56 }
 0xd3b   : > { %7963 = vmatmul.mubr.msk.bf16.vlgmr.msra.gmra.mrb[88].mxu0 %vm533_vm0, %v5870_v25 }
 0xd3c   : > { %7979 = vmatpush3.bf16.msra.mxu0 %v8444_v54  ;;  %7980 = vmatprep.mubr.msk.bf16.mxu0 %vm8458_vm5, %v8457_v56 }
 0xd47   : > { %7981 = vmatmul.mubr.msk.bf16.vlgmr.msra.gmra.mrb[88].mxu0 %vm533_vm0, %v5978_v48 }
 0xe1a   : > { %v6025_v39 = vpop.f32.mrb[88].mxu0 }
 0xe1b   : > { %v7982_v12 = vpop.f32.mrb[89].mxu0  ;;  %v6039_v30 = vsel %vm6038_vm15, %v6025_v39, 0.0 }
 0xe1c   : > { %v6028_v24 = vpop.f32.mrb[90].mxu0 }
 0xe1d   : > { %v7983_v36 = vpop.f32.mrb[91].mxu0  ;;  %v6040_v32 = vsel %vm6038_vm15, %v6028_v24, 0.0 }
 0xe1e   : > { %v6041_v44 = vadd.f32 %v6040_v32, %v6039_v30 }
 0xe20   : > { %6042 = vadd.xlane.f32.xlu1 %v6041_v44 }
 0xead   : > { %v6043_v46 = vpop.xlane.xlu1 %6042 }
 0xeae   : > { %v6044_v22 = vrot.slane %v6043_v46, 4 }
 0xeb0   : > { %v6045_v38 = vadd.f32 %v6044_v22, %v6043_v46 }
 0xeb2   : > { %v6046_v20 = vrot.slane %v6045_v38, 2 }
 0xeb4   : > { %v6047_v43 = vadd.f32 %v6046_v20, %v6045_v38 }
 0xeb6   : > { %v6048_v27 = vrot.slane %v6047_v43, 1 }
 0xeb8   : > { %v6049_v56 = vadd.f32 %v6048_v27, %v6047_v43 }
 0xeba   : > { %8186 = vpush %v6049_v56 }
 0xeeb   : > { %s8187_s29 = spop %8186 }
 0xeec   : > { %s6053_s30 = smul.f32 0.001953125, %s8187_s29 }
 0xeee   : > { %v6054_v47 = vstv %s6053_s30 }
 0xeef   : > { %v6055_v2 = vsub.f32 %v6025_v39, %v6054_v47  ;;  %v6056_v3 = vsub.f32 %v6028_v24, %v6054_v47 }
 0xef1   : > { %v6057_v13 = vmul.f32 %v6055_v2, %v6055_v2  ;;  %v6058_v51 = vmul.f32 %v6056_v3, %v6056_v3 }
 0xef3   : > { %v6059_v29 = vsel %vm6038_vm15, %v6057_v13, 0.0  ;;  %v6060_v41 = vsel %vm6038_vm15, %v6058_v51, 0.0 }
 0xef4   : > { %v6061_v6 = vadd.f32 %v6060_v41, %v6059_v29 }
 0xef6   : > { %6062 = vadd.xlane.f32.xlu1 %v6061_v6 }
 0xf83   : > { %v6063_v9 = vpop.xlane.xlu1 %6062 }
 0xf84   : > { %v6064_v37 = vrot.slane %v6063_v9, 4 }
 0xf86   : > { %v6065_v42 = vadd.f32 %v6064_v37, %v6063_v9 }
 0xf88   : > { %v6066_v0 = vrot.slane %v6065_v42, 2 }
 0xf8a   : > { %v6067_v34 = vadd.f32 %v6066_v0, %v6065_v42 }
 0xf8c   : > { %v6068_v4 = vrot.slane %v6067_v34, 1 }
 0xf8e   : > { %v6069_v21 = vadd.f32 %v6068_v4, %v6067_v34 }
 0xf90   : > { %8188 = vpush %v6069_v21 }
 0xfc1   : > { %s8189_s13 = spop %8188 }
 0xfc2   : > { %s6073_s14 = smul.f32 0.001953125, %s8189_s13 }
 0xfc4   : > { %s6074_s15 = sadd.f32 1e-05, %s6073_s14 }
 0xfc6   : > { %v6075_v15 = vstv %s6074_s15  ;;  %s411_s15 = scalar_lea.vmem %s10187_s12, %s10250_s24 }
 0xfc7   : > { %8447 = vrsqrt.f32 %v6075_v15 }
 0xfd1   : > { %v8448_v26 = vpop.eup %8447 }
 0xfd2   : > { %8190 = vpush %v8448_v26 }
0x1003   : > { %s8191_s16 = spop %8190 }
0x1004   : > { %v6078_v52 = vstv %s8191_s16 }
0x1005   : > { %v6079_v16 = vmul.f32 %v6078_v52, %v6055_v2  ;;  %v6080_v31 = vmul.f32 %v6078_v52, %v6056_v3 }
0x1007   : > { %v6081_v7 = vmul.f32 %v6079_v16, %v6034_v10  ;;  %v6082_v61 = vmul.f32 %v6080_v31, %v6035_v57 }
0x1009   : > { %v6083_v18 = vadd.f32 %v6081_v7, %v6036_v28  ;;  %v6084_v45 = vadd.f32 %v6082_v61, %v6037_v62 }
0x100b   : > { %vm6085_vm0 = vcmp.ge.f32.partialorder %v6083_v18, 0.0  ;;  %vm6086_vm1 = vcmp.ge.f32.partialorder %v6084_v45, 0.0  ;;  %v6087_v58 = vmul.f32 0.2, %v6083_v18  ;;  %v6088_v50 = vmul.f32 0.2, %v6084_v45 }
0x100d   : > { %v6089_v40 = vsel %vm6085_vm0, %v6083_v18, %v6087_v58  ;;  %v6090_v1 = vsel %vm6086_vm1, %v6084_v45, %v6088_v50 }
0x100e   : > { %v6093_v55 = vmul.f32 %v6091_v60, %v6089_v40  ;;  %v6094_v25 = vmul.f32 %v6092_v53, %v6090_v1 }
0x1010   : > { %v6095_v17 = vsel %vm6038_vm15, %v6093_v55, 0.0  ;;  %v6096_v63 = vsel %vm6038_vm15, %v6094_v25, 0.0 }
0x1011   : > { %v6097_v49 = vadd.f32 %v6096_v63, %v6095_v17 }
0x1013   : > { %6098 = vadd.xlane.f32.xlu0 %v6097_v49 }
0x10a0   : > { %v6099_v5 = vpop.xlane.xlu0 %6098 }
0x10a1   : > { %v6100_v48 = vrot.slane %v6099_v5, 4 }
0x10a3   : > { %v6101_v8 = vadd.f32 %v6100_v48, %v6099_v5 }
0x10a5   : > { %v6102_v33 = vrot.slane %v6101_v8, 2 }
0x10a7   : > { %v6103_v35 = vadd.f32 %v6102_v33, %v6101_v8 }
0x10a9   : > { %v6104_v14 = vrot.slane %v6103_v35, 1 }
0x10ab   : > { %v6105_v19 = vadd.f32 %v6104_v14, %v6103_v35 }
0x10ad   : > { %8192 = vpush %v6105_v19 }
0x10de   : > { %s8193_s30 = spop %8192 }
0x10df   : > { %v6107_v59 = vstv %s8193_s30 }
0x10e0   : > { %v6109_v23 = vadd.f32 %v6108_v11, %v6107_v59 }
0x10e2   : > { %6111 = vst.msk [vmem:[%s411_s15] sm:$0x1] %vm6110_vm2, %v6109_v23 }
0x10e3 PF: > { %s24_s23 = sadd.s32 1, %s8455_s23  }
0x10e4   : > { %p21_p4 = scmp.ge.s32.totalorder %s24_s23, 4  }
0x10e6   :  { %23 = sbr.rel (!%p21_p4) target bundleno = 3 (0x3), region = 158 }

</bundles_post_ra>
